<compile_context>
chip_gen: v6e
topology: v6e:2x2x1
jax: 0.10.0
libtpu: 0.0.40
codegen_flags: <defaults>
</compile_context>

<pallas_src>
import math

import jax
import jax.numpy as jnp
from jax import lax
from jax.experimental import pallas as pl
from jax.experimental.pallas import tpu as pltpu


def _largest_divisor_leq(total, target):
    """Largest divisor of `total` that is <= `target` (never falls back to full extent)."""
    t = max(1, min(target, total))
    while total % t:
        t -= 1
    return t


# ----------------------------------------------------------------------------
# Kernel 1: fused QKV projection  (batch*n, dim_in) @ (dim_in, 2*dim_k(+pad)+dim_v)
# ----------------------------------------------------------------------------
def _qkv_proj_kernel(x_ref, w_ref, o_ref):
    # x_ref: (bm, dim_in); w_ref: (dim_in, bn); o_ref: (bm, bn)
    o_ref[...] = jnp.dot(
        x_ref[...], w_ref[...], preferred_element_type=jnp.float32
    ).astype(o_ref.dtype)


def _qkv_projection(x2d, w_fused, *, bm, bn, vmem_limit):
    rows, dim_in = x2d.shape
    cols = w_fused.shape[1]
    grid = (rows // bm, cols // bn)
    # TODO(synk): add a K grid axis + f32 accumulator (pl.when init/finalize) if
    # dim_in grows beyond ~1-2k; here the contraction dim is small and kept whole.
    return pl.pallas_call(
        _qkv_proj_kernel,
        out_shape=jax.ShapeDtypeStruct((rows, cols), x2d.dtype),
        grid_spec=pltpu.PrefetchScalarGridSpec(
            num_scalar_prefetch=0,
            grid=grid,
            in_specs=[
                pl.BlockSpec((bm, dim_in), lambda i, j: (i, 0)),
                pl.BlockSpec((dim_in, bn), lambda i, j: (0, j)),
            ],
            out_specs=pl.BlockSpec((bm, bn), lambda i, j: (i, j)),
        ),
        compiler_params=pltpu.CompilerParams(
            dimension_semantics=("parallel", "parallel"),
            vmem_limit_bytes=vmem_limit,
        ),
    )(x2d, w_fused)


# ----------------------------------------------------------------------------
# Kernel 2: flash attention over (batch*heads, q_blocks, kv_blocks),
# reading per-head Q/K/V slabs directly from the fused 2-D qkv buffer.
# ----------------------------------------------------------------------------
def _flash_attn_kernel(q_ref, k_ref, v_ref, o_ref, m_ref, l_ref, acc_ref):
    # q_ref: (bq, dk); k_ref: (bkv, dk); v_ref: (bkv, dv); o_ref: (bq, dv)
    ki = pl.program_id(2)

    @pl.when(ki == 0)
    def _init():
        m_ref[...] = jnp.full(m_ref.shape, -jnp.inf, dtype=m_ref.dtype)
        l_ref[...] = jnp.zeros(l_ref.shape, dtype=l_ref.dtype)
        acc_ref[...] = jnp.zeros(acc_ref.shape, dtype=acc_ref.dtype)

    q = q_ref[...]
    k = k_ref[...]
    v = v_ref[...]

    # Q @ K^T without materializing a transpose: contract the last axes.
    # (Q was pre-scaled by 1/sqrt(dk) via the fused projection weights.)
    s = lax.dot_general(
        q, k, (((1,), (1,)), ((), ())), preferred_element_type=jnp.float32
    )  # (bq, bkv)

    # Online softmax update (numerically stable).
    m_prev = m_ref[...]                                           # (bq, 1)
    m_new = jnp.maximum(m_prev, jnp.max(s, axis=-1, keepdims=True))
    alpha = jnp.exp(m_prev - m_new)                               # EUP
    p = jnp.exp(s - m_new)                                        # (bq, bkv), EUP

    l_ref[...] = alpha * l_ref[...] + jnp.sum(p, axis=-1, keepdims=True)
    acc_ref[...] = alpha * acc_ref[...] + jnp.dot(
        p.astype(v.dtype), v, preferred_element_type=jnp.float32
    )
    m_ref[...] = m_new

    @pl.when(ki == pl.num_programs(2) - 1)
    def _finalize():
        # Exact reciprocal: runs once per q tile, negligible cost, tight accuracy.
        inv_l = pl.reciprocal(l_ref[...], approx=False)
        o_ref[...] = (acc_ref[...] * inv_l).astype(o_ref.dtype)


def _flash_attention(qkv, *, batch, n, nh, dk, dv, k_col_blk, v_col_blk,
                     bq, bkv, vmem_limit):
    rows = batch * n
    dim_v = nh * dv
    q_blocks = n // bq
    kv_blocks = n // bkv
    grid = (batch * nh, q_blocks, kv_blocks)

    # Grid axis 0 enumerates (batch, head); decompose it inside the index_maps so
    # heads are picked as column blocks of the fused qkv buffer (no XLA transpose).
    def q_map(b, qi, ki):
        return ((b // nh) * q_blocks + qi, b % nh)

    def k_map(b, qi, ki):
        return ((b // nh) * kv_blocks + ki, k_col_blk + (b % nh))

    def v_map(b, qi, ki):
        return ((b // nh) * kv_blocks + ki, v_col_blk + (b % nh))

    def o_map(b, qi, ki):
        return ((b // nh) * q_blocks + qi, b % nh)

    return pl.pallas_call(
        _flash_attn_kernel,
        out_shape=jax.ShapeDtypeStruct((rows, dim_v), qkv.dtype),
        grid_spec=pltpu.PrefetchScalarGridSpec(
            num_scalar_prefetch=0,
            grid=grid,
            in_specs=[
                pl.BlockSpec((bq, dk), q_map),    # Q slab of head h
                pl.BlockSpec((bkv, dk), k_map),   # K slab of head h
                pl.BlockSpec((bkv, dv), v_map),   # V slab of head h
            ],
            out_specs=pl.BlockSpec((bq, dv), o_map),
            scratch_shapes=[
                pltpu.VMEM((bq, 1), jnp.float32),   # running max  m
                pltpu.VMEM((bq, 1), jnp.float32),   # running denom l
                pltpu.VMEM((bq, dv), jnp.float32),  # running numerator acc
            ],
        ),
        compiler_params=pltpu.CompilerParams(
            dimension_semantics=("parallel", "parallel", "arbitrary"),
            vmem_limit_bytes=vmem_limit,
        ),
    )(qkv, qkv, qkv)


# ----------------------------------------------------------------------------
# Module wrapper
# ----------------------------------------------------------------------------
def mhsa_pallas(x, wq, wk, wv, num_heads, *,
                q_block=256, kv_block=256,
                proj_row_block=512, proj_col_block=1024,
                vmem_limit=48 * 1024 * 1024):
    """x: (batch, n, dim_in); wq/wk: (dim_k, dim_in); wv: (dim_v, dim_in) (PyTorch layout)."""
    batch, n, dim_in = x.shape
    dim_k = wq.shape[0]
    dim_v = wv.shape[0]
    nh = num_heads
    assert dim_k % nh == 0 and dim_v % nh == 0
    dk = dim_k // nh
    dv = dim_v // nh
    norm_fact = 1.0 / math.sqrt(dk)

    # Fused projection weight [Q*scale | K | (zero pad) | V].  The (usually zero)
    # pad aligns V's first column to a multiple of dv so the attention BlockSpec
    # can address a head's V slab as a whole column block of the fused buffer.
    pad = (-2 * dim_k) % dv
    parts = [wq.T * jnp.asarray(norm_fact, x.dtype), wk.T]
    if pad:
        parts.append(jnp.zeros((dim_in, pad), x.dtype))
    parts.append(wv.T)
    w_fused = jnp.concatenate(parts, axis=1)   # (dim_in, 2*dim_k + pad + dim_v)
    v_start = 2 * dim_k + pad
    total_cols = w_fused.shape[1]

    rows = batch * n
    bm = _largest_divisor_leq(rows, proj_row_block)
    bn = _largest_divisor_leq(total_cols, proj_col_block)
    qkv = _qkv_projection(x.reshape(rows, dim_in), w_fused,
                          bm=bm, bn=bn, vmem_limit=vmem_limit)

    # Flash attention straight on the fused buffer; heads picked in the index_maps.
    bq = _largest_divisor_leq(n, q_block)
    bkv = _largest_divisor_leq(n, kv_block)
    att2d = _flash_attention(
        qkv, batch=batch, n=n, nh=nh, dk=dk, dv=dv,
        k_col_blk=dim_k // dk, v_col_blk=v_start // dv,
        bq=bq, bkv=bkv, vmem_limit=vmem_limit)

    # (batch*n, nh*dv) already has heads concatenated on the feature axis in the
    # PyTorch order; this reshape is a free view (no transpose).
    return att2d.reshape(batch, n, dim_v)


# ----------------------------------------------------------------------------
# Pure-JAX reference (mirrors the PyTorch forward exactly)
# ----------------------------------------------------------------------------
def mhsa_reference(x, wq, wk, wv, num_heads):
    batch, n, dim_in = x.shape
    dim_k = wq.shape[0]
    dim_v = wv.shape[0]
    dk = dim_k // num_heads
    dv = dim_v // num_heads
    norm_fact = 1.0 / math.sqrt(dk)

    q = (x @ wq.T).reshape(batch, n, num_heads, dk).transpose(0, 2, 1, 3)
    k = (x @ wk.T).reshape(batch, n, num_heads, dk).transpose(0, 2, 1, 3)
    v = (x @ wv.T).reshape(batch, n, num_heads, dv).transpose(0, 2, 1, 3)
    dist = jnp.einsum("bhqd,bhkd->bhqk", q, k) * norm_fact
    dist = jax.nn.softmax(dist, axis=-1)
    att = jnp.einsum("bhqk,bhkd->bhqd", dist, v)
    return att.transpose(0, 2, 1, 3).reshape(batch, n, dim_v)


if __name__ == "__main__":
    # Small but TPU-friendly shapes: per-head dims are lane-aligned (dk = dv = 128),
    # blocks clamp to divisors (bq = bkv = 256), batch*heads = 16 parallel slices.
    batch, n, dim_in = 2, 256, 128
    dim_k, dim_v, num_heads = 1024, 1024, 8

    key = jax.random.PRNGKey(0)
    kx, kq, kk, kv = jax.random.split(key, 4)

    x = jax.random.normal(kx, (batch, n, dim_in), dtype=jnp.float32)
    bound = 1.0 / math.sqrt(dim_in)
    wq = jax.random.uniform(kq, (dim_k, dim_in), minval=-bound, maxval=bound, dtype=jnp.float32)
    wk = jax.random.uniform(kk, (dim_k, dim_in), minval=-bound, maxval=bound, dtype=jnp.float32)
    wv = jax.random.uniform(kv, (dim_v, dim_in), minval=-bound, maxval=bound, dtype=jnp.float32)

    out = mhsa_pallas(x, wq, wk, wv, num_heads)
    out = jax.block_until_ready(out)

    ref = mhsa_reference(x, wq, wk, wv, num_heads)
    assert out.shape == (batch, n, dim_v)
    assert jnp.allclose(out, ref, atol=1e-3, rtol=1e-3), (
        "mismatch vs reference: max abs err = "
        f"{float(jnp.max(jnp.abs(out - ref)))}"
    )

    print("KERNEL_OK")
</pallas_src>

<mosaic_0001>
module attributes {stable_mosaic.version = 11 : i64} {
  func.func @_qkv_proj_kernel(%arg0: i32, %arg1: i32, %arg2: memref<512x128xf32, #tpu.memory_space<vmem>>, %arg3: memref<128x1024xf32, #tpu.memory_space<vmem>>, %arg4: memref<512x1024xf32, #tpu.memory_space<vmem>>) attributes {dimension_semantics = [#tpu.dimension_semantics<parallel>, #tpu.dimension_semantics<parallel>], iteration_bounds = array<i64: 1, 3>, scalar_prefetch = 0 : i64, scratch_operands = 0 : i64, tpu.core_type = #tpu.core_type<tc>, window_params = [{transform_indices = @transform_0, window_bounds = array<i64: 512, 128>}, {transform_indices = @transform_1, window_bounds = array<i64: 128, 1024>}, {transform_indices = @transform_2, window_bounds = array<i64: 512, 1024>}]} {
    %c0 = arith.constant 0 : index
    %c0_0 = arith.constant 0 : index
    %0 = vector.load %arg2[%c0, %c0_0] : memref<512x128xf32, #tpu.memory_space<vmem>>, vector<512x128xf32>
    %c0_1 = arith.constant 0 : index
    %c0_2 = arith.constant 0 : index
    %1 = vector.load %arg3[%c0_1, %c0_2] : memref<128x1024xf32, #tpu.memory_space<vmem>>, vector<128x1024xf32>
    %cst = arith.constant dense<0.000000e+00> : vector<512x1024xf32>
    %2 = tpu.matmul %0, %1, %cst {dimension_numbers = #tpu.dot_dimension_numbers<[1], [0], [0], [1], [0, 0, 1, 1], [], []>} : vector<512x128xf32>, vector<128x1024xf32>, vector<512x1024xf32> -> vector<512x1024xf32>
    %c0_3 = arith.constant 0 : index
    %c0_4 = arith.constant 0 : index
    %3 = vector.load %arg4[%c0_3, %c0_4] : memref<512x1024xf32, #tpu.memory_space<vmem>>, vector<512x1024xf32>
    tpu.vector_store %arg4[%c0_3, %c0_4], %2 {strides = array<i32>} : memref<512x1024xf32, #tpu.memory_space<vmem>>, vector<512x1024xf32>,
    return
  }
  func.func @transform_0(%arg0: i32, %arg1: i32) -> (i32, i32) {
    %c0_i32 = arith.constant 0 : i32
    %c0_i32_0 = arith.constant 0 : i32
    return %arg0, %c0_i32 : i32, i32
  }
  func.func @transform_1(%arg0: i32, %arg1: i32) -> (i32, i32) {
    %c0_i32 = arith.constant 0 : i32
    %c0_i32_0 = arith.constant 0 : i32
    return %c0_i32, %arg1 : i32, i32
  }
  func.func @transform_2(%arg0: i32, %arg1: i32) -> (i32, i32) {
    %c0_i32 = arith.constant 0 : i32
    return %arg0, %arg1 : i32, i32
  }
}

</mosaic_0001>

<bundles_post_ra>
// kernel: tpu_custom_call.1
= control target key start
LH: loop header
LB: loop body
LE: loop exit
PB: predicated region body
PF: predicated region fallthrough
CT: control target
= control target key end

     0   :  { %7 = vsyncpa [#allocation3], 0  ;;  %s4225_s0 = inlined_call_operand.hbm [shape: f32[512,128], index: 0, kind: input, shape index: {}]   ;;  %s4226_s1 = inlined_call_operand.hbm [shape: f32[128,3072], index: 1, kind: input, shape index: {}]   ;;  %s4227_s2 = inlined_call_operand.hbm [shape: f32[512,3072], index: 2, kind: output, shape index: {}]  }
   0x1   :  { %8 = vsyncpa [#allocation6], 0 }
   0x2   :  { %10 = vsyncpa [#allocation6 + $0x1], 0 }
   0x3   :  { %11 = vsyncpa [#allocation4], 0 }
   0x4   :  { %13 = vsyncpa [#allocation4 + $0x1], 0  ;;  %s3150_s9 = smov 0   ;;  %s3152_s10 = smov 0  }
   0x5   :  { %s3154_s11 = smov 0   ;;  %s3156_s12 = smov 0  }
   0x6   :  { %s3158_s13 = smov 0   ;;  %s3160_s14 = smov 0  }
   0x7 LB: > { %s2818_s15 = sadd.s32 4294967295, %s3121_s14   ;;  %s2819_s16 = sadd.s32 4294967294, %s3121_s14   ;;  %s3121_s14 = sphi %s3160_s14, %s19_s14   ;;  %s3117_s13 = sphi %s3158_s13, %s4248_s13   ;;  %s3113_s12 = sphi %s3156_s12, %s4247_s12   ;;  %s3109_s11 = sphi %s3154_s11, %s4246_s11   ;;  %s3105_s10 = sphi %s3152_s10, %s4245_s10   ;;  %s3101_s9 = sphi %s3150_s9, %s4244_s9  }
   0x8   : > { %p71_p0 = scmp.ne.s32.totalorder %s3109_s11, %s3105_s10  ;;  %p72_p1 = scmp.eq.s32.totalorder %s3121_s14, 0 }
   0x9   : > { %p77_p2 = scmp.ne.s32.totalorder %s3105_s10, %s3101_s9  ;;  %p3187_p3 = scmp.eq.s32.totalorder %s2818_s15, 0 }
   0xa   : > { %p3191_p4 = por %p72_p1, %p71_p0  ;;  %p103_p5 = scmp.eq.s32.totalorder %s2818_s15, 2 }
   0xb   : > { %p3197_p6 = por %p3187_p3, %p77_p2  ;;  %p109_p7 = scmp.eq.s32.totalorder %s2819_s16, 2 }
   0xc   : > { %p3201_p8 = por %p103_p5, %p71_p0  ;;  %p2820_p9 = scmp.ge.s32.totalorder %s3121_s14, 1 }
   0xd   : > { %s4233_s19 = scalar_select %p3197_p6, 1, 0 }
   0xe   : > { %s4234_s20 = scalar_select %p3201_p8, 1, 0 }
   0xf   : > { %p3206_p10 = por %p109_p7, %p77_p2  ;;  %p116_p11 = scmp.lt.s32.totalorder %s3121_s14, 4 }
  0x10   : > { %s3123_s23 = smov [#allocation2]   ;;  %p2858_p0 = scmp.lt.s32.totalorder %s3121_s14, 3 }
  0x11   : > { %s4235_s21 = scalar_select %p3206_p10, 1, 0 }
  0x12   : > { %p3211_p12 = pnand %p2820_p9, %p116_p11  ;;  %s131_s24 = sshll.u32 %s3123_s23, 4  ;;  %s132_s24 = int_to_ptr.vmem [resolvable:$true] %s131_s24 }
  0x13   : > { %4236 = sst [smem:[#allocation11_spill]] %s4235_s21  ;;  %p3226_p2 = pnand %p2858_p0, %p3191_p4 }
  0x14   : > { %p2845_p13 = pneg %p3211_p12  ;;  %s28_s27 = sadd.s32 1, %s3117_s13 }
  0x15   : > { %s2994_s28 = scalar_lea.vmem %s132_s24, 8192  ;;  %p3002_p10 = scmp.lt.s32.totalorder %s132_s24, %s132_s24 }
  0x16   : > { %p3220_p1 = pnand %p2845_p13, %p3187_p3  ;;  %p2995_p7 = scmp.ne.s32.totalorder %s132_s24, %s2994_s28 }
  0x17   : > { %p3003_p8 = scmp.lt.s32.totalorder %s2994_s28, %s2994_s28 }
  0x18   : > { %p2985_p5 = pneg %p3220_p1 }
  0x19   : > { %p3004_p6 = por %p3003_p8, %p3002_p10 }
  0x1a   : > { %p2997_p9 = pnand %p2995_p7, %p2985_p5 }
  0x1c   : > { %p2998_p11 = pneg %p2997_p9 }
  0x1e   : > { %p3005_p13 = pnand %p3004_p6, %p2998_p11 }
  0x20   : > { %3008 = shalt.err (!%p3005_p13)
}
  0x21   : > { %s3124_s29 = smov 128   ;;  %s3125_s30 = smov 8  }
  0x22   : > { %2848 = dma.hbm_to_vmem [thread:$0]  (!%p3220_p1), %s4225_s0, 8192, %s132_s24, [#allocation3], %s3124_s29, %s3124_s29, %s3125_s30  }
  0x23   : > { %p29_p4 = scmp.ge.s32.totalorder %s28_s27, 3  ;;  %s64_s5 = sadd.s32 1, %s3109_s11 }
  0x24   : > { %s145_s6 = sand.u32 1, %s3109_s11   ;;  %s2835_s15 = sshll.u32 %s3117_s13, 10 }
  0x25   : > { %s4250_s27 = smov (%p29_p4, %s28_s27), 0  ;;  %s2823_s7 = sshll.u32 %s145_s6, 10 }
  0x26   : > { %s61_s8 = ssub.s32 %s3117_s13, %s4250_s27  ;;  %s155_s23 = scalar_lea.hbm %s4226_s1, %s2835_s15 }
  0x27   : > { %p62_p6 = scmp.eq.s32.totalorder %s61_s8, 0  ;;  %s149_s25 = scalar_lea.vmem [#allocation5], %s2823_s7 }
  0x28   : > { %s156_s28 = sshll.u32 %s149_s25, 4  ;;  %s146_s24 = scalar_lea.sflag [#allocation6], %s145_s6  ;;  %s157_s28 = int_to_ptr.vmem [resolvable:$true] %s156_s28 }
  0x29   : > { %s3249_s21 = scalar_select %p62_p6, %s3109_s11, %s64_s5  }
  0x2a   : > { %p3011_p8 = pneg %p3226_p2  ;;  %s3022_s29 = scalar_lea.vmem %s157_s28, 16384 }
  0x2b   : > { %p3023_p10 = scmp.ne.s32.totalorder %s157_s28, %s3022_s29  ;;  %s3126_s30 = smov [#allocation5]  }
  0x2c   : > { %s3027_s3 = sshll.u32 %s3126_s30, 4  ;;  %s3028_s3 = int_to_ptr.vmem [resolvable:$false] %s3027_s3 }
  0x2d   : > { %p3025_p0 = pnand %p3023_p10, %p3011_p8  ;;  %s3029_s4 = scalar_lea.vmem %s3028_s3, 32768 }
  0x2e   : > { %p3030_p5 = scmp.lt.s32.totalorder %s157_s28, %s3028_s3  ;;  %p3031_p7 = scmp.lt.s32.totalorder %s3029_s4, %s3022_s29 }
  0x2f   : > { %p3026_p1 = pneg %p3025_p0 }
  0x30   : > { %p3032_p9 = por %p3031_p7, %p3030_p5 }
  0x32   : > { %p3033_p11 = pnand %p3032_p9, %p3026_p1 }
  0x34   : > { %3036 = shalt.err (!%p3033_p11)
}
  0x35   : > { %s3127_s7 = smov 3072   ;;  %s3128_s5 = smov 1024  }
  0x36   : > { %s3129_s8 = smov 64   ;;  %168 = sbr.rel (%p3211_p12) target bundleno = 816 (0x330), region = 28 }
  0x37   : > { %2852 = dma.hbm_to_vmem [thread:$0]  (!%p3226_p2), %s155_s23, 16384, %s157_s28, %s146_s24, %s3127_s7, %s3128_s5, %s3129_s8  }
  0x3b   : > { %3088 = dma.done.wait (%p3187_p3), [#allocation3], 8192  }
  0x3c   : > { %3090 = vsyncadd (%p3187_p3), [#allocation3], 4294959104  ;;  %s3262_s6 = sand.u32 1, %s3105_s10   ;;  %p4240_p2 = scmp.ne.s32.totalorder %s4233_s19, 0 }
  0x3d   : > { %s2828_s15 = sshll.u32 %s3262_s6, 10  ;;  %s175_s16 = scalar_lea.sflag [#allocation6], %s3262_s6 }
  0x3e   : > { %s3266_s18 = scalar_lea.vmem [#allocation5], %s2828_s15 }
  0x3f   : > { %3092 = dma.done.wait (%p4240_p2), %s175_s16, 16384  }
  0x40   : > { %3094 = vsyncadd (%p4240_p2), %s175_s16, 4294950912  ;;  %v3130_v0 = vmov 0.0   ;;  %v388_v1 = vld [vmem:[%s3266_s18 + $0x3c8] sm:$0xff]  ;;  %v390_v2 = vld [vmem:[%s3266_s18 + $0x3d8] sm:$0xff]  ;;  %s2829_s17 = sshll.u32 %s3262_s6, 12  ;;  %s2836_s22 = sshll.u32 %s3113_s12, 10 }
  0x41   : > { %459 = vmatprep.mubr.f32.mxu0 %v3130_v0  ;;  %908 = vmatprep.mubr.f32.mxu1 %v3130_v0  ;;  %v387_v3 = vld [vmem:[%s3266_s18 + $0x3c0] sm:$0xff]  ;;  %v389_v4 = vld [vmem:[%s3266_s18 + $0x3d0] sm:$0xff]  ;;  %v380_v5 = vld [vmem:[%s3266_s18 + $0x388] sm:$0xff]  ;;  %s3499_s19 = scalar_lea.vmem [#allocation7], %s2829_s17  ;;  %s4172_s28 = scalar_lea.hbm %s4227_s2, %s2836_s22 }
  0x42   : > { %395 = vmatprep.subr.mxu0 %v388_v1  ;;  %844 = vmatprep.subr.mxu1 %v390_v2  ;;  %v382_v6 = vld [vmem:[%s3266_s18 + $0x398] sm:$0xff]  ;;  %v379_v7 = vld [vmem:[%s3266_s18 + $0x380] sm:$0xff]  ;;  %v381_v8 = vld [vmem:[%s3266_s18 + $0x390] sm:$0xff]  ;;  %s2720_s26 = sshll.u32 %s3499_s19, 4  ;;  %s2704_s12 = scalar_lea.sflag [#allocation4], %s3262_s6  ;;  %s4174_s26 = int_to_ptr.vmem [resolvable:$true] %s2720_s26 }
  0x43   : > { %396 = vmatpush1.msra.mxu0 %v387_v3  ;;  %845 = vmatpush1.msra.mxu1 %v389_v4  ;;  %v372_v9 = vld [vmem:[%s3266_s18 + $0x348] sm:$0xff]  ;;  %v374_v10 = vld [vmem:[%s3266_s18 + $0x358] sm:$0xff]  ;;  %v371_v11 = vld [vmem:[%s3266_s18 + $0x340] sm:$0xff]  ;;  %s3037_s24 = scalar_lea.vmem %s4174_s26, 65536  ;;  %p4241_p12 = scmp.ne.s32.totalorder %s4234_s20, 0 }
  0x44   : > { %397 = vmatprep.subr.mxu0 %v380_v5  ;;  %846 = vmatprep.subr.mxu1 %v382_v6  ;;  %v373_v12 = vld [vmem:[%s3266_s18 + $0x350] sm:$0xff]  ;;  %v364_v13 = vld [vmem:[%s3266_s18 + $0x308] sm:$0xff]  ;;  %v366_v14 = vld [vmem:[%s3266_s18 + $0x318] sm:$0xff]  ;;  %p3038_p3 = scmp.ne.s32.totalorder %s4174_s26, %s3037_s24  ;;  %s3131_s29 = smov [#allocation7]  }
  0x45   : > { %398 = vmatpush1.msra.mxu0 %v379_v7  ;;  %847 = vmatpush1.msra.mxu1 %v381_v8  ;;  %v363_v15 = vld [vmem:[%s3266_s18 + $0x300] sm:$0xff]  ;;  %v365_v16 = vld [vmem:[%s3266_s18 + $0x310] sm:$0xff]  ;;  %v356_v17 = vld [vmem:[%s3266_s18 + $0x2c8] sm:$0xff]  ;;  %s3041_s30 = sshll.u32 %s3131_s29, 4  ;;  %s3042_s30 = int_to_ptr.vmem [resolvable:$false] %s3041_s30 }
  0x46   : > { %399 = vmatprep.subr.mxu0 %v372_v9  ;;  %848 = vmatprep.subr.mxu1 %v374_v10  ;;  %v358_v18 = vld [vmem:[%s3266_s18 + $0x2d8] sm:$0xff]  ;;  %v355_v19 = vld [vmem:[%s3266_s18 + $0x2c0] sm:$0xff]  ;;  %v357_v20 = vld [vmem:[%s3266_s18 + $0x2d0] sm:$0xff]  ;;  %p3039_p13 = pnand %p3038_p3, %p4241_p12  ;;  %s3043_s3 = scalar_lea.vmem %s3042_s30, 131072 }
  0x47   : > { %400 = vmatpush1.msra.mxu0 %v371_v11  ;;  %849 = vmatpush1.msra.mxu1 %v373_v12  ;;  %v348_v21 = vld [vmem:[%s3266_s18 + $0x288] sm:$0xff]  ;;  %v350_v22 = vld [vmem:[%s3266_s18 + $0x298] sm:$0xff]  ;;  %v347_v23 = vld [vmem:[%s3266_s18 + $0x280] sm:$0xff]  ;;  %p3044_p6 = scmp.lt.s32.totalorder %s4174_s26, %s3042_s30  ;;  %p3045_p8 = scmp.lt.s32.totalorder %s3043_s3, %s3037_s24 }
  0x48   : > { %401 = vmatprep.subr.mxu0 %v364_v13  ;;  %850 = vmatprep.subr.mxu1 %v366_v14  ;;  %v349_v24 = vld [vmem:[%s3266_s18 + $0x290] sm:$0xff]  ;;  %v340_v25 = vld [vmem:[%s3266_s18 + $0x248] sm:$0xff]  ;;  %v342_v26 = vld [vmem:[%s3266_s18 + $0x258] sm:$0xff]  ;;  %p3040_p4 = pneg %p3039_p13 }
  0x49   : > { %402 = vmatpush1.msra.mxu0 %v363_v15  ;;  %851 = vmatpush1.msra.mxu1 %v365_v16  ;;  %v339_v27 = vld [vmem:[%s3266_s18 + $0x240] sm:$0xff]  ;;  %v341_v28 = vld [vmem:[%s3266_s18 + $0x250] sm:$0xff]  ;;  %v332_v29 = vld [vmem:[%s3266_s18 + $0x208] sm:$0xff]  ;;  %p3046_p10 = por %p3045_p8, %p3044_p6 }
  0x4a   : > { %403 = vmatprep.subr.mxu0 %v356_v17  ;;  %852 = vmatprep.subr.mxu1 %v358_v18  ;;  %v334_v30 = vld [vmem:[%s3266_s18 + $0x218] sm:$0xff]  ;;  %v331_v31 = vld [vmem:[%s3266_s18 + $0x200] sm:$0xff]  ;;  %v333_v32 = vld [vmem:[%s3266_s18 + $0x210] sm:$0xff] }
  0x4b   : > { %404 = vmatpush1.msra.mxu0 %v355_v19  ;;  %853 = vmatpush1.msra.mxu1 %v357_v20  ;;  %v324_v33 = vld [vmem:[%s3266_s18 + $0x1c8] sm:$0xff]  ;;  %v326_v34 = vld [vmem:[%s3266_s18 + $0x1d8] sm:$0xff]  ;;  %v323_v35 = vld [vmem:[%s3266_s18 + $0x1c0] sm:$0xff]  ;;  %p3047_p0 = pnand %p3046_p10, %p3040_p4 }
  0x4c   : > { %405 = vmatprep.subr.mxu0 %v348_v21  ;;  %854 = vmatprep.subr.mxu1 %v350_v22  ;;  %v325_v36 = vld [vmem:[%s3266_s18 + $0x1d0] sm:$0xff]  ;;  %v316_v37 = vld [vmem:[%s3266_s18 + $0x188] sm:$0xff]  ;;  %v318_v38 = vld [vmem:[%s3266_s18 + $0x198] sm:$0xff] }
  0x4d   : > { %406 = vmatpush1.msra.mxu0 %v347_v23  ;;  %855 = vmatpush1.msra.mxu1 %v349_v24  ;;  %v315_v39 = vld [vmem:[%s3266_s18 + $0x180] sm:$0xff]  ;;  %v317_v40 = vld [vmem:[%s3266_s18 + $0x190] sm:$0xff]  ;;  %v308_v41 = vld [vmem:[%s3266_s18 + $0x148] sm:$0xff] }
  0x4e   : > { %407 = vmatprep.subr.mxu0 %v340_v25  ;;  %856 = vmatprep.subr.mxu1 %v342_v26  ;;  %v310_v42 = vld [vmem:[%s3266_s18 + $0x158] sm:$0xff]  ;;  %v307_v43 = vld [vmem:[%s3266_s18 + $0x140] sm:$0xff]  ;;  %v309_v44 = vld [vmem:[%s3266_s18 + $0x150] sm:$0xff] }
  0x4f   : > { %408 = vmatpush1.msra.mxu0 %v339_v27  ;;  %857 = vmatpush1.msra.mxu1 %v341_v28  ;;  %v300_v45 = vld [vmem:[%s3266_s18 + $0x108] sm:$0xff]  ;;  %v302_v46 = vld [vmem:[%s3266_s18 + $0x118] sm:$0xff]  ;;  %v299_v47 = vld [vmem:[%s3266_s18 + $0x100] sm:$0xff] }
  0x50   : > { %409 = vmatprep.subr.mxu0 %v332_v29  ;;  %858 = vmatprep.subr.mxu1 %v334_v30  ;;  %v301_v48 = vld [vmem:[%s3266_s18 + $0x110] sm:$0xff]  ;;  %v292_v49 = vld [vmem:[%s3266_s18 + $0xc8] sm:$0xff]  ;;  %v294_v50 = vld [vmem:[%s3266_s18 + $0xd8] sm:$0xff] }
  0x51   : > { %410 = vmatpush1.msra.mxu0 %v331_v31  ;;  %859 = vmatpush1.msra.mxu1 %v333_v32  ;;  %v291_v51 = vld [vmem:[%s3266_s18 + $0xc0] sm:$0xff]  ;;  %v293_v52 = vld [vmem:[%s3266_s18 + $0xd0] sm:$0xff]  ;;  %v284_v53 = vld [vmem:[%s3266_s18 + $0x88] sm:$0xff] }
  0x52   : > { %411 = vmatprep.subr.mxu0 %v324_v33  ;;  %860 = vmatprep.subr.mxu1 %v326_v34  ;;  %v286_v54 = vld [vmem:[%s3266_s18 + $0x98] sm:$0xff]  ;;  %v283_v55 = vld [vmem:[%s3266_s18 + $0x80] sm:$0xff]  ;;  %v285_v56 = vld [vmem:[%s3266_s18 + $0x90] sm:$0xff] }
  0x53   : > { %412 = vmatpush1.msra.mxu0 %v323_v35  ;;  %861 = vmatpush1.msra.mxu1 %v325_v36  ;;  %v276_v57 = vld [vmem:[%s3266_s18 + $0x48] sm:$0xff]  ;;  %v278_v58 = vld [vmem:[%s3266_s18 + $0x58] sm:$0xff]  ;;  %v275_v59 = vld [vmem:[%s3266_s18 + $0x40] sm:$0xff] }
  0x54   : > { %413 = vmatprep.subr.mxu0 %v316_v37  ;;  %862 = vmatprep.subr.mxu1 %v318_v38  ;;  %v277_v60 = vld [vmem:[%s3266_s18 + $0x50] sm:$0xff]  ;;  %v268_v61 = vld [vmem:[%s3266_s18 + $0x8] sm:$0xff]  ;;  %v270_v62 = vld [vmem:[%s3266_s18 + $0x18] sm:$0xff] }
  0x55   : > { %414 = vmatpush1.msra.mxu0 %v315_v39  ;;  %863 = vmatpush1.msra.mxu1 %v317_v40  ;;  %v267_v63 = vld [vmem:[%s3266_s18] sm:$0xff]  ;;  %v269_v1 = vld [vmem:[%s3266_s18 + $0x10] sm:$0xff]  ;;  %v392_v3 = vld [vmem:[%s3266_s18 + $0x3e8] sm:$0xff] }
  0x56   : > { %415 = vmatprep.subr.mxu0 %v308_v41  ;;  %864 = vmatprep.subr.mxu1 %v310_v42  ;;  %v203_v2 = vld [vmem:[#allocation2] sm:$0xff]  ;;  %v394_v4 = vld [vmem:[%s3266_s18 + $0x3f8] sm:$0xff]  ;;  %v393_v6 = vld [vmem:[%s3266_s18 + $0x3f0] sm:$0xff] }
  0x57   : > { %416 = vmatpush1.msra.mxu0 %v307_v43  ;;  %865 = vmatpush1.msra.mxu1 %v309_v44  ;;  %v391_v5 = vld [vmem:[%s3266_s18 + $0x3e0] sm:$0xff]  ;;  %v204_v7 = vld [vmem:[#allocation2 + $0x8] sm:$0xff]  ;;  %v386_v9 = vld [vmem:[%s3266_s18 + $0x3b8] sm:$0xff] }
  0x58   : > { %417 = vmatprep.subr.mxu0 %v300_v45  ;;  %866 = vmatprep.subr.mxu1 %v302_v46  ;;  %v384_v8 = vld [vmem:[%s3266_s18 + $0x3a8] sm:$0xff]  ;;  %v383_v10 = vld [vmem:[%s3266_s18 + $0x3a0] sm:$0xff]  ;;  %v385_v11 = vld [vmem:[%s3266_s18 + $0x3b0] sm:$0xff] }
  0x59   : > { %418 = vmatpush1.msra.mxu0 %v299_v47  ;;  %867 = vmatpush1.msra.mxu1 %v301_v48  ;;  %v205_v12 = vld [vmem:[#allocation2 + $0x10] sm:$0xff]  ;;  %v376_v13 = vld [vmem:[%s3266_s18 + $0x368] sm:$0xff]  ;;  %v378_v14 = vld [vmem:[%s3266_s18 + $0x378] sm:$0xff] }
  0x5a   : > { %419 = vmatprep.subr.mxu0 %v292_v49  ;;  %868 = vmatprep.subr.mxu1 %v294_v50  ;;  %v375_v15 = vld [vmem:[%s3266_s18 + $0x360] sm:$0xff]  ;;  %v377_v16 = vld [vmem:[%s3266_s18 + $0x370] sm:$0xff]  ;;  %v206_v17 = vld [vmem:[#allocation2 + $0x18] sm:$0xff] }
  0x5b   : > { %420 = vmatpush1.msra.mxu0 %v291_v51  ;;  %869 = vmatpush1.msra.mxu1 %v293_v52  ;;  %v368_v18 = vld [vmem:[%s3266_s18 + $0x328] sm:$0xff]  ;;  %v370_v19 = vld [vmem:[%s3266_s18 + $0x338] sm:$0xff]  ;;  %v367_v20 = vld [vmem:[%s3266_s18 + $0x320] sm:$0xff] }
  0x5c   : > { %421 = vmatprep.subr.mxu0 %v284_v53  ;;  %870 = vmatprep.subr.mxu1 %v286_v54  ;;  %v369_v21 = vld [vmem:[%s3266_s18 + $0x330] sm:$0xff]  ;;  %v207_v22 = vld [vmem:[#allocation2 + $0x20] sm:$0xff]  ;;  %v360_v23 = vld [vmem:[%s3266_s18 + $0x2e8] sm:$0xff] }
  0x5d   : > { %422 = vmatpush1.msra.mxu0 %v283_v55  ;;  %871 = vmatpush1.msra.mxu1 %v285_v56  ;;  %v362_v24 = vld [vmem:[%s3266_s18 + $0x2f8] sm:$0xff]  ;;  %v359_v25 = vld [vmem:[%s3266_s18 + $0x2e0] sm:$0xff]  ;;  %v361_v26 = vld [vmem:[%s3266_s18 + $0x2f0] sm:$0xff] }
  0x5e   : > { %423 = vmatprep.subr.mxu0 %v276_v57  ;;  %872 = vmatprep.subr.mxu1 %v278_v58  ;;  %v208_v27 = vld [vmem:[#allocation2 + $0x28] sm:$0xff]  ;;  %v354_v29 = vld [vmem:[%s3266_s18 + $0x2b8] sm:$0xff]  ;;  %v351_v30 = vld [vmem:[%s3266_s18 + $0x2a0] sm:$0xff] }
  0x5f   : > { %424 = vmatpush1.msra.mxu0 %v275_v59  ;;  %873 = vmatpush1.msra.mxu1 %v277_v60  ;;  %v352_v28 = vld [vmem:[%s3266_s18 + $0x2a8] sm:$0xff]  ;;  %v353_v31 = vld [vmem:[%s3266_s18 + $0x2b0] sm:$0xff]  ;;  %v346_v34 = vld [vmem:[%s3266_s18 + $0x278] sm:$0xff] }
  0x60   : > { %425 = vmatprep.subr.mxu0 %v268_v61  ;;  %874 = vmatprep.subr.mxu1 %v270_v62  ;;  %v209_v32 = vld [vmem:[#allocation2 + $0x30] sm:$0xff]  ;;  %v344_v33 = vld [vmem:[%s3266_s18 + $0x268] sm:$0xff]  ;;  %v343_v35 = vld [vmem:[%s3266_s18 + $0x260] sm:$0xff] }
  0x61   : > { %426 = vmatpush1.msra.mxu0 %v267_v63  ;;  %875 = vmatpush1.msra.mxu1 %v269_v1  ;;  %v345_v36 = vld [vmem:[%s3266_s18 + $0x270] sm:$0xff]  ;;  %v210_v37 = vld [vmem:[#allocation2 + $0x38] sm:$0xff]  ;;  %v336_v38 = vld [vmem:[%s3266_s18 + $0x228] sm:$0xff] }
  0x62   : > { %460 = vmatmul.mubr.f32.vlgmr.msra.gmra.mxu0 %v203_v2  ;;  %909 = vmatmul.mubr.f32.vlgmr.msra.gmra.mxu1 %v203_v2  ;;  %v338_v39 = vld [vmem:[%s3266_s18 + $0x238] sm:$0xff]  ;;  %v335_v40 = vld [vmem:[%s3266_s18 + $0x220] sm:$0xff]  ;;  %v337_v41 = vld [vmem:[%s3266_s18 + $0x230] sm:$0xff] }
  0x63   : > { %1293 = vmatprep.subr.mxu0 %v392_v3  ;;  %1742 = vmatprep.subr.mxu1 %v394_v4  ;;  %v211_v42 = vld [vmem:[#allocation2 + $0x40] sm:$0xff]  ;;  %v328_v43 = vld [vmem:[%s3266_s18 + $0x1e8] sm:$0xff]  ;;  %v330_v44 = vld [vmem:[%s3266_s18 + $0x1f8] sm:$0xff] }
  0x64   : > { %1294 = vmatpush1.msra.mxu0 %v391_v5  ;;  %1743 = vmatpush1.msra.mxu1 %v393_v6  ;;  %v327_v45 = vld [vmem:[%s3266_s18 + $0x1e0] sm:$0xff]  ;;  %v329_v46 = vld [vmem:[%s3266_s18 + $0x1f0] sm:$0xff]  ;;  %v212_v47 = vld [vmem:[#allocation2 + $0x48] sm:$0xff] }
  0x65   : > { %465 = vmatprep.mubr.f32.mxu0 %v3130_v0  ;;  %914 = vmatprep.mubr.f32.mxu1 %v3130_v0  ;;  %v320_v48 = vld [vmem:[%s3266_s18 + $0x1a8] sm:$0xff]  ;;  %v322_v49 = vld [vmem:[%s3266_s18 + $0x1b8] sm:$0xff]  ;;  %v319_v50 = vld [vmem:[%s3266_s18 + $0x1a0] sm:$0xff] }
  0x66   : > { %466 = vmatmul.mubr.f32.gmra.mxu0 %v204_v7  ;;  %915 = vmatmul.mubr.f32.gmra.mxu1 %v204_v7  ;;  %v321_v51 = vld [vmem:[%s3266_s18 + $0x1b0] sm:$0xff]  ;;  %v312_v53 = vld [vmem:[%s3266_s18 + $0x168] sm:$0xff]  ;;  %v314_v54 = vld [vmem:[%s3266_s18 + $0x178] sm:$0xff] }
  0x67   : > { %471 = vmatprep.mubr.f32.mxu0 %v3130_v0  ;;  %920 = vmatprep.mubr.f32.mxu1 %v3130_v0  ;;  %v213_v52 = vld [vmem:[#allocation2 + $0x50] sm:$0xff]  ;;  %v311_v55 = vld [vmem:[%s3266_s18 + $0x160] sm:$0xff]  ;;  %v214_v57 = vld [vmem:[#allocation2 + $0x58] sm:$0xff] }
  0x68   : > { %1295 = vmatprep.subr.mxu0 %v384_v8  ;;  %1744 = vmatprep.subr.mxu1 %v386_v9  ;;  %v313_v56 = vld [vmem:[%s3266_s18 + $0x170] sm:$0xff]  ;;  %v215_v58 = vld [vmem:[#allocation2 + $0x60] sm:$0xff]  ;;  %v304_v59 = vld [vmem:[%s3266_s18 + $0x128] sm:$0xff] }
  0x69   : > { %1296 = vmatpush1.msra.mxu0 %v383_v10  ;;  %1745 = vmatpush1.msra.mxu1 %v385_v11  ;;  %v306_v60 = vld [vmem:[%s3266_s18 + $0x138] sm:$0xff]  ;;  %v303_v61 = vld [vmem:[%s3266_s18 + $0x120] sm:$0xff]  ;;  %v216_v62 = vld [vmem:[#allocation2 + $0x68] sm:$0xff] }
  0x6a   : > { %472 = vmatmul.mubr.f32.gmra.mxu0 %v205_v12  ;;  %921 = vmatmul.mubr.f32.gmra.mxu1 %v205_v12  ;;  %v305_v63 = vld [vmem:[%s3266_s18 + $0x130] sm:$0xff]  ;;  %v218_v2 = vld [vmem:[#allocation2 + $0x78] sm:$0xff]  ;;  %v219_v3 = vld [vmem:[#allocation2 + $0x80] sm:$0xff] }
  0x6b   : > { %477 = vmatprep.mubr.f32.mxu0 %v3130_v0  ;;  %926 = vmatprep.mubr.f32.mxu1 %v3130_v0  ;;  %v217_v1 = vld [vmem:[#allocation2 + $0x70] sm:$0xff]  ;;  %v220_v4 = vld [vmem:[#allocation2 + $0x88] sm:$0xff]  ;;  %v298_v6 = vld [vmem:[%s3266_s18 + $0xf8] sm:$0xff] }
  0x6c   : > { %1297 = vmatprep.subr.mxu0 %v376_v13  ;;  %1746 = vmatprep.subr.mxu1 %v378_v14  ;;  %v296_v5 = vld [vmem:[%s3266_s18 + $0xe8] sm:$0xff]  ;;  %v295_v7 = vld [vmem:[%s3266_s18 + $0xe0] sm:$0xff]  ;;  %v297_v8 = vld [vmem:[%s3266_s18 + $0xf0] sm:$0xff] }
  0x6d   : > { %1298 = vmatpush1.msra.mxu0 %v375_v15  ;;  %1747 = vmatpush1.msra.mxu1 %v377_v16  ;;  %v221_v9 = vld [vmem:[#allocation2 + $0x90] sm:$0xff]  ;;  %v222_v10 = vld [vmem:[#allocation2 + $0x98] sm:$0xff]  ;;  %v223_v11 = vld [vmem:[#allocation2 + $0xa0] sm:$0xff] }
  0x6e   : > { %478 = vmatmul.mubr.f32.gmra.mxu0 %v206_v17  ;;  %927 = vmatmul.mubr.f32.gmra.mxu1 %v206_v17  ;;  %v224_v12 = vld [vmem:[#allocation2 + $0xa8] sm:$0xff]  ;;  %v290_v14 = vld [vmem:[%s3266_s18 + $0xb8] sm:$0xff]  ;;  %v287_v15 = vld [vmem:[%s3266_s18 + $0xa0] sm:$0xff] }
  0x6f   : > { %483 = vmatprep.mubr.f32.mxu0 %v3130_v0  ;;  %932 = vmatprep.mubr.f32.mxu1 %v3130_v0  ;;  %v288_v13 = vld [vmem:[%s3266_s18 + $0xa8] sm:$0xff]  ;;  %v289_v16 = vld [vmem:[%s3266_s18 + $0xb0] sm:$0xff] }
  0x70   : > { %1299 = vmatprep.subr.mxu0 %v368_v18  ;;  %1748 = vmatprep.subr.mxu1 %v370_v19  ;;  %v225_v17 = vld [vmem:[#allocation2 + $0xb0] sm:$0xff]  ;;  %v226_v18 = vld [vmem:[#allocation2 + $0xb8] sm:$0xff]  ;;  %v227_v19 = vld [vmem:[#allocation2 + $0xc0] sm:$0xff] }
  0x71   : > { %1300 = vmatpush1.msra.mxu0 %v367_v20  ;;  %1749 = vmatpush1.msra.mxu1 %v369_v21  ;;  %v228_v20 = vld [vmem:[#allocation2 + $0xc8] sm:$0xff] }
  0x72   : > { %484 = vmatmul.mubr.f32.gmra.mxu0 %v207_v22  ;;  %933 = vmatmul.mubr.f32.gmra.mxu1 %v207_v22  ;;  %v280_v21 = vld [vmem:[%s3266_s18 + $0x68] sm:$0xff]  ;;  %v282_v22 = vld [vmem:[%s3266_s18 + $0x78] sm:$0xff] }
  0x73   : > { %489 = vmatprep.mubr.f32.mxu0 %v3130_v0  ;;  %938 = vmatprep.mubr.f32.mxu1 %v3130_v0 }
  0x74   : > { %1301 = vmatprep.subr.mxu0 %v360_v23  ;;  %1750 = vmatprep.subr.mxu1 %v362_v24  ;;  %v279_v23 = vld [vmem:[%s3266_s18 + $0x60] sm:$0xff]  ;;  %v281_v24 = vld [vmem:[%s3266_s18 + $0x70] sm:$0xff] }
  0x75   : > { %1302 = vmatpush1.msra.mxu0 %v359_v25  ;;  %1751 = vmatpush1.msra.mxu1 %v361_v26  ;;  %v229_v25 = vld [vmem:[#allocation2 + $0xd0] sm:$0xff]  ;;  %v230_v26 = vld [vmem:[#allocation2 + $0xd8] sm:$0xff] }
  0x76   : > { %490 = vmatmul.mubr.f32.gmra.mxu0 %v208_v27  ;;  %939 = vmatmul.mubr.f32.gmra.mxu1 %v208_v27  ;;  %v231_v27 = vld [vmem:[#allocation2 + $0xe0] sm:$0xff] }
  0x77   : > { %495 = vmatprep.mubr.f32.mxu0 %v3130_v0  ;;  %944 = vmatprep.mubr.f32.mxu1 %v3130_v0 }
  0x78   : > { %1303 = vmatprep.subr.mxu0 %v352_v28  ;;  %1752 = vmatprep.subr.mxu1 %v354_v29  ;;  %v232_v28 = vld [vmem:[#allocation2 + $0xe8] sm:$0xff] }
  0x79   : > { %1304 = vmatpush1.msra.mxu0 %v351_v30  ;;  %1753 = vmatpush1.msra.mxu1 %v353_v31  ;;  %v272_v29 = vld [vmem:[%s3266_s18 + $0x28] sm:$0xff]  ;;  %v274_v30 = vld [vmem:[%s3266_s18 + $0x38] sm:$0xff]  ;;  %v271_v31 = vld [vmem:[%s3266_s18 + $0x20] sm:$0xff] }
  0x7a   : > { %496 = vmatmul.mubr.f32.gmra.mxu0 %v209_v32  ;;  %945 = vmatmul.mubr.f32.gmra.mxu1 %v209_v32  ;;  %v273_v32 = vld [vmem:[%s3266_s18 + $0x30] sm:$0xff] }
  0x7b   : > { %501 = vmatprep.mubr.f32.mxu0 %v3130_v0  ;;  %950 = vmatprep.mubr.f32.mxu1 %v3130_v0 }
  0x7c   : > { %1305 = vmatprep.subr.mxu0 %v344_v33  ;;  %1754 = vmatprep.subr.mxu1 %v346_v34  ;;  %v233_v33 = vld [vmem:[#allocation2 + $0xf0] sm:$0xff]  ;;  %v234_v34 = vld [vmem:[#allocation2 + $0xf8] sm:$0xff] }
  0x7d   : > { %1306 = vmatpush1.msra.mxu0 %v343_v35  ;;  %1755 = vmatpush1.msra.mxu1 %v345_v36  ;;  %v235_v35 = vld [vmem:[#allocation2 + $0x100] sm:$0xff]  ;;  %v236_v36 = vld [vmem:[#allocation2 + $0x108] sm:$0xff] }
  0x7e   : > { %502 = vmatmul.mubr.f32.gmra.mxu0 %v210_v37  ;;  %951 = vmatmul.mubr.f32.gmra.mxu1 %v210_v37  ;;  %v237_v37 = vld [vmem:[#allocation2 + $0x110] sm:$0xff] }
  0x7f   : > { %507 = vmatprep.mubr.f32.mxu0 %v3130_v0  ;;  %956 = vmatprep.mubr.f32.mxu1 %v3130_v0 }
  0x80   : > { %1307 = vmatprep.subr.mxu0 %v336_v38  ;;  %1756 = vmatprep.subr.mxu1 %v338_v39  ;;  %v238_v38 = vld [vmem:[#allocation2 + $0x118] sm:$0xff]  ;;  %v239_v39 = vld [vmem:[#allocation2 + $0x120] sm:$0xff] }
  0x81   : > { %1308 = vmatpush1.msra.mxu0 %v335_v40  ;;  %1757 = vmatpush1.msra.mxu1 %v337_v41  ;;  %v240_v40 = vld [vmem:[#allocation2 + $0x128] sm:$0xff]  ;;  %v241_v41 = vld [vmem:[#allocation2 + $0x130] sm:$0xff] }
  0x82   : > { %508 = vmatmul.mubr.f32.gmra.mxu0 %v211_v42  ;;  %957 = vmatmul.mubr.f32.gmra.mxu1 %v211_v42  ;;  %v242_v42 = vld [vmem:[#allocation2 + $0x138] sm:$0xff] }
  0x83   : > { %513 = vmatprep.mubr.f32.mxu0 %v3130_v0  ;;  %962 = vmatprep.mubr.f32.mxu1 %v3130_v0 }
  0x84   : > { %1309 = vmatprep.subr.mxu0 %v328_v43  ;;  %1758 = vmatprep.subr.mxu1 %v330_v44  ;;  %v243_v43 = vld [vmem:[#allocation2 + $0x140] sm:$0xff]  ;;  %v244_v44 = vld [vmem:[#allocation2 + $0x148] sm:$0xff] }
  0x85   : > { %1310 = vmatpush1.msra.mxu0 %v327_v45  ;;  %1759 = vmatpush1.msra.mxu1 %v329_v46  ;;  %v245_v45 = vld [vmem:[#allocation2 + $0x150] sm:$0xff]  ;;  %v246_v46 = vld [vmem:[#allocation2 + $0x158] sm:$0xff] }
  0x86   : > { %514 = vmatmul.mubr.f32.gmra.mxu0 %v212_v47  ;;  %963 = vmatmul.mubr.f32.gmra.mxu1 %v212_v47  ;;  %v247_v47 = vld [vmem:[#allocation2 + $0x160] sm:$0xff] }
  0x87   : > { %519 = vmatprep.mubr.f32.mxu0 %v3130_v0  ;;  %968 = vmatprep.mubr.f32.mxu1 %v3130_v0 }
  0x88   : > { %1311 = vmatprep.subr.mxu0 %v320_v48  ;;  %1760 = vmatprep.subr.mxu1 %v322_v49  ;;  %v248_v48 = vld [vmem:[#allocation2 + $0x168] sm:$0xff]  ;;  %v249_v49 = vld [vmem:[#allocation2 + $0x170] sm:$0xff] }
  0x89   : > { %1312 = vmatpush1.msra.mxu0 %v319_v50  ;;  %1761 = vmatpush1.msra.mxu1 %v321_v51  ;;  %v250_v50 = vld [vmem:[#allocation2 + $0x178] sm:$0xff]  ;;  %v251_v51 = vld [vmem:[#allocation2 + $0x180] sm:$0xff] }
  0x8a   : > { %520 = vmatmul.mubr.f32.gmra.mxu0 %v213_v52  ;;  %969 = vmatmul.mubr.f32.gmra.mxu1 %v213_v52 }
  0x8b   : > { %525 = vmatprep.mubr.f32.mxu0 %v3130_v0  ;;  %974 = vmatprep.mubr.f32.mxu1 %v3130_v0 }
  0x8c   : > { %1313 = vmatprep.subr.mxu0 %v312_v53  ;;  %1762 = vmatprep.subr.mxu1 %v314_v54  ;;  %v252_v54 = vld [vmem:[#allocation2 + $0x188] sm:$0xff] }
  0x8d   : > { %1314 = vmatpush1.msra.mxu0 %v311_v55  ;;  %1763 = vmatpush1.msra.mxu1 %v313_v56 }
  0x8e   : > { %526 = vmatmul.mubr.f32.gmra.mxu0 %v214_v57  ;;  %975 = vmatmul.mubr.f32.gmra.mxu1 %v214_v57 }
  0x8f   : > { %531 = vmatprep.mubr.f32.mxu0 %v3130_v0  ;;  %980 = vmatprep.mubr.f32.mxu1 %v3130_v0 }
  0x90   : > { %1315 = vmatprep.subr.mxu0 %v304_v59  ;;  %1764 = vmatprep.subr.mxu1 %v306_v60  ;;  %v253_v59 = vld [vmem:[#allocation2 + $0x190] sm:$0xff] }
  0x91   : > { %1316 = vmatpush1.msra.mxu0 %v303_v61  ;;  %1765 = vmatpush1.msra.mxu1 %v305_v63 }
  0x92   : > { %532 = vmatmul.mubr.f32.gmra.mxu0 %v215_v58  ;;  %981 = vmatmul.mubr.f32.gmra.mxu1 %v215_v58 }
  0x93   : > { %537 = vmatprep.mubr.f32.mxu0 %v3130_v0  ;;  %986 = vmatprep.mubr.f32.mxu1 %v3130_v0 }
  0x94   : > { %1317 = vmatprep.subr.mxu0 %v296_v5  ;;  %1766 = vmatprep.subr.mxu1 %v298_v6  ;;  %v255_v6 = vld [vmem:[#allocation2 + $0x1a0] sm:$0xff] }
  0x95   : > { %1318 = vmatpush1.msra.mxu0 %v295_v7  ;;  %1767 = vmatpush1.msra.mxu1 %v297_v8 }
  0x96   : > { %538 = vmatmul.mubr.f32.gmra.mxu0 %v216_v62  ;;  %987 = vmatmul.mubr.f32.gmra.mxu1 %v216_v62 }
  0x97   : > { %543 = vmatprep.mubr.f32.mxu0 %v3130_v0  ;;  %992 = vmatprep.mubr.f32.mxu1 %v3130_v0 }
  0x98   : > { %1319 = vmatprep.subr.mxu0 %v288_v13  ;;  %1768 = vmatprep.subr.mxu1 %v290_v14 }
  0x99   : > { %1320 = vmatpush1.msra.mxu0 %v287_v15  ;;  %1769 = vmatpush1.msra.mxu1 %v289_v16  ;;  %v257_v16 = vld [vmem:[#allocation2 + $0x1b0] sm:$0xff] }
  0x9a   : > { %544 = vmatmul.mubr.f32.gmra.mxu0 %v217_v1  ;;  %993 = vmatmul.mubr.f32.gmra.mxu1 %v217_v1  ;;  %v254_v1 = vld [vmem:[#allocation2 + $0x198] sm:$0xff] }
  0x9b   : > { %549 = vmatprep.mubr.f32.mxu0 %v3130_v0  ;;  %998 = vmatprep.mubr.f32.mxu1 %v3130_v0 }
  0x9c   : > { %1321 = vmatprep.subr.mxu0 %v280_v21  ;;  %1770 = vmatprep.subr.mxu1 %v282_v22  ;;  %v258_v21 = vld [vmem:[#allocation2 + $0x1b8] sm:$0xff] }
  0x9d   : > { %1322 = vmatpush1.msra.mxu0 %v279_v23  ;;  %1771 = vmatpush1.msra.mxu1 %v281_v24 }
  0x9e   : > { %550 = vmatmul.mubr.f32.gmra.mxu0 %v218_v2  ;;  %999 = vmatmul.mubr.f32.gmra.mxu1 %v218_v2 }
  0x9f   : > { %555 = vmatprep.mubr.f32.mxu0 %v3130_v0  ;;  %1004 = vmatprep.mubr.f32.mxu1 %v3130_v0 }
  0xa0   : > { %1323 = vmatprep.subr.mxu0 %v272_v29  ;;  %1772 = vmatprep.subr.mxu1 %v274_v30 }
  0xa1   : > { %1324 = vmatpush1.msra.mxu0 %v271_v31  ;;  %1773 = vmatpush1.msra.mxu1 %v273_v32  ;;  %v260_v31 = vld [vmem:[#allocation2 + $0x1c8] sm:$0xff] }
  0xa2   : > { %556 = vmatmul.mubr.f32.gmra.mxu0 %v219_v3  ;;  %1005 = vmatmul.mubr.f32.gmra.mxu1 %v219_v3 }
  0xa3   : > { %561 = vmatprep.mubr.f32.mxu0 %v3130_v0  ;;  %1010 = vmatprep.mubr.f32.mxu1 %v3130_v0 }
  0xa6   : > { %562 = vmatmul.mubr.f32.gmra.mxu0 %v220_v4  ;;  %1011 = vmatmul.mubr.f32.gmra.mxu1 %v220_v4 }
  0xa7   : > { %567 = vmatprep.mubr.f32.mxu0 %v3130_v0  ;;  %1016 = vmatprep.mubr.f32.mxu1 %v3130_v0 }
  0xaa   : > { %568 = vmatmul.mubr.f32.gmra.mxu0 %v221_v9  ;;  %1017 = vmatmul.mubr.f32.gmra.mxu1 %v221_v9 }
  0xab   : > { %573 = vmatprep.mubr.f32.mxu0 %v3130_v0  ;;  %1022 = vmatprep.mubr.f32.mxu1 %v3130_v0 }
  0xae   : > { %574 = vmatmul.mubr.f32.gmra.mxu0 %v222_v10  ;;  %1023 = vmatmul.mubr.f32.gmra.mxu1 %v222_v10 }
  0xaf   : > { %579 = vmatprep.mubr.f32.mxu0 %v3130_v0  ;;  %1028 = vmatprep.mubr.f32.mxu1 %v3130_v0 }
  0xb2   : > { %580 = vmatmul.mubr.f32.gmra.mxu0 %v223_v11  ;;  %1029 = vmatmul.mubr.f32.gmra.mxu1 %v223_v11  ;;  %v256_v11 = vld [vmem:[#allocation2 + $0x1a8] sm:$0xff] }
  0xb3   : > { %585 = vmatprep.mubr.f32.mxu0 %v3130_v0  ;;  %1034 = vmatprep.mubr.f32.mxu1 %v3130_v0 }
  0xb6   : > { %586 = vmatmul.mubr.f32.gmra.mxu0 %v224_v12  ;;  %1035 = vmatmul.mubr.f32.gmra.mxu1 %v224_v12 }
  0xb7   : > { %591 = vmatprep.mubr.f32.mxu0 %v3130_v0  ;;  %1040 = vmatprep.mubr.f32.mxu1 %v3130_v0 }
  0xba   : > { %592 = vmatmul.mubr.f32.gmra.mxu0 %v225_v17  ;;  %1041 = vmatmul.mubr.f32.gmra.mxu1 %v225_v17 }
  0xbb   : > { %597 = vmatprep.mubr.f32.mxu0 %v3130_v0  ;;  %1046 = vmatprep.mubr.f32.mxu1 %v3130_v0 }
  0xbe   : > { %598 = vmatmul.mubr.f32.gmra.mxu0 %v226_v18  ;;  %1047 = vmatmul.mubr.f32.gmra.mxu1 %v226_v18 }
  0xbf   : > { %603 = vmatprep.mubr.f32.mxu0 %v3130_v0  ;;  %1052 = vmatprep.mubr.f32.mxu1 %v3130_v0 }
  0xc2   : > { %604 = vmatmul.mubr.f32.gmra.mxu0 %v227_v19  ;;  %1053 = vmatmul.mubr.f32.gmra.mxu1 %v227_v19 }
  0xc3   : > { %609 = vmatprep.mubr.f32.mxu0 %v3130_v0  ;;  %1058 = vmatprep.mubr.f32.mxu1 %v3130_v0 }
  0xc6   : > { %610 = vmatmul.mubr.f32.gmra.mxu0 %v228_v20  ;;  %1059 = vmatmul.mubr.f32.gmra.mxu1 %v228_v20 }
  0xc7   : > { %615 = vmatprep.mubr.f32.mxu0 %v3130_v0  ;;  %1064 = vmatprep.mubr.f32.mxu1 %v3130_v0 }
  0xca   : > { %616 = vmatmul.mubr.f32.gmra.mxu0 %v229_v25  ;;  %1065 = vmatmul.mubr.f32.gmra.mxu1 %v229_v25 }
  0xcb   : > { %621 = vmatprep.mubr.f32.mxu0 %v3130_v0  ;;  %1070 = vmatprep.mubr.f32.mxu1 %v3130_v0 }
  0xce   : > { %622 = vmatmul.mubr.f32.gmra.mxu0 %v230_v26  ;;  %1071 = vmatmul.mubr.f32.gmra.mxu1 %v230_v26  ;;  %v259_v26 = vld [vmem:[#allocation2 + $0x1c0] sm:$0xff] }
  0xcf   : > { %627 = vmatprep.mubr.f32.mxu0 %v3130_v0  ;;  %1076 = vmatprep.mubr.f32.mxu1 %v3130_v0 }
  0xd2   : > { %628 = vmatmul.mubr.f32.gmra.mxu0 %v231_v27  ;;  %1077 = vmatmul.mubr.f32.gmra.mxu1 %v231_v27 }
  0xd3   : > { %633 = vmatprep.mubr.f32.mxu0 %v3130_v0  ;;  %1082 = vmatprep.mubr.f32.mxu1 %v3130_v0 }
  0xd6   : > { %634 = vmatmul.mubr.f32.gmra.mxu0 %v232_v28  ;;  %1083 = vmatmul.mubr.f32.gmra.mxu1 %v232_v28 }
  0xd7   : > { %639 = vmatprep.mubr.f32.mxu0 %v3130_v0  ;;  %1088 = vmatprep.mubr.f32.mxu1 %v3130_v0 }
  0xda   : > { %640 = vmatmul.mubr.f32.gmra.mxu0 %v233_v33  ;;  %1089 = vmatmul.mubr.f32.gmra.mxu1 %v233_v33 }
  0xdb   : > { %645 = vmatprep.mubr.f32.mxu0 %v3130_v0  ;;  %1094 = vmatprep.mubr.f32.mxu1 %v3130_v0 }
  0xde   : > { %646 = vmatmul.mubr.f32.gmra.mxu0 %v234_v34  ;;  %1095 = vmatmul.mubr.f32.gmra.mxu1 %v234_v34 }
  0xdf   : > { %651 = vmatprep.mubr.f32.mxu0 %v3130_v0  ;;  %1100 = vmatprep.mubr.f32.mxu1 %v3130_v0 }
  0xe2   : > { %652 = vmatmul.mubr.f32.gmra.mxu0 %v235_v35  ;;  %1101 = vmatmul.mubr.f32.gmra.mxu1 %v235_v35 }
  0xe3   : > { %657 = vmatprep.mubr.f32.mxu0 %v3130_v0  ;;  %1106 = vmatprep.mubr.f32.mxu1 %v3130_v0 }
  0xe6   : > { %658 = vmatmul.mubr.f32.gmra.mxu0 %v236_v36  ;;  %1107 = vmatmul.mubr.f32.gmra.mxu1 %v236_v36  ;;  %v261_v36 = vld [vmem:[#allocation2 + $0x1d0] sm:$0xff] }
  0xe7   : > { %663 = vmatprep.mubr.f32.mxu0 %v3130_v0  ;;  %1112 = vmatprep.mubr.f32.mxu1 %v3130_v0 }
  0xea   : > { %664 = vmatmul.mubr.f32.gmra.mxu0 %v237_v37  ;;  %1113 = vmatmul.mubr.f32.gmra.mxu1 %v237_v37 }
  0xeb   : > { %669 = vmatprep.mubr.f32.mxu0 %v3130_v0  ;;  %1118 = vmatprep.mubr.f32.mxu1 %v3130_v0 }
  0xee   : > { %670 = vmatmul.mubr.f32.gmra.mxu0 %v238_v38  ;;  %1119 = vmatmul.mubr.f32.gmra.mxu1 %v238_v38 }
  0xef   : > { %675 = vmatprep.mubr.f32.mxu0 %v3130_v0  ;;  %1124 = vmatprep.mubr.f32.mxu1 %v3130_v0 }
  0xf2   : > { %676 = vmatmul.mubr.f32.gmra.mxu0 %v239_v39  ;;  %1125 = vmatmul.mubr.f32.gmra.mxu1 %v239_v39 }
  0xf3   : > { %681 = vmatprep.mubr.f32.mxu0 %v3130_v0  ;;  %1130 = vmatprep.mubr.f32.mxu1 %v3130_v0 }
  0xf6   : > { %682 = vmatmul.mubr.f32.gmra.mxu0 %v240_v40  ;;  %1131 = vmatmul.mubr.f32.gmra.mxu1 %v240_v40 }
  0xf7   : > { %687 = vmatprep.mubr.f32.mxu0 %v3130_v0  ;;  %1136 = vmatprep.mubr.f32.mxu1 %v3130_v0 }
  0xfa   : > { %688 = vmatmul.mubr.f32.gmra.mxu0 %v241_v41  ;;  %1137 = vmatmul.mubr.f32.gmra.mxu1 %v241_v41  ;;  %v262_v41 = vld [vmem:[#allocation2 + $0x1d8] sm:$0xff] }
  0xfb   : > { %693 = vmatprep.mubr.f32.mxu0 %v3130_v0  ;;  %1142 = vmatprep.mubr.f32.mxu1 %v3130_v0 }
  0xfe   : > { %694 = vmatmul.mubr.f32.gmra.mxu0 %v242_v42  ;;  %1143 = vmatmul.mubr.f32.gmra.mxu1 %v242_v42 }
  0xff   : > { %699 = vmatprep.mubr.f32.mxu0 %v3130_v0  ;;  %1148 = vmatprep.mubr.f32.mxu1 %v3130_v0 }
 0x102   : > { %700 = vmatmul.mubr.f32.gmra.mxu0 %v243_v43  ;;  %1149 = vmatmul.mubr.f32.gmra.mxu1 %v243_v43 }
 0x103   : > { %705 = vmatprep.mubr.f32.mxu0 %v3130_v0  ;;  %1154 = vmatprep.mubr.f32.mxu1 %v3130_v0 }
 0x106   : > { %706 = vmatmul.mubr.f32.gmra.mxu0 %v244_v44  ;;  %1155 = vmatmul.mubr.f32.gmra.mxu1 %v244_v44 }
 0x107   : > { %711 = vmatprep.mubr.f32.mxu0 %v3130_v0  ;;  %1160 = vmatprep.mubr.f32.mxu1 %v3130_v0 }
 0x10a   : > { %712 = vmatmul.mubr.f32.gmra.mxu0 %v245_v45  ;;  %1161 = vmatmul.mubr.f32.gmra.mxu1 %v245_v45 }
 0x10b   : > { %717 = vmatprep.mubr.f32.mxu0 %v3130_v0  ;;  %1166 = vmatprep.mubr.f32.mxu1 %v3130_v0 }
 0x10e   : > { %718 = vmatmul.mubr.f32.gmra.mxu0 %v246_v46  ;;  %1167 = vmatmul.mubr.f32.gmra.mxu1 %v246_v46  ;;  %v263_v46 = vld [vmem:[#allocation2 + $0x1e0] sm:$0xff] }
 0x10f   : > { %723 = vmatprep.mubr.f32.mxu0 %v3130_v0  ;;  %1172 = vmatprep.mubr.f32.mxu1 %v3130_v0 }
 0x112   : > { %724 = vmatmul.mubr.f32.gmra.mxu0 %v247_v47  ;;  %1173 = vmatmul.mubr.f32.gmra.mxu1 %v247_v47 }
 0x113   : > { %729 = vmatprep.mubr.f32.mxu0 %v3130_v0  ;;  %1178 = vmatprep.mubr.f32.mxu1 %v3130_v0 }
 0x116   : > { %730 = vmatmul.mubr.f32.gmra.mxu0 %v248_v48  ;;  %1179 = vmatmul.mubr.f32.gmra.mxu1 %v248_v48 }
 0x117   : > { %735 = vmatprep.mubr.f32.mxu0 %v3130_v0  ;;  %1184 = vmatprep.mubr.f32.mxu1 %v3130_v0 }
 0x11a   : > { %736 = vmatmul.mubr.f32.gmra.mxu0 %v249_v49  ;;  %1185 = vmatmul.mubr.f32.gmra.mxu1 %v249_v49 }
 0x11b   : > { %741 = vmatprep.mubr.f32.mxu0 %v3130_v0  ;;  %1190 = vmatprep.mubr.f32.mxu1 %v3130_v0 }
 0x11e   : > { %742 = vmatmul.mubr.f32.gmra.mxu0 %v250_v50  ;;  %1191 = vmatmul.mubr.f32.gmra.mxu1 %v250_v50 }
 0x11f   : > { %747 = vmatprep.mubr.f32.mxu0 %v3130_v0  ;;  %1196 = vmatprep.mubr.f32.mxu1 %v3130_v0 }
 0x122   : > { %v461_v52 = vpop.f32.mrf.mxu0  ;;  %748 = vmatmul.mubr.f32.gmra.mxu0 %v251_v51  ;;  %v910_v53 = vpop.f32.mrf.mxu1  ;;  %1197 = vmatmul.mubr.f32.gmra.mxu1 %v251_v51  ;;  %v264_v51 = vld [vmem:[#allocation2 + $0x1e8] sm:$0xff] }
 0x123   : > { %2191 = vst [vmem:[%s3499_s19] sm:$0xff] %v461_v52  ;;  %2193 = vst [vmem:[%s3499_s19 + $0x10] sm:$0xff] %v910_v53  ;;  %753 = vmatprep.mubr.f32.mxu0 %v3130_v0  ;;  %1202 = vmatprep.mubr.f32.mxu1 %v3130_v0 }
 0x124   : > { %v463_v55 = vpop.f32.mrf.mxu0  ;;  %v912_v56 = vpop.f32.mrf.mxu1 }
 0x125   : > { %2192 = vst [vmem:[%s3499_s19 + $0x8] sm:$0xff] %v463_v55  ;;  %2194 = vst [vmem:[%s3499_s19 + $0x18] sm:$0xff] %v912_v56  ;;  %v265_v56 = vld [vmem:[#allocation2 + $0x1f0] sm:$0xff] }
 0x126   : > { %v467_v57 = vpop.f32.mrf.mxu0  ;;  %754 = vmatmul.mubr.f32.gmra.mxu0 %v252_v54  ;;  %v916_v58 = vpop.f32.mrf.mxu1  ;;  %1203 = vmatmul.mubr.f32.gmra.mxu1 %v252_v54 }
 0x127   : > { %2199 = vst [vmem:[%s3499_s19 + $0x40] sm:$0xff] %v467_v57  ;;  %2201 = vst [vmem:[%s3499_s19 + $0x50] sm:$0xff] %v916_v58  ;;  %759 = vmatprep.mubr.f32.mxu0 %v3130_v0  ;;  %1208 = vmatprep.mubr.f32.mxu1 %v3130_v0 }
 0x128   : > { %v469_v60 = vpop.f32.mrf.mxu0  ;;  %v918_v61 = vpop.f32.mrf.mxu1 }
 0x129   : > { %2200 = vst [vmem:[%s3499_s19 + $0x48] sm:$0xff] %v469_v60  ;;  %2202 = vst [vmem:[%s3499_s19 + $0x58] sm:$0xff] %v918_v61  ;;  %v266_v61 = vld [vmem:[#allocation2 + $0x1f8] sm:$0xff] }
 0x12a   : > { %v473_v62 = vpop.f32.mrf.mxu0  ;;  %760 = vmatmul.mubr.f32.gmra.mxu0 %v253_v59  ;;  %v922_v63 = vpop.f32.mrf.mxu1  ;;  %1209 = vmatmul.mubr.f32.gmra.mxu1 %v253_v59 }
 0x12b   : > { %2207 = vst [vmem:[%s3499_s19 + $0x80] sm:$0xff] %v473_v62  ;;  %2209 = vst [vmem:[%s3499_s19 + $0x90] sm:$0xff] %v922_v63  ;;  %765 = vmatprep.mubr.f32.mxu0 %v3130_v0  ;;  %1214 = vmatprep.mubr.f32.mxu1 %v3130_v0 }
 0x12c   : > { %v475_v2 = vpop.f32.mrf.mxu0  ;;  %v924_v3 = vpop.f32.mrf.mxu1 }
 0x12d   : > { %2208 = vst [vmem:[%s3499_s19 + $0x88] sm:$0xff] %v475_v2  ;;  %2210 = vst [vmem:[%s3499_s19 + $0x98] sm:$0xff] %v924_v3 }
 0x12e   : > { %v479_v4 = vpop.f32.mrf.mxu0  ;;  %766 = vmatmul.mubr.f32.gmra.mxu0 %v254_v1  ;;  %v928_v5 = vpop.f32.mrf.mxu1  ;;  %1215 = vmatmul.mubr.f32.gmra.mxu1 %v254_v1 }
 0x12f   : > { %2215 = vst [vmem:[%s3499_s19 + $0xc0] sm:$0xff] %v479_v4  ;;  %2217 = vst [vmem:[%s3499_s19 + $0xd0] sm:$0xff] %v928_v5  ;;  %771 = vmatprep.mubr.f32.mxu0 %v3130_v0  ;;  %1220 = vmatprep.mubr.f32.mxu1 %v3130_v0 }
 0x130   : > { %v481_v7 = vpop.f32.mrf.mxu0  ;;  %v930_v8 = vpop.f32.mrf.mxu1 }
 0x131   : > { %2216 = vst [vmem:[%s3499_s19 + $0xc8] sm:$0xff] %v481_v7  ;;  %2218 = vst [vmem:[%s3499_s19 + $0xd8] sm:$0xff] %v930_v8  ;;  %v2919_v7 = vld [vmem:[#allocation2] sm:$0xff] }
 0x132   : > { %v485_v9 = vpop.f32.mrf.mxu0  ;;  %772 = vmatmul.mubr.f32.gmra.mxu0 %v255_v6  ;;  %v934_v10 = vpop.f32.mrf.mxu1  ;;  %1221 = vmatmul.mubr.f32.gmra.mxu1 %v255_v6 }
 0x133   : > { %2223 = vst [vmem:[%s3499_s19 + $0x100] sm:$0xff] %v485_v9  ;;  %2225 = vst [vmem:[%s3499_s19 + $0x110] sm:$0xff] %v934_v10  ;;  %777 = vmatprep.mubr.f32.mxu0 %v3130_v0  ;;  %1226 = vmatprep.mubr.f32.mxu1 %v3130_v0 }
 0x134   : > { %v487_v12 = vpop.f32.mrf.mxu0  ;;  %v936_v13 = vpop.f32.mrf.mxu1 }
 0x135   : > { %2224 = vst [vmem:[%s3499_s19 + $0x108] sm:$0xff] %v487_v12  ;;  %2226 = vst [vmem:[%s3499_s19 + $0x118] sm:$0xff] %v936_v13  ;;  %v2920_v12 = vld [vmem:[#allocation2 + $0x8] sm:$0xff] }
 0x136   : > { %v491_v14 = vpop.f32.mrf.mxu0  ;;  %778 = vmatmul.mubr.f32.gmra.mxu0 %v256_v11  ;;  %v940_v15 = vpop.f32.mrf.mxu1  ;;  %1227 = vmatmul.mubr.f32.gmra.mxu1 %v256_v11 }
 0x137   : > { %2231 = vst [vmem:[%s3499_s19 + $0x140] sm:$0xff] %v491_v14  ;;  %2233 = vst [vmem:[%s3499_s19 + $0x150] sm:$0xff] %v940_v15  ;;  %783 = vmatprep.mubr.f32.mxu0 %v3130_v0  ;;  %1232 = vmatprep.mubr.f32.mxu1 %v3130_v0 }
 0x138   : > { %v493_v17 = vpop.f32.mrf.mxu0  ;;  %v942_v18 = vpop.f32.mrf.mxu1 }
 0x139   : > { %2232 = vst [vmem:[%s3499_s19 + $0x148] sm:$0xff] %v493_v17  ;;  %2234 = vst [vmem:[%s3499_s19 + $0x158] sm:$0xff] %v942_v18  ;;  %v2921_v17 = vld [vmem:[#allocation2 + $0x10] sm:$0xff] }
 0x13a   : > { %v497_v19 = vpop.f32.mrf.mxu0  ;;  %784 = vmatmul.mubr.f32.gmra.mxu0 %v257_v16  ;;  %v946_v20 = vpop.f32.mrf.mxu1  ;;  %1233 = vmatmul.mubr.f32.gmra.mxu1 %v257_v16 }
 0x13b   : > { %2239 = vst [vmem:[%s3499_s19 + $0x180] sm:$0xff] %v497_v19  ;;  %2241 = vst [vmem:[%s3499_s19 + $0x190] sm:$0xff] %v946_v20  ;;  %789 = vmatprep.mubr.f32.mxu0 %v3130_v0  ;;  %1238 = vmatprep.mubr.f32.mxu1 %v3130_v0 }
 0x13c   : > { %v499_v22 = vpop.f32.mrf.mxu0  ;;  %v948_v23 = vpop.f32.mrf.mxu1 }
 0x13d   : > { %2240 = vst [vmem:[%s3499_s19 + $0x188] sm:$0xff] %v499_v22  ;;  %2242 = vst [vmem:[%s3499_s19 + $0x198] sm:$0xff] %v948_v23  ;;  %v2922_v22 = vld [vmem:[#allocation2 + $0x18] sm:$0xff] }
 0x13e   : > { %v503_v24 = vpop.f32.mrf.mxu0  ;;  %790 = vmatmul.mubr.f32.gmra.mxu0 %v258_v21  ;;  %v952_v25 = vpop.f32.mrf.mxu1  ;;  %1239 = vmatmul.mubr.f32.gmra.mxu1 %v258_v21 }
 0x13f   : > { %2247 = vst [vmem:[%s3499_s19 + $0x1c0] sm:$0xff] %v503_v24  ;;  %2249 = vst [vmem:[%s3499_s19 + $0x1d0] sm:$0xff] %v952_v25  ;;  %795 = vmatprep.mubr.f32.mxu0 %v3130_v0  ;;  %1244 = vmatprep.mubr.f32.mxu1 %v3130_v0 }
 0x140   : > { %v505_v27 = vpop.f32.mrf.mxu0  ;;  %v954_v28 = vpop.f32.mrf.mxu1 }
 0x141   : > { %2248 = vst [vmem:[%s3499_s19 + $0x1c8] sm:$0xff] %v505_v27  ;;  %2250 = vst [vmem:[%s3499_s19 + $0x1d8] sm:$0xff] %v954_v28  ;;  %v2923_v27 = vld [vmem:[#allocation2 + $0x20] sm:$0xff] }
 0x142   : > { %v509_v29 = vpop.f32.mrf.mxu0  ;;  %796 = vmatmul.mubr.f32.gmra.mxu0 %v259_v26  ;;  %v958_v30 = vpop.f32.mrf.mxu1  ;;  %1245 = vmatmul.mubr.f32.gmra.mxu1 %v259_v26 }
 0x143   : > { %2255 = vst [vmem:[%s3499_s19 + $0x200] sm:$0xff] %v509_v29  ;;  %2257 = vst [vmem:[%s3499_s19 + $0x210] sm:$0xff] %v958_v30  ;;  %801 = vmatprep.mubr.f32.mxu0 %v3130_v0  ;;  %1250 = vmatprep.mubr.f32.mxu1 %v3130_v0 }
 0x144   : > { %v511_v32 = vpop.f32.mrf.mxu0  ;;  %v960_v33 = vpop.f32.mrf.mxu1 }
 0x145   : > { %2256 = vst [vmem:[%s3499_s19 + $0x208] sm:$0xff] %v511_v32  ;;  %2258 = vst [vmem:[%s3499_s19 + $0x218] sm:$0xff] %v960_v33  ;;  %v2924_v32 = vld [vmem:[#allocation2 + $0x28] sm:$0xff] }
 0x146   : > { %v515_v34 = vpop.f32.mrf.mxu0  ;;  %802 = vmatmul.mubr.f32.gmra.mxu0 %v260_v31  ;;  %v964_v35 = vpop.f32.mrf.mxu1  ;;  %1251 = vmatmul.mubr.f32.gmra.mxu1 %v260_v31 }
 0x147   : > { %2263 = vst [vmem:[%s3499_s19 + $0x240] sm:$0xff] %v515_v34  ;;  %2265 = vst [vmem:[%s3499_s19 + $0x250] sm:$0xff] %v964_v35  ;;  %807 = vmatprep.mubr.f32.mxu0 %v3130_v0  ;;  %1256 = vmatprep.mubr.f32.mxu1 %v3130_v0 }
 0x148   : > { %v517_v37 = vpop.f32.mrf.mxu0  ;;  %v966_v38 = vpop.f32.mrf.mxu1 }
 0x149   : > { %2264 = vst [vmem:[%s3499_s19 + $0x248] sm:$0xff] %v517_v37  ;;  %2266 = vst [vmem:[%s3499_s19 + $0x258] sm:$0xff] %v966_v38  ;;  %v2925_v37 = vld [vmem:[#allocation2 + $0x30] sm:$0xff] }
 0x14a   : > { %v521_v39 = vpop.f32.mrf.mxu0  ;;  %808 = vmatmul.mubr.f32.gmra.mxu0 %v261_v36  ;;  %v970_v40 = vpop.f32.mrf.mxu1  ;;  %1257 = vmatmul.mubr.f32.gmra.mxu1 %v261_v36 }
 0x14b   : > { %2271 = vst [vmem:[%s3499_s19 + $0x280] sm:$0xff] %v521_v39  ;;  %2273 = vst [vmem:[%s3499_s19 + $0x290] sm:$0xff] %v970_v40  ;;  %813 = vmatprep.mubr.f32.mxu0 %v3130_v0  ;;  %1262 = vmatprep.mubr.f32.mxu1 %v3130_v0 }
 0x14c   : > { %v523_v42 = vpop.f32.mrf.mxu0  ;;  %v972_v43 = vpop.f32.mrf.mxu1 }
 0x14d   : > { %2272 = vst [vmem:[%s3499_s19 + $0x288] sm:$0xff] %v523_v42  ;;  %2274 = vst [vmem:[%s3499_s19 + $0x298] sm:$0xff] %v972_v43  ;;  %v2926_v42 = vld [vmem:[#allocation2 + $0x38] sm:$0xff] }
 0x14e   : > { %v527_v44 = vpop.f32.mrf.mxu0  ;;  %814 = vmatmul.mubr.f32.gmra.mxu0 %v262_v41  ;;  %v976_v45 = vpop.f32.mrf.mxu1  ;;  %1263 = vmatmul.mubr.f32.gmra.mxu1 %v262_v41 }
 0x14f   : > { %2279 = vst [vmem:[%s3499_s19 + $0x2c0] sm:$0xff] %v527_v44  ;;  %2281 = vst [vmem:[%s3499_s19 + $0x2d0] sm:$0xff] %v976_v45  ;;  %819 = vmatprep.mubr.f32.mxu0 %v3130_v0  ;;  %1268 = vmatprep.mubr.f32.mxu1 %v3130_v0 }
 0x150   : > { %v529_v47 = vpop.f32.mrf.mxu0  ;;  %v978_v48 = vpop.f32.mrf.mxu1 }
 0x151   : > { %2280 = vst [vmem:[%s3499_s19 + $0x2c8] sm:$0xff] %v529_v47  ;;  %2282 = vst [vmem:[%s3499_s19 + $0x2d8] sm:$0xff] %v978_v48  ;;  %v2927_v47 = vld [vmem:[#allocation2 + $0x40] sm:$0xff] }
 0x152   : > { %v533_v49 = vpop.f32.mrf.mxu0  ;;  %820 = vmatmul.mubr.f32.gmra.mxu0 %v263_v46  ;;  %v982_v50 = vpop.f32.mrf.mxu1  ;;  %1269 = vmatmul.mubr.f32.gmra.mxu1 %v263_v46 }
 0x153   : > { %2287 = vst [vmem:[%s3499_s19 + $0x300] sm:$0xff] %v533_v49  ;;  %2289 = vst [vmem:[%s3499_s19 + $0x310] sm:$0xff] %v982_v50  ;;  %825 = vmatprep.mubr.f32.mxu0 %v3130_v0  ;;  %1274 = vmatprep.mubr.f32.mxu1 %v3130_v0 }
 0x154   : > { %v535_v52 = vpop.f32.mrf.mxu0  ;;  %v984_v53 = vpop.f32.mrf.mxu1 }
 0x155   : > { %2288 = vst [vmem:[%s3499_s19 + $0x308] sm:$0xff] %v535_v52  ;;  %2290 = vst [vmem:[%s3499_s19 + $0x318] sm:$0xff] %v984_v53  ;;  %v2928_v52 = vld [vmem:[#allocation2 + $0x48] sm:$0xff] }
 0x156   : > { %v539_v54 = vpop.f32.mrf.mxu0  ;;  %826 = vmatmul.mubr.f32.gmra.mxu0 %v264_v51  ;;  %v988_v55 = vpop.f32.mrf.mxu1  ;;  %1275 = vmatmul.mubr.f32.gmra.mxu1 %v264_v51 }
 0x157   : > { %2295 = vst [vmem:[%s3499_s19 + $0x340] sm:$0xff] %v539_v54  ;;  %2297 = vst [vmem:[%s3499_s19 + $0x350] sm:$0xff] %v988_v55  ;;  %831 = vmatprep.mubr.f32.mxu0 %v3130_v0  ;;  %1280 = vmatprep.mubr.f32.mxu1 %v3130_v0 }
 0x158   : > { %v541_v57 = vpop.f32.mrf.mxu0  ;;  %v990_v58 = vpop.f32.mrf.mxu1 }
 0x159   : > { %2296 = vst [vmem:[%s3499_s19 + $0x348] sm:$0xff] %v541_v57  ;;  %2298 = vst [vmem:[%s3499_s19 + $0x358] sm:$0xff] %v990_v58  ;;  %v2929_v57 = vld [vmem:[#allocation2 + $0x50] sm:$0xff] }
 0x15a   : > { %v545_v59 = vpop.f32.mrf.mxu0  ;;  %832 = vmatmul.mubr.f32.gmra.mxu0 %v265_v56  ;;  %v994_v60 = vpop.f32.mrf.mxu1  ;;  %1281 = vmatmul.mubr.f32.gmra.mxu1 %v265_v56 }
 0x15b   : > { %2303 = vst [vmem:[%s3499_s19 + $0x380] sm:$0xff] %v545_v59  ;;  %2305 = vst [vmem:[%s3499_s19 + $0x390] sm:$0xff] %v994_v60  ;;  %837 = vmatprep.mubr.f32.mxu0 %v3130_v0  ;;  %1286 = vmatprep.mubr.f32.mxu1 %v3130_v0 }
 0x15c   : > { %v547_v62 = vpop.f32.mrf.mxu0  ;;  %v996_v63 = vpop.f32.mrf.mxu1 }
 0x15d   : > { %2304 = vst [vmem:[%s3499_s19 + $0x388] sm:$0xff] %v547_v62  ;;  %2306 = vst [vmem:[%s3499_s19 + $0x398] sm:$0xff] %v996_v63  ;;  %v2930_v62 = vld [vmem:[#allocation2 + $0x58] sm:$0xff] }
 0x15e   : > { %v551_v1 = vpop.f32.mrf.mxu0  ;;  %838 = vmatmul.mubr.f32.gmra.mxu0 %v266_v61  ;;  %v1000_v2 = vpop.f32.mrf.mxu1  ;;  %1287 = vmatmul.mubr.f32.gmra.mxu1 %v266_v61 }
 0x15f   : > { %2311 = vst [vmem:[%s3499_s19 + $0x3c0] sm:$0xff] %v551_v1  ;;  %2313 = vst [vmem:[%s3499_s19 + $0x3d0] sm:$0xff] %v1000_v2  ;;  %1357 = vmatprep.mubr.f32.mxu0 %v3130_v0  ;;  %1806 = vmatprep.mubr.f32.mxu1 %v3130_v0 }
 0x160   : > { %v553_v3 = vpop.f32.mrf.mxu0  ;;  %v1002_v4 = vpop.f32.mrf.mxu1 }
 0x161   : > { %2312 = vst [vmem:[%s3499_s19 + $0x3c8] sm:$0xff] %v553_v3  ;;  %2314 = vst [vmem:[%s3499_s19 + $0x3d8] sm:$0xff] %v1002_v4  ;;  %v2931_v4 = vld [vmem:[#allocation2 + $0x60] sm:$0xff] }
 0x162   : > { %v557_v5 = vpop.f32.mrf.mxu0  ;;  %v1006_v6 = vpop.f32.mrf.mxu1  ;;  %1358 = vmatmul.mubr.f32.vlgmr.msra.gmra.mxu0 %v2919_v7  ;;  %1807 = vmatmul.mubr.f32.vlgmr.msra.gmra.mxu1 %v2919_v7 }
 0x163   : > { %2319 = vst [vmem:[%s3499_s19 + $0x400] sm:$0xff] %v557_v5  ;;  %2321 = vst [vmem:[%s3499_s19 + $0x410] sm:$0xff] %v1006_v6  ;;  %1363 = vmatprep.mubr.f32.mxu0 %v3130_v0  ;;  %1812 = vmatprep.mubr.f32.mxu1 %v3130_v0 }
 0x164   : > { %v559_v8 = vpop.f32.mrf.mxu0  ;;  %v1008_v9 = vpop.f32.mrf.mxu1 }
 0x165   : > { %2320 = vst [vmem:[%s3499_s19 + $0x408] sm:$0xff] %v559_v8  ;;  %2322 = vst [vmem:[%s3499_s19 + $0x418] sm:$0xff] %v1008_v9  ;;  %v2932_v9 = vld [vmem:[#allocation2 + $0x68] sm:$0xff] }
 0x166   : > { %v563_v10 = vpop.f32.mrf.mxu0  ;;  %v1012_v11 = vpop.f32.mrf.mxu1  ;;  %1364 = vmatmul.mubr.f32.gmra.mxu0 %v2920_v12  ;;  %1813 = vmatmul.mubr.f32.gmra.mxu1 %v2920_v12 }
 0x167   : > { %2327 = vst [vmem:[%s3499_s19 + $0x440] sm:$0xff] %v563_v10  ;;  %2329 = vst [vmem:[%s3499_s19 + $0x450] sm:$0xff] %v1012_v11  ;;  %1369 = vmatprep.mubr.f32.mxu0 %v3130_v0  ;;  %1818 = vmatprep.mubr.f32.mxu1 %v3130_v0 }
 0x168   : > { %v565_v13 = vpop.f32.mrf.mxu0  ;;  %v1014_v14 = vpop.f32.mrf.mxu1 }
 0x169   : > { %2328 = vst [vmem:[%s3499_s19 + $0x448] sm:$0xff] %v565_v13  ;;  %2330 = vst [vmem:[%s3499_s19 + $0x458] sm:$0xff] %v1014_v14  ;;  %v2933_v14 = vld [vmem:[#allocation2 + $0x70] sm:$0xff] }
 0x16a   : > { %v569_v15 = vpop.f32.mrf.mxu0  ;;  %v1018_v16 = vpop.f32.mrf.mxu1  ;;  %1370 = vmatmul.mubr.f32.gmra.mxu0 %v2921_v17  ;;  %1819 = vmatmul.mubr.f32.gmra.mxu1 %v2921_v17 }
 0x16b   : > { %2335 = vst [vmem:[%s3499_s19 + $0x480] sm:$0xff] %v569_v15  ;;  %2337 = vst [vmem:[%s3499_s19 + $0x490] sm:$0xff] %v1018_v16  ;;  %1375 = vmatprep.mubr.f32.mxu0 %v3130_v0  ;;  %1824 = vmatprep.mubr.f32.mxu1 %v3130_v0 }
 0x16c   : > { %v571_v18 = vpop.f32.mrf.mxu0  ;;  %v1020_v19 = vpop.f32.mrf.mxu1 }
 0x16d   : > { %2336 = vst [vmem:[%s3499_s19 + $0x488] sm:$0xff] %v571_v18  ;;  %2338 = vst [vmem:[%s3499_s19 + $0x498] sm:$0xff] %v1020_v19  ;;  %v2934_v19 = vld [vmem:[#allocation2 + $0x78] sm:$0xff] }
 0x16e   : > { %v575_v20 = vpop.f32.mrf.mxu0  ;;  %v1024_v21 = vpop.f32.mrf.mxu1  ;;  %1376 = vmatmul.mubr.f32.gmra.mxu0 %v2922_v22  ;;  %1825 = vmatmul.mubr.f32.gmra.mxu1 %v2922_v22 }
 0x16f   : > { %2343 = vst [vmem:[%s3499_s19 + $0x4c0] sm:$0xff] %v575_v20  ;;  %2345 = vst [vmem:[%s3499_s19 + $0x4d0] sm:$0xff] %v1024_v21  ;;  %1381 = vmatprep.mubr.f32.mxu0 %v3130_v0  ;;  %1830 = vmatprep.mubr.f32.mxu1 %v3130_v0 }
 0x170   : > { %v577_v23 = vpop.f32.mrf.mxu0  ;;  %v1026_v24 = vpop.f32.mrf.mxu1 }
 0x171   : > { %2344 = vst [vmem:[%s3499_s19 + $0x4c8] sm:$0xff] %v577_v23  ;;  %2346 = vst [vmem:[%s3499_s19 + $0x4d8] sm:$0xff] %v1026_v24  ;;  %v2935_v24 = vld [vmem:[#allocation2 + $0x80] sm:$0xff] }
 0x172   : > { %v581_v25 = vpop.f32.mrf.mxu0  ;;  %v1030_v26 = vpop.f32.mrf.mxu1  ;;  %1382 = vmatmul.mubr.f32.gmra.mxu0 %v2923_v27  ;;  %1831 = vmatmul.mubr.f32.gmra.mxu1 %v2923_v27 }
 0x173   : > { %2351 = vst [vmem:[%s3499_s19 + $0x500] sm:$0xff] %v581_v25  ;;  %2353 = vst [vmem:[%s3499_s19 + $0x510] sm:$0xff] %v1030_v26  ;;  %1387 = vmatprep.mubr.f32.mxu0 %v3130_v0  ;;  %1836 = vmatprep.mubr.f32.mxu1 %v3130_v0 }
 0x174   : > { %v583_v28 = vpop.f32.mrf.mxu0  ;;  %v1032_v29 = vpop.f32.mrf.mxu1 }
 0x175   : > { %2352 = vst [vmem:[%s3499_s19 + $0x508] sm:$0xff] %v583_v28  ;;  %2354 = vst [vmem:[%s3499_s19 + $0x518] sm:$0xff] %v1032_v29  ;;  %v2936_v29 = vld [vmem:[#allocation2 + $0x88] sm:$0xff] }
 0x176   : > { %v587_v30 = vpop.f32.mrf.mxu0  ;;  %v1036_v31 = vpop.f32.mrf.mxu1  ;;  %1388 = vmatmul.mubr.f32.gmra.mxu0 %v2924_v32  ;;  %1837 = vmatmul.mubr.f32.gmra.mxu1 %v2924_v32 }
 0x177   : > { %2359 = vst [vmem:[%s3499_s19 + $0x540] sm:$0xff] %v587_v30  ;;  %2361 = vst [vmem:[%s3499_s19 + $0x550] sm:$0xff] %v1036_v31  ;;  %1393 = vmatprep.mubr.f32.mxu0 %v3130_v0  ;;  %1842 = vmatprep.mubr.f32.mxu1 %v3130_v0 }
 0x178   : > { %v589_v33 = vpop.f32.mrf.mxu0  ;;  %v1038_v34 = vpop.f32.mrf.mxu1 }
 0x179   : > { %2360 = vst [vmem:[%s3499_s19 + $0x548] sm:$0xff] %v589_v33  ;;  %2362 = vst [vmem:[%s3499_s19 + $0x558] sm:$0xff] %v1038_v34  ;;  %v2937_v34 = vld [vmem:[#allocation2 + $0x90] sm:$0xff] }
 0x17a   : > { %v593_v35 = vpop.f32.mrf.mxu0  ;;  %v1042_v36 = vpop.f32.mrf.mxu1  ;;  %1394 = vmatmul.mubr.f32.gmra.mxu0 %v2925_v37  ;;  %1843 = vmatmul.mubr.f32.gmra.mxu1 %v2925_v37 }
 0x17b   : > { %2367 = vst [vmem:[%s3499_s19 + $0x580] sm:$0xff] %v593_v35  ;;  %2369 = vst [vmem:[%s3499_s19 + $0x590] sm:$0xff] %v1042_v36  ;;  %1399 = vmatprep.mubr.f32.mxu0 %v3130_v0  ;;  %1848 = vmatprep.mubr.f32.mxu1 %v3130_v0 }
 0x17c   : > { %v595_v38 = vpop.f32.mrf.mxu0  ;;  %v1044_v39 = vpop.f32.mrf.mxu1 }
 0x17d   : > { %2368 = vst [vmem:[%s3499_s19 + $0x588] sm:$0xff] %v595_v38  ;;  %2370 = vst [vmem:[%s3499_s19 + $0x598] sm:$0xff] %v1044_v39  ;;  %v2938_v39 = vld [vmem:[#allocation2 + $0x98] sm:$0xff] }
 0x17e   : > { %v599_v40 = vpop.f32.mrf.mxu0  ;;  %v1048_v41 = vpop.f32.mrf.mxu1  ;;  %1400 = vmatmul.mubr.f32.gmra.mxu0 %v2926_v42  ;;  %1849 = vmatmul.mubr.f32.gmra.mxu1 %v2926_v42 }
 0x17f   : > { %2375 = vst [vmem:[%s3499_s19 + $0x5c0] sm:$0xff] %v599_v40  ;;  %2377 = vst [vmem:[%s3499_s19 + $0x5d0] sm:$0xff] %v1048_v41  ;;  %1405 = vmatprep.mubr.f32.mxu0 %v3130_v0  ;;  %1854 = vmatprep.mubr.f32.mxu1 %v3130_v0 }
 0x180   : > { %v601_v43 = vpop.f32.mrf.mxu0  ;;  %v1050_v44 = vpop.f32.mrf.mxu1 }
 0x181   : > { %2376 = vst [vmem:[%s3499_s19 + $0x5c8] sm:$0xff] %v601_v43  ;;  %2378 = vst [vmem:[%s3499_s19 + $0x5d8] sm:$0xff] %v1050_v44  ;;  %v2939_v44 = vld [vmem:[#allocation2 + $0xa0] sm:$0xff] }
 0x182   : > { %v605_v45 = vpop.f32.mrf.mxu0  ;;  %v1054_v46 = vpop.f32.mrf.mxu1  ;;  %1406 = vmatmul.mubr.f32.gmra.mxu0 %v2927_v47  ;;  %1855 = vmatmul.mubr.f32.gmra.mxu1 %v2927_v47 }
 0x183   : > { %2383 = vst [vmem:[%s3499_s19 + $0x600] sm:$0xff] %v605_v45  ;;  %2385 = vst [vmem:[%s3499_s19 + $0x610] sm:$0xff] %v1054_v46  ;;  %1411 = vmatprep.mubr.f32.mxu0 %v3130_v0  ;;  %1860 = vmatprep.mubr.f32.mxu1 %v3130_v0 }
 0x184   : > { %v607_v48 = vpop.f32.mrf.mxu0  ;;  %v1056_v49 = vpop.f32.mrf.mxu1 }
 0x185   : > { %2384 = vst [vmem:[%s3499_s19 + $0x608] sm:$0xff] %v607_v48  ;;  %2386 = vst [vmem:[%s3499_s19 + $0x618] sm:$0xff] %v1056_v49  ;;  %v2940_v49 = vld [vmem:[#allocation2 + $0xa8] sm:$0xff] }
 0x186   : > { %v611_v50 = vpop.f32.mrf.mxu0  ;;  %v1060_v51 = vpop.f32.mrf.mxu1  ;;  %1412 = vmatmul.mubr.f32.gmra.mxu0 %v2928_v52  ;;  %1861 = vmatmul.mubr.f32.gmra.mxu1 %v2928_v52 }
 0x187   : > { %2391 = vst [vmem:[%s3499_s19 + $0x640] sm:$0xff] %v611_v50  ;;  %2393 = vst [vmem:[%s3499_s19 + $0x650] sm:$0xff] %v1060_v51  ;;  %1417 = vmatprep.mubr.f32.mxu0 %v3130_v0  ;;  %1866 = vmatprep.mubr.f32.mxu1 %v3130_v0 }
 0x188   : > { %v613_v53 = vpop.f32.mrf.mxu0  ;;  %v1062_v54 = vpop.f32.mrf.mxu1 }
 0x189   : > { %2392 = vst [vmem:[%s3499_s19 + $0x648] sm:$0xff] %v613_v53  ;;  %2394 = vst [vmem:[%s3499_s19 + $0x658] sm:$0xff] %v1062_v54  ;;  %v2941_v54 = vld [vmem:[#allocation2 + $0xb0] sm:$0xff] }
 0x18a   : > { %v617_v55 = vpop.f32.mrf.mxu0  ;;  %v1066_v56 = vpop.f32.mrf.mxu1  ;;  %1418 = vmatmul.mubr.f32.gmra.mxu0 %v2929_v57  ;;  %1867 = vmatmul.mubr.f32.gmra.mxu1 %v2929_v57 }
 0x18b   : > { %2399 = vst [vmem:[%s3499_s19 + $0x680] sm:$0xff] %v617_v55  ;;  %2401 = vst [vmem:[%s3499_s19 + $0x690] sm:$0xff] %v1066_v56  ;;  %1423 = vmatprep.mubr.f32.mxu0 %v3130_v0  ;;  %1872 = vmatprep.mubr.f32.mxu1 %v3130_v0 }
 0x18c   : > { %v619_v58 = vpop.f32.mrf.mxu0  ;;  %v1068_v59 = vpop.f32.mrf.mxu1 }
 0x18d   : > { %2400 = vst [vmem:[%s3499_s19 + $0x688] sm:$0xff] %v619_v58  ;;  %2402 = vst [vmem:[%s3499_s19 + $0x698] sm:$0xff] %v1068_v59  ;;  %v2942_v59 = vld [vmem:[#allocation2 + $0xb8] sm:$0xff] }
 0x18e   : > { %v623_v60 = vpop.f32.mrf.mxu0  ;;  %v1072_v61 = vpop.f32.mrf.mxu1  ;;  %1424 = vmatmul.mubr.f32.gmra.mxu0 %v2930_v62  ;;  %1873 = vmatmul.mubr.f32.gmra.mxu1 %v2930_v62 }
 0x18f   : > { %2407 = vst [vmem:[%s3499_s19 + $0x6c0] sm:$0xff] %v623_v60  ;;  %2409 = vst [vmem:[%s3499_s19 + $0x6d0] sm:$0xff] %v1072_v61  ;;  %1429 = vmatprep.mubr.f32.mxu0 %v3130_v0  ;;  %1878 = vmatprep.mubr.f32.mxu1 %v3130_v0 }
 0x190   : > { %v625_v63 = vpop.f32.mrf.mxu0  ;;  %v1074_v1 = vpop.f32.mrf.mxu1 }
 0x191   : > { %2408 = vst [vmem:[%s3499_s19 + $0x6c8] sm:$0xff] %v625_v63  ;;  %2410 = vst [vmem:[%s3499_s19 + $0x6d8] sm:$0xff] %v1074_v1  ;;  %v2943_v1 = vld [vmem:[#allocation2 + $0xc0] sm:$0xff] }
 0x192   : > { %v629_v2 = vpop.f32.mrf.mxu0  ;;  %v1078_v3 = vpop.f32.mrf.mxu1  ;;  %1430 = vmatmul.mubr.f32.gmra.mxu0 %v2931_v4  ;;  %1879 = vmatmul.mubr.f32.gmra.mxu1 %v2931_v4 }
 0x193   : > { %2415 = vst [vmem:[%s3499_s19 + $0x700] sm:$0xff] %v629_v2  ;;  %2417 = vst [vmem:[%s3499_s19 + $0x710] sm:$0xff] %v1078_v3  ;;  %1435 = vmatprep.mubr.f32.mxu0 %v3130_v0  ;;  %1884 = vmatprep.mubr.f32.mxu1 %v3130_v0 }
 0x194   : > { %v631_v5 = vpop.f32.mrf.mxu0  ;;  %v1080_v6 = vpop.f32.mrf.mxu1 }
 0x195   : > { %2416 = vst [vmem:[%s3499_s19 + $0x708] sm:$0xff] %v631_v5  ;;  %2418 = vst [vmem:[%s3499_s19 + $0x718] sm:$0xff] %v1080_v6  ;;  %v2944_v6 = vld [vmem:[#allocation2 + $0xc8] sm:$0xff] }
 0x196   : > { %v635_v7 = vpop.f32.mrf.mxu0  ;;  %v1084_v8 = vpop.f32.mrf.mxu1  ;;  %1436 = vmatmul.mubr.f32.gmra.mxu0 %v2932_v9  ;;  %1885 = vmatmul.mubr.f32.gmra.mxu1 %v2932_v9 }
 0x197   : > { %2423 = vst [vmem:[%s3499_s19 + $0x740] sm:$0xff] %v635_v7  ;;  %2425 = vst [vmem:[%s3499_s19 + $0x750] sm:$0xff] %v1084_v8  ;;  %1441 = vmatprep.mubr.f32.mxu0 %v3130_v0  ;;  %1890 = vmatprep.mubr.f32.mxu1 %v3130_v0 }
 0x198   : > { %v637_v10 = vpop.f32.mrf.mxu0  ;;  %v1086_v11 = vpop.f32.mrf.mxu1 }
 0x199   : > { %2424 = vst [vmem:[%s3499_s19 + $0x748] sm:$0xff] %v637_v10  ;;  %2426 = vst [vmem:[%s3499_s19 + $0x758] sm:$0xff] %v1086_v11  ;;  %v2945_v11 = vld [vmem:[#allocation2 + $0xd0] sm:$0xff] }
 0x19a   : > { %v641_v12 = vpop.f32.mrf.mxu0  ;;  %v1090_v13 = vpop.f32.mrf.mxu1  ;;  %1442 = vmatmul.mubr.f32.gmra.mxu0 %v2933_v14  ;;  %1891 = vmatmul.mubr.f32.gmra.mxu1 %v2933_v14 }
 0x19b   : > { %2431 = vst [vmem:[%s3499_s19 + $0x780] sm:$0xff] %v641_v12  ;;  %2433 = vst [vmem:[%s3499_s19 + $0x790] sm:$0xff] %v1090_v13  ;;  %1447 = vmatprep.mubr.f32.mxu0 %v3130_v0  ;;  %1896 = vmatprep.mubr.f32.mxu1 %v3130_v0 }
 0x19c   : > { %v643_v15 = vpop.f32.mrf.mxu0  ;;  %v1092_v16 = vpop.f32.mrf.mxu1 }
 0x19d   : > { %2432 = vst [vmem:[%s3499_s19 + $0x788] sm:$0xff] %v643_v15  ;;  %2434 = vst [vmem:[%s3499_s19 + $0x798] sm:$0xff] %v1092_v16  ;;  %v2946_v16 = vld [vmem:[#allocation2 + $0xd8] sm:$0xff] }
 0x19e   : > { %v647_v17 = vpop.f32.mrf.mxu0  ;;  %v1096_v18 = vpop.f32.mrf.mxu1  ;;  %1448 = vmatmul.mubr.f32.gmra.mxu0 %v2934_v19  ;;  %1897 = vmatmul.mubr.f32.gmra.mxu1 %v2934_v19 }
 0x19f   : > { %2439 = vst [vmem:[%s3499_s19 + $0x7c0] sm:$0xff] %v647_v17  ;;  %2441 = vst [vmem:[%s3499_s19 + $0x7d0] sm:$0xff] %v1096_v18  ;;  %1453 = vmatprep.mubr.f32.mxu0 %v3130_v0  ;;  %1902 = vmatprep.mubr.f32.mxu1 %v3130_v0 }
 0x1a0   : > { %v649_v20 = vpop.f32.mrf.mxu0  ;;  %v1098_v21 = vpop.f32.mrf.mxu1 }
 0x1a1   : > { %2440 = vst [vmem:[%s3499_s19 + $0x7c8] sm:$0xff] %v649_v20  ;;  %2442 = vst [vmem:[%s3499_s19 + $0x7d8] sm:$0xff] %v1098_v21  ;;  %v2947_v21 = vld [vmem:[#allocation2 + $0xe0] sm:$0xff] }
 0x1a2   : > { %v653_v22 = vpop.f32.mrf.mxu0  ;;  %v1102_v23 = vpop.f32.mrf.mxu1  ;;  %1454 = vmatmul.mubr.f32.gmra.mxu0 %v2935_v24  ;;  %1903 = vmatmul.mubr.f32.gmra.mxu1 %v2935_v24 }
 0x1a3   : > { %2447 = vst [vmem:[%s3499_s19 + $0x800] sm:$0xff] %v653_v22  ;;  %2449 = vst [vmem:[%s3499_s19 + $0x810] sm:$0xff] %v1102_v23  ;;  %1459 = vmatprep.mubr.f32.mxu0 %v3130_v0  ;;  %1908 = vmatprep.mubr.f32.mxu1 %v3130_v0 }
 0x1a4   : > { %v655_v25 = vpop.f32.mrf.mxu0  ;;  %v1104_v26 = vpop.f32.mrf.mxu1 }
 0x1a5   : > { %2448 = vst [vmem:[%s3499_s19 + $0x808] sm:$0xff] %v655_v25  ;;  %2450 = vst [vmem:[%s3499_s19 + $0x818] sm:$0xff] %v1104_v26  ;;  %v2948_v26 = vld [vmem:[#allocation2 + $0xe8] sm:$0xff] }
 0x1a6   : > { %v659_v27 = vpop.f32.mrf.mxu0  ;;  %v1108_v28 = vpop.f32.mrf.mxu1  ;;  %1460 = vmatmul.mubr.f32.gmra.mxu0 %v2936_v29  ;;  %1909 = vmatmul.mubr.f32.gmra.mxu1 %v2936_v29 }
 0x1a7   : > { %2455 = vst [vmem:[%s3499_s19 + $0x840] sm:$0xff] %v659_v27  ;;  %2457 = vst [vmem:[%s3499_s19 + $0x850] sm:$0xff] %v1108_v28  ;;  %1465 = vmatprep.mubr.f32.mxu0 %v3130_v0  ;;  %1914 = vmatprep.mubr.f32.mxu1 %v3130_v0 }
 0x1a8   : > { %v661_v30 = vpop.f32.mrf.mxu0  ;;  %v1110_v31 = vpop.f32.mrf.mxu1 }
 0x1a9   : > { %2456 = vst [vmem:[%s3499_s19 + $0x848] sm:$0xff] %v661_v30  ;;  %2458 = vst [vmem:[%s3499_s19 + $0x858] sm:$0xff] %v1110_v31  ;;  %v2949_v31 = vld [vmem:[#allocation2 + $0xf0] sm:$0xff] }
 0x1aa   : > { %v665_v32 = vpop.f32.mrf.mxu0  ;;  %v1114_v33 = vpop.f32.mrf.mxu1  ;;  %1466 = vmatmul.mubr.f32.gmra.mxu0 %v2937_v34  ;;  %1915 = vmatmul.mubr.f32.gmra.mxu1 %v2937_v34 }
 0x1ab   : > { %2463 = vst [vmem:[%s3499_s19 + $0x880] sm:$0xff] %v665_v32  ;;  %2465 = vst [vmem:[%s3499_s19 + $0x890] sm:$0xff] %v1114_v33  ;;  %1471 = vmatprep.mubr.f32.mxu0 %v3130_v0  ;;  %1920 = vmatprep.mubr.f32.mxu1 %v3130_v0 }
 0x1ac   : > { %v667_v35 = vpop.f32.mrf.mxu0  ;;  %v1116_v36 = vpop.f32.mrf.mxu1 }
 0x1ad   : > { %2464 = vst [vmem:[%s3499_s19 + $0x888] sm:$0xff] %v667_v35  ;;  %2466 = vst [vmem:[%s3499_s19 + $0x898] sm:$0xff] %v1116_v36  ;;  %v2950_v36 = vld [vmem:[#allocation2 + $0xf8] sm:$0xff] }
 0x1ae   : > { %v671_v37 = vpop.f32.mrf.mxu0  ;;  %v1120_v38 = vpop.f32.mrf.mxu1  ;;  %1472 = vmatmul.mubr.f32.gmra.mxu0 %v2938_v39  ;;  %1921 = vmatmul.mubr.f32.gmra.mxu1 %v2938_v39 }
 0x1af   : > { %2471 = vst [vmem:[%s3499_s19 + $0x8c0] sm:$0xff] %v671_v37  ;;  %2473 = vst [vmem:[%s3499_s19 + $0x8d0] sm:$0xff] %v1120_v38  ;;  %1477 = vmatprep.mubr.f32.mxu0 %v3130_v0  ;;  %1926 = vmatprep.mubr.f32.mxu1 %v3130_v0 }
 0x1b0   : > { %v673_v40 = vpop.f32.mrf.mxu0  ;;  %v1122_v41 = vpop.f32.mrf.mxu1 }
 0x1b1   : > { %2472 = vst [vmem:[%s3499_s19 + $0x8c8] sm:$0xff] %v673_v40  ;;  %2474 = vst [vmem:[%s3499_s19 + $0x8d8] sm:$0xff] %v1122_v41  ;;  %v2951_v41 = vld [vmem:[#allocation2 + $0x100] sm:$0xff] }
 0x1b2   : > { %v677_v42 = vpop.f32.mrf.mxu0  ;;  %v1126_v43 = vpop.f32.mrf.mxu1  ;;  %1478 = vmatmul.mubr.f32.gmra.mxu0 %v2939_v44  ;;  %1927 = vmatmul.mubr.f32.gmra.mxu1 %v2939_v44 }
 0x1b3   : > { %2479 = vst [vmem:[%s3499_s19 + $0x900] sm:$0xff] %v677_v42  ;;  %2481 = vst [vmem:[%s3499_s19 + $0x910] sm:$0xff] %v1126_v43  ;;  %1483 = vmatprep.mubr.f32.mxu0 %v3130_v0  ;;  %1932 = vmatprep.mubr.f32.mxu1 %v3130_v0 }
 0x1b4   : > { %v679_v45 = vpop.f32.mrf.mxu0  ;;  %v1128_v46 = vpop.f32.mrf.mxu1 }
 0x1b5   : > { %2480 = vst [vmem:[%s3499_s19 + $0x908] sm:$0xff] %v679_v45  ;;  %2482 = vst [vmem:[%s3499_s19 + $0x918] sm:$0xff] %v1128_v46  ;;  %v2952_v46 = vld [vmem:[#allocation2 + $0x108] sm:$0xff] }
 0x1b6   : > { %v683_v47 = vpop.f32.mrf.mxu0  ;;  %v1132_v48 = vpop.f32.mrf.mxu1  ;;  %1484 = vmatmul.mubr.f32.gmra.mxu0 %v2940_v49  ;;  %1933 = vmatmul.mubr.f32.gmra.mxu1 %v2940_v49 }
 0x1b7   : > { %2487 = vst [vmem:[%s3499_s19 + $0x940] sm:$0xff] %v683_v47  ;;  %2489 = vst [vmem:[%s3499_s19 + $0x950] sm:$0xff] %v1132_v48  ;;  %1489 = vmatprep.mubr.f32.mxu0 %v3130_v0  ;;  %1938 = vmatprep.mubr.f32.mxu1 %v3130_v0 }
 0x1b8   : > { %v685_v50 = vpop.f32.mrf.mxu0  ;;  %v1134_v51 = vpop.f32.mrf.mxu1 }
 0x1b9   : > { %2488 = vst [vmem:[%s3499_s19 + $0x948] sm:$0xff] %v685_v50  ;;  %2490 = vst [vmem:[%s3499_s19 + $0x958] sm:$0xff] %v1134_v51  ;;  %v2953_v51 = vld [vmem:[#allocation2 + $0x110] sm:$0xff] }
 0x1ba   : > { %v689_v52 = vpop.f32.mrf.mxu0  ;;  %v1138_v53 = vpop.f32.mrf.mxu1  ;;  %1490 = vmatmul.mubr.f32.gmra.mxu0 %v2941_v54  ;;  %1939 = vmatmul.mubr.f32.gmra.mxu1 %v2941_v54 }
 0x1bb   : > { %2495 = vst [vmem:[%s3499_s19 + $0x980] sm:$0xff] %v689_v52  ;;  %2497 = vst [vmem:[%s3499_s19 + $0x990] sm:$0xff] %v1138_v53  ;;  %1495 = vmatprep.mubr.f32.mxu0 %v3130_v0  ;;  %1944 = vmatprep.mubr.f32.mxu1 %v3130_v0 }
 0x1bc   : > { %v691_v55 = vpop.f32.mrf.mxu0  ;;  %v1140_v56 = vpop.f32.mrf.mxu1 }
 0x1bd   : > { %2496 = vst [vmem:[%s3499_s19 + $0x988] sm:$0xff] %v691_v55  ;;  %2498 = vst [vmem:[%s3499_s19 + $0x998] sm:$0xff] %v1140_v56  ;;  %v2954_v56 = vld [vmem:[#allocation2 + $0x118] sm:$0xff] }
 0x1be   : > { %v695_v57 = vpop.f32.mrf.mxu0  ;;  %v1144_v58 = vpop.f32.mrf.mxu1  ;;  %1496 = vmatmul.mubr.f32.gmra.mxu0 %v2942_v59  ;;  %1945 = vmatmul.mubr.f32.gmra.mxu1 %v2942_v59 }
 0x1bf   : > { %2503 = vst [vmem:[%s3499_s19 + $0x9c0] sm:$0xff] %v695_v57  ;;  %2505 = vst [vmem:[%s3499_s19 + $0x9d0] sm:$0xff] %v1144_v58  ;;  %1501 = vmatprep.mubr.f32.mxu0 %v3130_v0  ;;  %1950 = vmatprep.mubr.f32.mxu1 %v3130_v0 }
 0x1c0   : > { %v697_v60 = vpop.f32.mrf.mxu0  ;;  %v1146_v61 = vpop.f32.mrf.mxu1 }
 0x1c1   : > { %2504 = vst [vmem:[%s3499_s19 + $0x9c8] sm:$0xff] %v697_v60  ;;  %2506 = vst [vmem:[%s3499_s19 + $0x9d8] sm:$0xff] %v1146_v61  ;;  %v2955_v61 = vld [vmem:[#allocation2 + $0x120] sm:$0xff] }
 0x1c2   : > { %v701_v62 = vpop.f32.mrf.mxu0  ;;  %v1150_v63 = vpop.f32.mrf.mxu1  ;;  %1502 = vmatmul.mubr.f32.gmra.mxu0 %v2943_v1  ;;  %1951 = vmatmul.mubr.f32.gmra.mxu1 %v2943_v1 }
 0x1c3   : > { %2511 = vst [vmem:[%s3499_s19 + $0xa00] sm:$0xff] %v701_v62  ;;  %2513 = vst [vmem:[%s3499_s19 + $0xa10] sm:$0xff] %v1150_v63  ;;  %1507 = vmatprep.mubr.f32.mxu0 %v3130_v0  ;;  %1956 = vmatprep.mubr.f32.mxu1 %v3130_v0 }
 0x1c4   : > { %v703_v2 = vpop.f32.mrf.mxu0  ;;  %v1152_v3 = vpop.f32.mrf.mxu1 }
 0x1c5   : > { %2512 = vst [vmem:[%s3499_s19 + $0xa08] sm:$0xff] %v703_v2  ;;  %2514 = vst [vmem:[%s3499_s19 + $0xa18] sm:$0xff] %v1152_v3  ;;  %v2956_v3 = vld [vmem:[#allocation2 + $0x128] sm:$0xff] }
 0x1c6   : > { %v707_v4 = vpop.f32.mrf.mxu0  ;;  %v1156_v5 = vpop.f32.mrf.mxu1  ;;  %1508 = vmatmul.mubr.f32.gmra.mxu0 %v2944_v6  ;;  %1957 = vmatmul.mubr.f32.gmra.mxu1 %v2944_v6 }
 0x1c7   : > { %2519 = vst [vmem:[%s3499_s19 + $0xa40] sm:$0xff] %v707_v4  ;;  %2521 = vst [vmem:[%s3499_s19 + $0xa50] sm:$0xff] %v1156_v5  ;;  %1513 = vmatprep.mubr.f32.mxu0 %v3130_v0  ;;  %1962 = vmatprep.mubr.f32.mxu1 %v3130_v0 }
 0x1c8   : > { %v709_v7 = vpop.f32.mrf.mxu0  ;;  %v1158_v8 = vpop.f32.mrf.mxu1 }
 0x1c9   : > { %2520 = vst [vmem:[%s3499_s19 + $0xa48] sm:$0xff] %v709_v7  ;;  %2522 = vst [vmem:[%s3499_s19 + $0xa58] sm:$0xff] %v1158_v8  ;;  %v2957_v8 = vld [vmem:[#allocation2 + $0x130] sm:$0xff] }
 0x1ca   : > { %v713_v9 = vpop.f32.mrf.mxu0  ;;  %v1162_v10 = vpop.f32.mrf.mxu1  ;;  %1514 = vmatmul.mubr.f32.gmra.mxu0 %v2945_v11  ;;  %1963 = vmatmul.mubr.f32.gmra.mxu1 %v2945_v11 }
 0x1cb   : > { %2527 = vst [vmem:[%s3499_s19 + $0xa80] sm:$0xff] %v713_v9  ;;  %2529 = vst [vmem:[%s3499_s19 + $0xa90] sm:$0xff] %v1162_v10  ;;  %1519 = vmatprep.mubr.f32.mxu0 %v3130_v0  ;;  %1968 = vmatprep.mubr.f32.mxu1 %v3130_v0 }
 0x1cc   : > { %v715_v12 = vpop.f32.mrf.mxu0  ;;  %v1164_v13 = vpop.f32.mrf.mxu1 }
 0x1cd   : > { %2528 = vst [vmem:[%s3499_s19 + $0xa88] sm:$0xff] %v715_v12  ;;  %2530 = vst [vmem:[%s3499_s19 + $0xa98] sm:$0xff] %v1164_v13  ;;  %v2958_v13 = vld [vmem:[#allocation2 + $0x138] sm:$0xff] }
 0x1ce   : > { %v719_v14 = vpop.f32.mrf.mxu0  ;;  %v1168_v15 = vpop.f32.mrf.mxu1  ;;  %1520 = vmatmul.mubr.f32.gmra.mxu0 %v2946_v16  ;;  %1969 = vmatmul.mubr.f32.gmra.mxu1 %v2946_v16 }
 0x1cf   : > { %2535 = vst [vmem:[%s3499_s19 + $0xac0] sm:$0xff] %v719_v14  ;;  %2537 = vst [vmem:[%s3499_s19 + $0xad0] sm:$0xff] %v1168_v15  ;;  %1525 = vmatprep.mubr.f32.mxu0 %v3130_v0  ;;  %1974 = vmatprep.mubr.f32.mxu1 %v3130_v0 }
 0x1d0   : > { %v721_v17 = vpop.f32.mrf.mxu0  ;;  %v1170_v18 = vpop.f32.mrf.mxu1 }
 0x1d1   : > { %2536 = vst [vmem:[%s3499_s19 + $0xac8] sm:$0xff] %v721_v17  ;;  %2538 = vst [vmem:[%s3499_s19 + $0xad8] sm:$0xff] %v1170_v18  ;;  %v2959_v18 = vld [vmem:[#allocation2 + $0x140] sm:$0xff] }
 0x1d2   : > { %v725_v19 = vpop.f32.mrf.mxu0  ;;  %v1174_v20 = vpop.f32.mrf.mxu1  ;;  %1526 = vmatmul.mubr.f32.gmra.mxu0 %v2947_v21  ;;  %1975 = vmatmul.mubr.f32.gmra.mxu1 %v2947_v21 }
 0x1d3   : > { %2543 = vst [vmem:[%s3499_s19 + $0xb00] sm:$0xff] %v725_v19  ;;  %2545 = vst [vmem:[%s3499_s19 + $0xb10] sm:$0xff] %v1174_v20  ;;  %1531 = vmatprep.mubr.f32.mxu0 %v3130_v0  ;;  %1980 = vmatprep.mubr.f32.mxu1 %v3130_v0 }
 0x1d4   : > { %v727_v22 = vpop.f32.mrf.mxu0  ;;  %v1176_v23 = vpop.f32.mrf.mxu1 }
 0x1d5   : > { %2544 = vst [vmem:[%s3499_s19 + $0xb08] sm:$0xff] %v727_v22  ;;  %2546 = vst [vmem:[%s3499_s19 + $0xb18] sm:$0xff] %v1176_v23  ;;  %v2960_v23 = vld [vmem:[#allocation2 + $0x148] sm:$0xff] }
 0x1d6   : > { %v731_v24 = vpop.f32.mrf.mxu0  ;;  %v1180_v25 = vpop.f32.mrf.mxu1  ;;  %1532 = vmatmul.mubr.f32.gmra.mxu0 %v2948_v26  ;;  %1981 = vmatmul.mubr.f32.gmra.mxu1 %v2948_v26 }
 0x1d7   : > { %2551 = vst [vmem:[%s3499_s19 + $0xb40] sm:$0xff] %v731_v24  ;;  %2553 = vst [vmem:[%s3499_s19 + $0xb50] sm:$0xff] %v1180_v25  ;;  %1537 = vmatprep.mubr.f32.mxu0 %v3130_v0  ;;  %1986 = vmatprep.mubr.f32.mxu1 %v3130_v0 }
 0x1d8   : > { %v733_v27 = vpop.f32.mrf.mxu0  ;;  %v1182_v28 = vpop.f32.mrf.mxu1 }
 0x1d9   : > { %2552 = vst [vmem:[%s3499_s19 + $0xb48] sm:$0xff] %v733_v27  ;;  %2554 = vst [vmem:[%s3499_s19 + $0xb58] sm:$0xff] %v1182_v28  ;;  %v2961_v28 = vld [vmem:[#allocation2 + $0x150] sm:$0xff] }
 0x1da   : > { %v737_v29 = vpop.f32.mrf.mxu0  ;;  %v1186_v30 = vpop.f32.mrf.mxu1  ;;  %1538 = vmatmul.mubr.f32.gmra.mxu0 %v2949_v31  ;;  %1987 = vmatmul.mubr.f32.gmra.mxu1 %v2949_v31 }
 0x1db   : > { %2559 = vst [vmem:[%s3499_s19 + $0xb80] sm:$0xff] %v737_v29  ;;  %2561 = vst [vmem:[%s3499_s19 + $0xb90] sm:$0xff] %v1186_v30  ;;  %1543 = vmatprep.mubr.f32.mxu0 %v3130_v0  ;;  %1992 = vmatprep.mubr.f32.mxu1 %v3130_v0 }
 0x1dc   : > { %v739_v32 = vpop.f32.mrf.mxu0  ;;  %v1188_v33 = vpop.f32.mrf.mxu1 }
 0x1dd   : > { %2560 = vst [vmem:[%s3499_s19 + $0xb88] sm:$0xff] %v739_v32  ;;  %2562 = vst [vmem:[%s3499_s19 + $0xb98] sm:$0xff] %v1188_v33  ;;  %v2962_v33 = vld [vmem:[#allocation2 + $0x158] sm:$0xff] }
 0x1de   : > { %v743_v34 = vpop.f32.mrf.mxu0  ;;  %v1192_v35 = vpop.f32.mrf.mxu1  ;;  %1544 = vmatmul.mubr.f32.gmra.mxu0 %v2950_v36  ;;  %1993 = vmatmul.mubr.f32.gmra.mxu1 %v2950_v36 }
 0x1df   : > { %2567 = vst [vmem:[%s3499_s19 + $0xbc0] sm:$0xff] %v743_v34  ;;  %2569 = vst [vmem:[%s3499_s19 + $0xbd0] sm:$0xff] %v1192_v35  ;;  %1549 = vmatprep.mubr.f32.mxu0 %v3130_v0  ;;  %1998 = vmatprep.mubr.f32.mxu1 %v3130_v0 }
 0x1e0   : > { %v745_v37 = vpop.f32.mrf.mxu0  ;;  %v1194_v38 = vpop.f32.mrf.mxu1 }
 0x1e1   : > { %2568 = vst [vmem:[%s3499_s19 + $0xbc8] sm:$0xff] %v745_v37  ;;  %2570 = vst [vmem:[%s3499_s19 + $0xbd8] sm:$0xff] %v1194_v38  ;;  %v2963_v38 = vld [vmem:[#allocation2 + $0x160] sm:$0xff] }
 0x1e2   : > { %v749_v39 = vpop.f32.mrf.mxu0  ;;  %v1198_v40 = vpop.f32.mrf.mxu1  ;;  %1550 = vmatmul.mubr.f32.gmra.mxu0 %v2951_v41  ;;  %1999 = vmatmul.mubr.f32.gmra.mxu1 %v2951_v41 }
 0x1e3   : > { %2575 = vst [vmem:[%s3499_s19 + $0xc00] sm:$0xff] %v749_v39  ;;  %2577 = vst [vmem:[%s3499_s19 + $0xc10] sm:$0xff] %v1198_v40  ;;  %1555 = vmatprep.mubr.f32.mxu0 %v3130_v0  ;;  %2004 = vmatprep.mubr.f32.mxu1 %v3130_v0 }
 0x1e4   : > { %v751_v42 = vpop.f32.mrf.mxu0  ;;  %v1200_v43 = vpop.f32.mrf.mxu1 }
 0x1e5   : > { %2576 = vst [vmem:[%s3499_s19 + $0xc08] sm:$0xff] %v751_v42  ;;  %2578 = vst [vmem:[%s3499_s19 + $0xc18] sm:$0xff] %v1200_v43  ;;  %v2964_v43 = vld [vmem:[#allocation2 + $0x168] sm:$0xff] }
 0x1e6   : > { %v755_v44 = vpop.f32.mrf.mxu0  ;;  %v1204_v45 = vpop.f32.mrf.mxu1  ;;  %1556 = vmatmul.mubr.f32.gmra.mxu0 %v2952_v46  ;;  %2005 = vmatmul.mubr.f32.gmra.mxu1 %v2952_v46 }
 0x1e7   : > { %2583 = vst [vmem:[%s3499_s19 + $0xc40] sm:$0xff] %v755_v44  ;;  %2585 = vst [vmem:[%s3499_s19 + $0xc50] sm:$0xff] %v1204_v45  ;;  %1561 = vmatprep.mubr.f32.mxu0 %v3130_v0  ;;  %2010 = vmatprep.mubr.f32.mxu1 %v3130_v0 }
 0x1e8   : > { %v757_v47 = vpop.f32.mrf.mxu0  ;;  %v1206_v48 = vpop.f32.mrf.mxu1 }
 0x1e9   : > { %2584 = vst [vmem:[%s3499_s19 + $0xc48] sm:$0xff] %v757_v47  ;;  %2586 = vst [vmem:[%s3499_s19 + $0xc58] sm:$0xff] %v1206_v48  ;;  %v2965_v48 = vld [vmem:[#allocation2 + $0x170] sm:$0xff] }
 0x1ea   : > { %v761_v49 = vpop.f32.mrf.mxu0  ;;  %v1210_v50 = vpop.f32.mrf.mxu1  ;;  %1562 = vmatmul.mubr.f32.gmra.mxu0 %v2953_v51  ;;  %2011 = vmatmul.mubr.f32.gmra.mxu1 %v2953_v51 }
 0x1eb   : > { %2591 = vst [vmem:[%s3499_s19 + $0xc80] sm:$0xff] %v761_v49  ;;  %2593 = vst [vmem:[%s3499_s19 + $0xc90] sm:$0xff] %v1210_v50  ;;  %1567 = vmatprep.mubr.f32.mxu0 %v3130_v0  ;;  %2016 = vmatprep.mubr.f32.mxu1 %v3130_v0 }
 0x1ec   : > { %v763_v52 = vpop.f32.mrf.mxu0  ;;  %v1212_v53 = vpop.f32.mrf.mxu1 }
 0x1ed   : > { %2592 = vst [vmem:[%s3499_s19 + $0xc88] sm:$0xff] %v763_v52  ;;  %2594 = vst [vmem:[%s3499_s19 + $0xc98] sm:$0xff] %v1212_v53  ;;  %v2966_v53 = vld [vmem:[#allocation2 + $0x178] sm:$0xff] }
 0x1ee   : > { %v767_v54 = vpop.f32.mrf.mxu0  ;;  %v1216_v55 = vpop.f32.mrf.mxu1  ;;  %1568 = vmatmul.mubr.f32.gmra.mxu0 %v2954_v56  ;;  %2017 = vmatmul.mubr.f32.gmra.mxu1 %v2954_v56 }
 0x1ef   : > { %2599 = vst [vmem:[%s3499_s19 + $0xcc0] sm:$0xff] %v767_v54  ;;  %2601 = vst [vmem:[%s3499_s19 + $0xcd0] sm:$0xff] %v1216_v55  ;;  %1573 = vmatprep.mubr.f32.mxu0 %v3130_v0  ;;  %2022 = vmatprep.mubr.f32.mxu1 %v3130_v0 }
 0x1f0   : > { %v769_v57 = vpop.f32.mrf.mxu0  ;;  %v1218_v58 = vpop.f32.mrf.mxu1 }
 0x1f1   : > { %2600 = vst [vmem:[%s3499_s19 + $0xcc8] sm:$0xff] %v769_v57  ;;  %2602 = vst [vmem:[%s3499_s19 + $0xcd8] sm:$0xff] %v1218_v58  ;;  %v2967_v57 = vld [vmem:[#allocation2 + $0x180] sm:$0xff] }
 0x1f2   : > { %v773_v59 = vpop.f32.mrf.mxu0  ;;  %v1222_v60 = vpop.f32.mrf.mxu1  ;;  %1574 = vmatmul.mubr.f32.gmra.mxu0 %v2955_v61  ;;  %2023 = vmatmul.mubr.f32.gmra.mxu1 %v2955_v61 }
 0x1f3   : > { %2607 = vst [vmem:[%s3499_s19 + $0xd00] sm:$0xff] %v773_v59  ;;  %2609 = vst [vmem:[%s3499_s19 + $0xd10] sm:$0xff] %v1222_v60  ;;  %1579 = vmatprep.mubr.f32.mxu0 %v3130_v0  ;;  %2028 = vmatprep.mubr.f32.mxu1 %v3130_v0 }
 0x1f4   : > { %v775_v62 = vpop.f32.mrf.mxu0  ;;  %v1224_v63 = vpop.f32.mrf.mxu1 }
 0x1f5   : > { %2608 = vst [vmem:[%s3499_s19 + $0xd08] sm:$0xff] %v775_v62  ;;  %2610 = vst [vmem:[%s3499_s19 + $0xd18] sm:$0xff] %v1224_v63  ;;  %v2968_v62 = vld [vmem:[#allocation2 + $0x188] sm:$0xff] }
 0x1f6   : > { %v779_v1 = vpop.f32.mrf.mxu0  ;;  %v1228_v2 = vpop.f32.mrf.mxu1  ;;  %1580 = vmatmul.mubr.f32.gmra.mxu0 %v2956_v3  ;;  %2029 = vmatmul.mubr.f32.gmra.mxu1 %v2956_v3 }
 0x1f7   : > { %2615 = vst [vmem:[%s3499_s19 + $0xd40] sm:$0xff] %v779_v1  ;;  %2617 = vst [vmem:[%s3499_s19 + $0xd50] sm:$0xff] %v1228_v2  ;;  %1585 = vmatprep.mubr.f32.mxu0 %v3130_v0  ;;  %2034 = vmatprep.mubr.f32.mxu1 %v3130_v0 }
 0x1f8   : > { %v781_v4 = vpop.f32.mrf.mxu0  ;;  %v1230_v5 = vpop.f32.mrf.mxu1 }
 0x1f9   : > { %2616 = vst [vmem:[%s3499_s19 + $0xd48] sm:$0xff] %v781_v4  ;;  %2618 = vst [vmem:[%s3499_s19 + $0xd58] sm:$0xff] %v1230_v5  ;;  %v2969_v4 = vld [vmem:[#allocation2 + $0x190] sm:$0xff] }
 0x1fa   : > { %v785_v6 = vpop.f32.mrf.mxu0  ;;  %v1234_v7 = vpop.f32.mrf.mxu1  ;;  %1586 = vmatmul.mubr.f32.gmra.mxu0 %v2957_v8  ;;  %2035 = vmatmul.mubr.f32.gmra.mxu1 %v2957_v8 }
 0x1fb   : > { %2623 = vst [vmem:[%s3499_s19 + $0xd80] sm:$0xff] %v785_v6  ;;  %2625 = vst [vmem:[%s3499_s19 + $0xd90] sm:$0xff] %v1234_v7  ;;  %1591 = vmatprep.mubr.f32.mxu0 %v3130_v0  ;;  %2040 = vmatprep.mubr.f32.mxu1 %v3130_v0 }
 0x1fc   : > { %v787_v9 = vpop.f32.mrf.mxu0  ;;  %v1236_v10 = vpop.f32.mrf.mxu1 }
 0x1fd   : > { %2624 = vst [vmem:[%s3499_s19 + $0xd88] sm:$0xff] %v787_v9  ;;  %2626 = vst [vmem:[%s3499_s19 + $0xd98] sm:$0xff] %v1236_v10  ;;  %v2970_v9 = vld [vmem:[#allocation2 + $0x198] sm:$0xff] }
 0x1fe   : > { %v791_v11 = vpop.f32.mrf.mxu0  ;;  %v1240_v12 = vpop.f32.mrf.mxu1  ;;  %1592 = vmatmul.mubr.f32.gmra.mxu0 %v2958_v13  ;;  %2041 = vmatmul.mubr.f32.gmra.mxu1 %v2958_v13 }
 0x1ff   : > { %2631 = vst [vmem:[%s3499_s19 + $0xdc0] sm:$0xff] %v791_v11  ;;  %2633 = vst [vmem:[%s3499_s19 + $0xdd0] sm:$0xff] %v1240_v12  ;;  %1597 = vmatprep.mubr.f32.mxu0 %v3130_v0  ;;  %2046 = vmatprep.mubr.f32.mxu1 %v3130_v0 }
 0x200   : > { %v793_v14 = vpop.f32.mrf.mxu0  ;;  %v1242_v15 = vpop.f32.mrf.mxu1 }
 0x201   : > { %2632 = vst [vmem:[%s3499_s19 + $0xdc8] sm:$0xff] %v793_v14  ;;  %2634 = vst [vmem:[%s3499_s19 + $0xdd8] sm:$0xff] %v1242_v15  ;;  %v2971_v14 = vld [vmem:[#allocation2 + $0x1a0] sm:$0xff] }
 0x202   : > { %v797_v16 = vpop.f32.mrf.mxu0  ;;  %v1246_v17 = vpop.f32.mrf.mxu1  ;;  %1598 = vmatmul.mubr.f32.gmra.mxu0 %v2959_v18  ;;  %2047 = vmatmul.mubr.f32.gmra.mxu1 %v2959_v18 }
 0x203   : > { %2639 = vst [vmem:[%s3499_s19 + $0xe00] sm:$0xff] %v797_v16  ;;  %2641 = vst [vmem:[%s3499_s19 + $0xe10] sm:$0xff] %v1246_v17  ;;  %1603 = vmatprep.mubr.f32.mxu0 %v3130_v0  ;;  %2052 = vmatprep.mubr.f32.mxu1 %v3130_v0 }
 0x204   : > { %v799_v19 = vpop.f32.mrf.mxu0  ;;  %v1248_v20 = vpop.f32.mrf.mxu1 }
 0x205   : > { %2640 = vst [vmem:[%s3499_s19 + $0xe08] sm:$0xff] %v799_v19  ;;  %2642 = vst [vmem:[%s3499_s19 + $0xe18] sm:$0xff] %v1248_v20  ;;  %v2972_v19 = vld [vmem:[#allocation2 + $0x1a8] sm:$0xff] }
 0x206   : > { %v803_v21 = vpop.f32.mrf.mxu0  ;;  %v1252_v22 = vpop.f32.mrf.mxu1  ;;  %1604 = vmatmul.mubr.f32.gmra.mxu0 %v2960_v23  ;;  %2053 = vmatmul.mubr.f32.gmra.mxu1 %v2960_v23 }
 0x207   : > { %2647 = vst [vmem:[%s3499_s19 + $0xe40] sm:$0xff] %v803_v21  ;;  %2649 = vst [vmem:[%s3499_s19 + $0xe50] sm:$0xff] %v1252_v22  ;;  %1609 = vmatprep.mubr.f32.mxu0 %v3130_v0  ;;  %2058 = vmatprep.mubr.f32.mxu1 %v3130_v0 }
 0x208   : > { %v805_v24 = vpop.f32.mrf.mxu0  ;;  %v1254_v25 = vpop.f32.mrf.mxu1 }
 0x209   : > { %2648 = vst [vmem:[%s3499_s19 + $0xe48] sm:$0xff] %v805_v24  ;;  %2650 = vst [vmem:[%s3499_s19 + $0xe58] sm:$0xff] %v1254_v25  ;;  %v2973_v24 = vld [vmem:[#allocation2 + $0x1b0] sm:$0xff] }
 0x20a   : > { %v809_v26 = vpop.f32.mrf.mxu0  ;;  %v1258_v27 = vpop.f32.mrf.mxu1  ;;  %1610 = vmatmul.mubr.f32.gmra.mxu0 %v2961_v28  ;;  %2059 = vmatmul.mubr.f32.gmra.mxu1 %v2961_v28 }
 0x20b   : > { %2655 = vst [vmem:[%s3499_s19 + $0xe80] sm:$0xff] %v809_v26  ;;  %2657 = vst [vmem:[%s3499_s19 + $0xe90] sm:$0xff] %v1258_v27  ;;  %1615 = vmatprep.mubr.f32.mxu0 %v3130_v0  ;;  %2064 = vmatprep.mubr.f32.mxu1 %v3130_v0 }
 0x20c   : > { %v811_v29 = vpop.f32.mrf.mxu0  ;;  %v1260_v30 = vpop.f32.mrf.mxu1 }
 0x20d   : > { %2656 = vst [vmem:[%s3499_s19 + $0xe88] sm:$0xff] %v811_v29  ;;  %2658 = vst [vmem:[%s3499_s19 + $0xe98] sm:$0xff] %v1260_v30  ;;  %v2974_v29 = vld [vmem:[#allocation2 + $0x1b8] sm:$0xff] }
 0x20e   : > { %v815_v31 = vpop.f32.mrf.mxu0  ;;  %v1264_v32 = vpop.f32.mrf.mxu1  ;;  %1616 = vmatmul.mubr.f32.gmra.mxu0 %v2962_v33  ;;  %2065 = vmatmul.mubr.f32.gmra.mxu1 %v2962_v33 }
 0x20f   : > { %2663 = vst [vmem:[%s3499_s19 + $0xec0] sm:$0xff] %v815_v31  ;;  %2665 = vst [vmem:[%s3499_s19 + $0xed0] sm:$0xff] %v1264_v32  ;;  %1621 = vmatprep.mubr.f32.mxu0 %v3130_v0  ;;  %2070 = vmatprep.mubr.f32.mxu1 %v3130_v0 }
 0x210   : > { %v817_v34 = vpop.f32.mrf.mxu0  ;;  %v1266_v35 = vpop.f32.mrf.mxu1 }
 0x211   : > { %2664 = vst [vmem:[%s3499_s19 + $0xec8] sm:$0xff] %v817_v34  ;;  %2666 = vst [vmem:[%s3499_s19 + $0xed8] sm:$0xff] %v1266_v35  ;;  %v2975_v34 = vld [vmem:[#allocation2 + $0x1c0] sm:$0xff] }
 0x212   : > { %v821_v36 = vpop.f32.mrf.mxu0  ;;  %v1270_v37 = vpop.f32.mrf.mxu1  ;;  %1622 = vmatmul.mubr.f32.gmra.mxu0 %v2963_v38  ;;  %2071 = vmatmul.mubr.f32.gmra.mxu1 %v2963_v38 }
 0x213   : > { %2671 = vst [vmem:[%s3499_s19 + $0xf00] sm:$0xff] %v821_v36  ;;  %2673 = vst [vmem:[%s3499_s19 + $0xf10] sm:$0xff] %v1270_v37  ;;  %1627 = vmatprep.mubr.f32.mxu0 %v3130_v0  ;;  %2076 = vmatprep.mubr.f32.mxu1 %v3130_v0 }
 0x214   : > { %v823_v39 = vpop.f32.mrf.mxu0  ;;  %v1272_v40 = vpop.f32.mrf.mxu1 }
 0x215   : > { %2672 = vst [vmem:[%s3499_s19 + $0xf08] sm:$0xff] %v823_v39  ;;  %2674 = vst [vmem:[%s3499_s19 + $0xf18] sm:$0xff] %v1272_v40  ;;  %v2976_v39 = vld [vmem:[#allocation2 + $0x1c8] sm:$0xff] }
 0x216   : > { %v827_v41 = vpop.f32.mrf.mxu0  ;;  %v1276_v42 = vpop.f32.mrf.mxu1  ;;  %1628 = vmatmul.mubr.f32.gmra.mxu0 %v2964_v43  ;;  %2077 = vmatmul.mubr.f32.gmra.mxu1 %v2964_v43 }
 0x217   : > { %2679 = vst [vmem:[%s3499_s19 + $0xf40] sm:$0xff] %v827_v41  ;;  %2681 = vst [vmem:[%s3499_s19 + $0xf50] sm:$0xff] %v1276_v42  ;;  %1633 = vmatprep.mubr.f32.mxu0 %v3130_v0  ;;  %2082 = vmatprep.mubr.f32.mxu1 %v3130_v0 }
 0x218   : > { %v829_v44 = vpop.f32.mrf.mxu0  ;;  %v1278_v45 = vpop.f32.mrf.mxu1 }
 0x219   : > { %2680 = vst [vmem:[%s3499_s19 + $0xf48] sm:$0xff] %v829_v44  ;;  %2682 = vst [vmem:[%s3499_s19 + $0xf58] sm:$0xff] %v1278_v45  ;;  %v2977_v44 = vld [vmem:[#allocation2 + $0x1d0] sm:$0xff] }
 0x21a   : > { %v833_v46 = vpop.f32.mrf.mxu0  ;;  %v1282_v47 = vpop.f32.mrf.mxu1  ;;  %1634 = vmatmul.mubr.f32.gmra.mxu0 %v2965_v48  ;;  %2083 = vmatmul.mubr.f32.gmra.mxu1 %v2965_v48 }
 0x21b   : > { %2687 = vst [vmem:[%s3499_s19 + $0xf80] sm:$0xff] %v833_v46  ;;  %2689 = vst [vmem:[%s3499_s19 + $0xf90] sm:$0xff] %v1282_v47  ;;  %1639 = vmatprep.mubr.f32.mxu0 %v3130_v0  ;;  %2088 = vmatprep.mubr.f32.mxu1 %v3130_v0 }
 0x21c   : > { %v835_v49 = vpop.f32.mrf.mxu0  ;;  %v1284_v50 = vpop.f32.mrf.mxu1 }
 0x21d   : > { %2688 = vst [vmem:[%s3499_s19 + $0xf88] sm:$0xff] %v835_v49  ;;  %2690 = vst [vmem:[%s3499_s19 + $0xf98] sm:$0xff] %v1284_v50  ;;  %v2978_v49 = vld [vmem:[#allocation2 + $0x1d8] sm:$0xff] }
 0x21e   : > { %v839_v51 = vpop.f32.mrf.mxu0  ;;  %v1288_v52 = vpop.f32.mrf.mxu1  ;;  %1640 = vmatmul.mubr.f32.gmra.mxu0 %v2966_v53  ;;  %2089 = vmatmul.mubr.f32.gmra.mxu1 %v2966_v53 }
 0x21f   : > { %2695 = vst [vmem:[%s3499_s19 + $0xfc0] sm:$0xff] %v839_v51  ;;  %2697 = vst [vmem:[%s3499_s19 + $0xfd0] sm:$0xff] %v1288_v52  ;;  %1645 = vmatprep.mubr.f32.mxu0 %v3130_v0  ;;  %2094 = vmatprep.mubr.f32.mxu1 %v3130_v0 }
 0x220   : > { %v841_v54 = vpop.f32.mrf.mxu0  ;;  %v1290_v55 = vpop.f32.mrf.mxu1 }
 0x221   : > { %2696 = vst [vmem:[%s3499_s19 + $0xfc8] sm:$0xff] %v841_v54  ;;  %2698 = vst [vmem:[%s3499_s19 + $0xfd8] sm:$0xff] %v1290_v55  ;;  %v2979_v54 = vld [vmem:[#allocation2 + $0x1e0] sm:$0xff] }
 0x222   : > { %v1359_v56 = vpop.f32.mrf.mxu0  ;;  %1646 = vmatmul.mubr.f32.gmra.mxu0 %v2967_v57  ;;  %v1808_v58 = vpop.f32.mrf.mxu1  ;;  %2095 = vmatmul.mubr.f32.gmra.mxu1 %v2967_v57 }
 0x223   : > { %2195 = vst [vmem:[%s3499_s19 + $0x20] sm:$0xff] %v1359_v56  ;;  %2197 = vst [vmem:[%s3499_s19 + $0x30] sm:$0xff] %v1808_v58  ;;  %1651 = vmatprep.mubr.f32.mxu0 %v3130_v0  ;;  %2100 = vmatprep.mubr.f32.mxu1 %v3130_v0 }
 0x224   : > { %v1361_v59 = vpop.f32.mrf.mxu0  ;;  %v1810_v60 = vpop.f32.mrf.mxu1 }
 0x225   : > { %2196 = vst [vmem:[%s3499_s19 + $0x28] sm:$0xff] %v1361_v59  ;;  %2198 = vst [vmem:[%s3499_s19 + $0x38] sm:$0xff] %v1810_v60  ;;  %v2980_v59 = vld [vmem:[#allocation2 + $0x1e8] sm:$0xff] }
 0x226   : > { %v1365_v61 = vpop.f32.mrf.mxu0  ;;  %1652 = vmatmul.mubr.f32.gmra.mxu0 %v2968_v62  ;;  %v1814_v63 = vpop.f32.mrf.mxu1  ;;  %2101 = vmatmul.mubr.f32.gmra.mxu1 %v2968_v62 }
 0x227   : > { %2203 = vst [vmem:[%s3499_s19 + $0x60] sm:$0xff] %v1365_v61  ;;  %2205 = vst [vmem:[%s3499_s19 + $0x70] sm:$0xff] %v1814_v63  ;;  %1657 = vmatprep.mubr.f32.mxu0 %v3130_v0  ;;  %2106 = vmatprep.mubr.f32.mxu1 %v3130_v0 }
 0x228   : > { %v1367_v1 = vpop.f32.mrf.mxu0  ;;  %v1816_v2 = vpop.f32.mrf.mxu1 }
 0x229   : > { %2204 = vst [vmem:[%s3499_s19 + $0x68] sm:$0xff] %v1367_v1  ;;  %2206 = vst [vmem:[%s3499_s19 + $0x78] sm:$0xff] %v1816_v2  ;;  %v2981_v1 = vld [vmem:[#allocation2 + $0x1f0] sm:$0xff] }
 0x22a   : > { %v1371_v3 = vpop.f32.mrf.mxu0  ;;  %1658 = vmatmul.mubr.f32.gmra.mxu0 %v2969_v4  ;;  %v1820_v5 = vpop.f32.mrf.mxu1  ;;  %2107 = vmatmul.mubr.f32.gmra.mxu1 %v2969_v4 }
 0x22b   : > { %2211 = vst [vmem:[%s3499_s19 + $0xa0] sm:$0xff] %v1371_v3  ;;  %2213 = vst [vmem:[%s3499_s19 + $0xb0] sm:$0xff] %v1820_v5  ;;  %1663 = vmatprep.mubr.f32.mxu0 %v3130_v0  ;;  %2112 = vmatprep.mubr.f32.mxu1 %v3130_v0 }
 0x22c   : > { %v1373_v6 = vpop.f32.mrf.mxu0  ;;  %v1822_v7 = vpop.f32.mrf.mxu1 }
 0x22d   : > { %2212 = vst [vmem:[%s3499_s19 + $0xa8] sm:$0xff] %v1373_v6  ;;  %2214 = vst [vmem:[%s3499_s19 + $0xb8] sm:$0xff] %v1822_v7  ;;  %v2982_v6 = vld [vmem:[#allocation2 + $0x1f8] sm:$0xff] }
 0x22e   : > { %v1377_v8 = vpop.f32.mrf.mxu0  ;;  %1664 = vmatmul.mubr.f32.gmra.mxu0 %v2970_v9  ;;  %v1826_v10 = vpop.f32.mrf.mxu1  ;;  %2113 = vmatmul.mubr.f32.gmra.mxu1 %v2970_v9 }
 0x22f   : > { %2219 = vst [vmem:[%s3499_s19 + $0xe0] sm:$0xff] %v1377_v8  ;;  %2221 = vst [vmem:[%s3499_s19 + $0xf0] sm:$0xff] %v1826_v10  ;;  %1669 = vmatprep.mubr.f32.mxu0 %v3130_v0  ;;  %2118 = vmatprep.mubr.f32.mxu1 %v3130_v0 }
 0x230   : > { %v1379_v11 = vpop.f32.mrf.mxu0  ;;  %v1828_v12 = vpop.f32.mrf.mxu1 }
 0x231   : > { %2220 = vst [vmem:[%s3499_s19 + $0xe8] sm:$0xff] %v1379_v11  ;;  %2222 = vst [vmem:[%s3499_s19 + $0xf8] sm:$0xff] %v1828_v12 }
 0x232   : > { %v1383_v13 = vpop.f32.mrf.mxu0  ;;  %1670 = vmatmul.mubr.f32.gmra.mxu0 %v2971_v14  ;;  %v1832_v15 = vpop.f32.mrf.mxu1  ;;  %2119 = vmatmul.mubr.f32.gmra.mxu1 %v2971_v14 }
 0x233   : > { %2227 = vst [vmem:[%s3499_s19 + $0x120] sm:$0xff] %v1383_v13  ;;  %2229 = vst [vmem:[%s3499_s19 + $0x130] sm:$0xff] %v1832_v15  ;;  %1675 = vmatprep.mubr.f32.mxu0 %v3130_v0  ;;  %2124 = vmatprep.mubr.f32.mxu1 %v3130_v0 }
 0x234   : > { %v1385_v16 = vpop.f32.mrf.mxu0  ;;  %v1834_v17 = vpop.f32.mrf.mxu1 }
 0x235   : > { %2228 = vst [vmem:[%s3499_s19 + $0x128] sm:$0xff] %v1385_v16  ;;  %2230 = vst [vmem:[%s3499_s19 + $0x138] sm:$0xff] %v1834_v17 }
 0x236   : > { %v1389_v18 = vpop.f32.mrf.mxu0  ;;  %1676 = vmatmul.mubr.f32.gmra.mxu0 %v2972_v19  ;;  %v1838_v20 = vpop.f32.mrf.mxu1  ;;  %2125 = vmatmul.mubr.f32.gmra.mxu1 %v2972_v19 }
 0x237   : > { %2235 = vst [vmem:[%s3499_s19 + $0x160] sm:$0xff] %v1389_v18  ;;  %2237 = vst [vmem:[%s3499_s19 + $0x170] sm:$0xff] %v1838_v20  ;;  %1681 = vmatprep.mubr.f32.mxu0 %v3130_v0  ;;  %2130 = vmatprep.mubr.f32.mxu1 %v3130_v0 }
 0x238   : > { %v1391_v21 = vpop.f32.mrf.mxu0  ;;  %v1840_v22 = vpop.f32.mrf.mxu1 }
 0x239   : > { %2236 = vst [vmem:[%s3499_s19 + $0x168] sm:$0xff] %v1391_v21  ;;  %2238 = vst [vmem:[%s3499_s19 + $0x178] sm:$0xff] %v1840_v22 }
 0x23a   : > { %v1395_v23 = vpop.f32.mrf.mxu0  ;;  %1682 = vmatmul.mubr.f32.gmra.mxu0 %v2973_v24  ;;  %v1844_v25 = vpop.f32.mrf.mxu1  ;;  %2131 = vmatmul.mubr.f32.gmra.mxu1 %v2973_v24 }
 0x23b   : > { %2243 = vst [vmem:[%s3499_s19 + $0x1a0] sm:$0xff] %v1395_v23  ;;  %2245 = vst [vmem:[%s3499_s19 + $0x1b0] sm:$0xff] %v1844_v25  ;;  %1687 = vmatprep.mubr.f32.mxu0 %v3130_v0  ;;  %2136 = vmatprep.mubr.f32.mxu1 %v3130_v0 }
 0x23c   : > { %v1397_v26 = vpop.f32.mrf.mxu0  ;;  %v1846_v27 = vpop.f32.mrf.mxu1 }
 0x23d   : > { %2244 = vst [vmem:[%s3499_s19 + $0x1a8] sm:$0xff] %v1397_v26  ;;  %2246 = vst [vmem:[%s3499_s19 + $0x1b8] sm:$0xff] %v1846_v27 }
 0x23e   : > { %v1401_v28 = vpop.f32.mrf.mxu0  ;;  %1688 = vmatmul.mubr.f32.gmra.mxu0 %v2974_v29  ;;  %v1850_v30 = vpop.f32.mrf.mxu1  ;;  %2137 = vmatmul.mubr.f32.gmra.mxu1 %v2974_v29 }
 0x23f   : > { %2251 = vst [vmem:[%s3499_s19 + $0x1e0] sm:$0xff] %v1401_v28  ;;  %2253 = vst [vmem:[%s3499_s19 + $0x1f0] sm:$0xff] %v1850_v30  ;;  %1693 = vmatprep.mubr.f32.mxu0 %v3130_v0  ;;  %2142 = vmatprep.mubr.f32.mxu1 %v3130_v0 }
 0x240   : > { %v1403_v31 = vpop.f32.mrf.mxu0  ;;  %v1852_v32 = vpop.f32.mrf.mxu1 }
 0x241   : > { %2252 = vst [vmem:[%s3499_s19 + $0x1e8] sm:$0xff] %v1403_v31  ;;  %2254 = vst [vmem:[%s3499_s19 + $0x1f8] sm:$0xff] %v1852_v32 }
 0x242   : > { %v1407_v33 = vpop.f32.mrf.mxu0  ;;  %1694 = vmatmul.mubr.f32.gmra.mxu0 %v2975_v34  ;;  %v1856_v35 = vpop.f32.mrf.mxu1  ;;  %2143 = vmatmul.mubr.f32.gmra.mxu1 %v2975_v34 }
 0x243   : > { %2259 = vst [vmem:[%s3499_s19 + $0x220] sm:$0xff] %v1407_v33  ;;  %2261 = vst [vmem:[%s3499_s19 + $0x230] sm:$0xff] %v1856_v35  ;;  %1699 = vmatprep.mubr.f32.mxu0 %v3130_v0  ;;  %2148 = vmatprep.mubr.f32.mxu1 %v3130_v0 }
 0x244   : > { %v1409_v36 = vpop.f32.mrf.mxu0  ;;  %v1858_v37 = vpop.f32.mrf.mxu1 }
 0x245   : > { %2260 = vst [vmem:[%s3499_s19 + $0x228] sm:$0xff] %v1409_v36  ;;  %2262 = vst [vmem:[%s3499_s19 + $0x238] sm:$0xff] %v1858_v37 }
 0x246   : > { %v1413_v38 = vpop.f32.mrf.mxu0  ;;  %1700 = vmatmul.mubr.f32.gmra.mxu0 %v2976_v39  ;;  %v1862_v40 = vpop.f32.mrf.mxu1  ;;  %2149 = vmatmul.mubr.f32.gmra.mxu1 %v2976_v39 }
 0x247   : > { %2267 = vst [vmem:[%s3499_s19 + $0x260] sm:$0xff] %v1413_v38  ;;  %2269 = vst [vmem:[%s3499_s19 + $0x270] sm:$0xff] %v1862_v40  ;;  %1705 = vmatprep.mubr.f32.mxu0 %v3130_v0  ;;  %2154 = vmatprep.mubr.f32.mxu1 %v3130_v0 }
 0x248   : > { %v1415_v41 = vpop.f32.mrf.mxu0  ;;  %v1864_v42 = vpop.f32.mrf.mxu1 }
 0x249   : > { %2268 = vst [vmem:[%s3499_s19 + $0x268] sm:$0xff] %v1415_v41  ;;  %2270 = vst [vmem:[%s3499_s19 + $0x278] sm:$0xff] %v1864_v42 }
 0x24a   : > { %v1419_v43 = vpop.f32.mrf.mxu0  ;;  %1706 = vmatmul.mubr.f32.gmra.mxu0 %v2977_v44  ;;  %v1868_v45 = vpop.f32.mrf.mxu1  ;;  %2155 = vmatmul.mubr.f32.gmra.mxu1 %v2977_v44 }
 0x24b   : > { %2275 = vst [vmem:[%s3499_s19 + $0x2a0] sm:$0xff] %v1419_v43  ;;  %2277 = vst [vmem:[%s3499_s19 + $0x2b0] sm:$0xff] %v1868_v45  ;;  %1711 = vmatprep.mubr.f32.mxu0 %v3130_v0  ;;  %2160 = vmatprep.mubr.f32.mxu1 %v3130_v0 }
 0x24c   : > { %v1421_v46 = vpop.f32.mrf.mxu0  ;;  %v1870_v47 = vpop.f32.mrf.mxu1 }
 0x24d   : > { %2276 = vst [vmem:[%s3499_s19 + $0x2a8] sm:$0xff] %v1421_v46  ;;  %2278 = vst [vmem:[%s3499_s19 + $0x2b8] sm:$0xff] %v1870_v47 }
 0x24e   : > { %v1425_v48 = vpop.f32.mrf.mxu0  ;;  %1712 = vmatmul.mubr.f32.gmra.mxu0 %v2978_v49  ;;  %v1874_v50 = vpop.f32.mrf.mxu1  ;;  %2161 = vmatmul.mubr.f32.gmra.mxu1 %v2978_v49 }
 0x24f   : > { %2283 = vst [vmem:[%s3499_s19 + $0x2e0] sm:$0xff] %v1425_v48  ;;  %2285 = vst [vmem:[%s3499_s19 + $0x2f0] sm:$0xff] %v1874_v50  ;;  %1717 = vmatprep.mubr.f32.mxu0 %v3130_v0  ;;  %2166 = vmatprep.mubr.f32.mxu1 %v3130_v0 }
 0x250   : > { %v1427_v51 = vpop.f32.mrf.mxu0  ;;  %v1876_v52 = vpop.f32.mrf.mxu1 }
 0x251   : > { %2284 = vst [vmem:[%s3499_s19 + $0x2e8] sm:$0xff] %v1427_v51  ;;  %2286 = vst [vmem:[%s3499_s19 + $0x2f8] sm:$0xff] %v1876_v52 }
 0x252   : > { %v1431_v53 = vpop.f32.mrf.mxu0  ;;  %1718 = vmatmul.mubr.f32.gmra.mxu0 %v2979_v54  ;;  %v1880_v55 = vpop.f32.mrf.mxu1  ;;  %2167 = vmatmul.mubr.f32.gmra.mxu1 %v2979_v54 }
 0x253   : > { %2291 = vst [vmem:[%s3499_s19 + $0x320] sm:$0xff] %v1431_v53  ;;  %2293 = vst [vmem:[%s3499_s19 + $0x330] sm:$0xff] %v1880_v55  ;;  %1723 = vmatprep.mubr.f32.mxu0 %v3130_v0  ;;  %2172 = vmatprep.mubr.f32.mxu1 %v3130_v0 }
 0x254   : > { %v1433_v56 = vpop.f32.mrf.mxu0  ;;  %v1882_v57 = vpop.f32.mrf.mxu1 }
 0x255   : > { %2292 = vst [vmem:[%s3499_s19 + $0x328] sm:$0xff] %v1433_v56  ;;  %2294 = vst [vmem:[%s3499_s19 + $0x338] sm:$0xff] %v1882_v57 }
 0x256   : > { %v1437_v58 = vpop.f32.mrf.mxu0  ;;  %1724 = vmatmul.mubr.f32.gmra.mxu0 %v2980_v59  ;;  %v1886_v60 = vpop.f32.mrf.mxu1  ;;  %2173 = vmatmul.mubr.f32.gmra.mxu1 %v2980_v59 }
 0x257   : > { %2299 = vst [vmem:[%s3499_s19 + $0x360] sm:$0xff] %v1437_v58  ;;  %2301 = vst [vmem:[%s3499_s19 + $0x370] sm:$0xff] %v1886_v60  ;;  %1729 = vmatprep.mubr.f32.mxu0 %v3130_v0  ;;  %2178 = vmatprep.mubr.f32.mxu1 %v3130_v0 }
 0x258   : > { %v1439_v61 = vpop.f32.mrf.mxu0  ;;  %v1888_v62 = vpop.f32.mrf.mxu1 }
 0x259   : > { %2300 = vst [vmem:[%s3499_s19 + $0x368] sm:$0xff] %v1439_v61  ;;  %2302 = vst [vmem:[%s3499_s19 + $0x378] sm:$0xff] %v1888_v62 }
 0x25a   : > { %v1443_v63 = vpop.f32.mrf.mxu0  ;;  %1730 = vmatmul.mubr.f32.gmra.mxu0 %v2981_v1  ;;  %v1892_v2 = vpop.f32.mrf.mxu1  ;;  %2179 = vmatmul.mubr.f32.gmra.mxu1 %v2981_v1 }
 0x25b   : > { %2307 = vst [vmem:[%s3499_s19 + $0x3a0] sm:$0xff] %v1443_v63  ;;  %2309 = vst [vmem:[%s3499_s19 + $0x3b0] sm:$0xff] %v1892_v2  ;;  %1735 = vmatprep.mubr.f32.mxu0 %v3130_v0  ;;  %2184 = vmatprep.mubr.f32.mxu1 %v3130_v0 }
 0x25c   : > { %v1445_v3 = vpop.f32.mrf.mxu0  ;;  %v1894_v4 = vpop.f32.mrf.mxu1 }
 0x25d   : > { %2308 = vst [vmem:[%s3499_s19 + $0x3a8] sm:$0xff] %v1445_v3  ;;  %2310 = vst [vmem:[%s3499_s19 + $0x3b8] sm:$0xff] %v1894_v4 }
 0x25e   : > { %v1449_v5 = vpop.f32.mrf.mxu0  ;;  %1736 = vmatmul.mubr.f32.gmra.mxu0 %v2982_v6  ;;  %v1898_v7 = vpop.f32.mrf.mxu1  ;;  %2185 = vmatmul.mubr.f32.gmra.mxu1 %v2982_v6 }
 0x25f   : > { %2315 = vst [vmem:[%s3499_s19 + $0x3e0] sm:$0xff] %v1449_v5  ;;  %2317 = vst [vmem:[%s3499_s19 + $0x3f0] sm:$0xff] %v1898_v7 }
 0x260   : > { %v1451_v8 = vpop.f32.mrf.mxu0  ;;  %v1900_v9 = vpop.f32.mrf.mxu1 }
 0x261   : > { %2316 = vst [vmem:[%s3499_s19 + $0x3e8] sm:$0xff] %v1451_v8  ;;  %2318 = vst [vmem:[%s3499_s19 + $0x3f8] sm:$0xff] %v1900_v9 }
 0x262   : > { %v1455_v0 = vpop.f32.mrf.mxu0  ;;  %v1904_v10 = vpop.f32.mrf.mxu1 }
 0x263   : > { %2323 = vst [vmem:[%s3499_s19 + $0x420] sm:$0xff] %v1455_v0  ;;  %2325 = vst [vmem:[%s3499_s19 + $0x430] sm:$0xff] %v1904_v10 }
 0x264   : > { %v1457_v11 = vpop.f32.mrf.mxu0  ;;  %v1906_v12 = vpop.f32.mrf.mxu1 }
 0x265   : > { %2324 = vst [vmem:[%s3499_s19 + $0x428] sm:$0xff] %v1457_v11  ;;  %2326 = vst [vmem:[%s3499_s19 + $0x438] sm:$0xff] %v1906_v12 }
 0x266   : > { %v1461_v13 = vpop.f32.mrf.mxu0  ;;  %v1910_v14 = vpop.f32.mrf.mxu1 }
 0x267   : > { %2331 = vst [vmem:[%s3499_s19 + $0x460] sm:$0xff] %v1461_v13  ;;  %2333 = vst [vmem:[%s3499_s19 + $0x470] sm:$0xff] %v1910_v14 }
 0x268   : > { %v1463_v15 = vpop.f32.mrf.mxu0  ;;  %v1912_v16 = vpop.f32.mrf.mxu1 }
 0x269   : > { %2332 = vst [vmem:[%s3499_s19 + $0x468] sm:$0xff] %v1463_v15  ;;  %2334 = vst [vmem:[%s3499_s19 + $0x478] sm:$0xff] %v1912_v16 }
 0x26a   : > { %v1467_v17 = vpop.f32.mrf.mxu0  ;;  %v1916_v18 = vpop.f32.mrf.mxu1 }
 0x26b   : > { %2339 = vst [vmem:[%s3499_s19 + $0x4a0] sm:$0xff] %v1467_v17  ;;  %2341 = vst [vmem:[%s3499_s19 + $0x4b0] sm:$0xff] %v1916_v18 }
 0x26c   : > { %v1469_v19 = vpop.f32.mrf.mxu0  ;;  %v1918_v20 = vpop.f32.mrf.mxu1 }
 0x26d   : > { %2340 = vst [vmem:[%s3499_s19 + $0x4a8] sm:$0xff] %v1469_v19  ;;  %2342 = vst [vmem:[%s3499_s19 + $0x4b8] sm:$0xff] %v1918_v20 }
 0x26e   : > { %v1473_v21 = vpop.f32.mrf.mxu0  ;;  %v1922_v22 = vpop.f32.mrf.mxu1 }
 0x26f   : > { %2347 = vst [vmem:[%s3499_s19 + $0x4e0] sm:$0xff] %v1473_v21  ;;  %2349 = vst [vmem:[%s3499_s19 + $0x4f0] sm:$0xff] %v1922_v22 }
 0x270   : > { %v1475_v23 = vpop.f32.mrf.mxu0  ;;  %v1924_v24 = vpop.f32.mrf.mxu1 }
 0x271   : > { %2348 = vst [vmem:[%s3499_s19 + $0x4e8] sm:$0xff] %v1475_v23  ;;  %2350 = vst [vmem:[%s3499_s19 + $0x4f8] sm:$0xff] %v1924_v24 }
 0x272   : > { %v1479_v25 = vpop.f32.mrf.mxu0  ;;  %v1928_v26 = vpop.f32.mrf.mxu1 }
 0x273   : > { %2355 = vst [vmem:[%s3499_s19 + $0x520] sm:$0xff] %v1479_v25  ;;  %2357 = vst [vmem:[%s3499_s19 + $0x530] sm:$0xff] %v1928_v26 }
 0x274   : > { %v1481_v27 = vpop.f32.mrf.mxu0  ;;  %v1930_v28 = vpop.f32.mrf.mxu1 }
 0x275   : > { %2356 = vst [vmem:[%s3499_s19 + $0x528] sm:$0xff] %v1481_v27  ;;  %2358 = vst [vmem:[%s3499_s19 + $0x538] sm:$0xff] %v1930_v28 }
 0x276   : > { %v1485_v29 = vpop.f32.mrf.mxu0  ;;  %v1934_v30 = vpop.f32.mrf.mxu1 }
 0x277   : > { %2363 = vst [vmem:[%s3499_s19 + $0x560] sm:$0xff] %v1485_v29  ;;  %2365 = vst [vmem:[%s3499_s19 + $0x570] sm:$0xff] %v1934_v30 }
 0x278   : > { %v1487_v31 = vpop.f32.mrf.mxu0  ;;  %v1936_v32 = vpop.f32.mrf.mxu1 }
 0x279   : > { %2364 = vst [vmem:[%s3499_s19 + $0x568] sm:$0xff] %v1487_v31  ;;  %2366 = vst [vmem:[%s3499_s19 + $0x578] sm:$0xff] %v1936_v32 }
 0x27a   : > { %v1491_v33 = vpop.f32.mrf.mxu0  ;;  %v1940_v34 = vpop.f32.mrf.mxu1 }
 0x27b   : > { %2371 = vst [vmem:[%s3499_s19 + $0x5a0] sm:$0xff] %v1491_v33  ;;  %2373 = vst [vmem:[%s3499_s19 + $0x5b0] sm:$0xff] %v1940_v34 }
 0x27c   : > { %v1493_v35 = vpop.f32.mrf.mxu0  ;;  %v1942_v36 = vpop.f32.mrf.mxu1 }
 0x27d   : > { %2372 = vst [vmem:[%s3499_s19 + $0x5a8] sm:$0xff] %v1493_v35  ;;  %2374 = vst [vmem:[%s3499_s19 + $0x5b8] sm:$0xff] %v1942_v36 }
 0x27e   : > { %v1497_v37 = vpop.f32.mrf.mxu0  ;;  %v1946_v38 = vpop.f32.mrf.mxu1 }
 0x27f   : > { %2379 = vst [vmem:[%s3499_s19 + $0x5e0] sm:$0xff] %v1497_v37  ;;  %2381 = vst [vmem:[%s3499_s19 + $0x5f0] sm:$0xff] %v1946_v38 }
 0x280   : > { %v1499_v39 = vpop.f32.mrf.mxu0  ;;  %v1948_v40 = vpop.f32.mrf.mxu1 }
 0x281   : > { %2380 = vst [vmem:[%s3499_s19 + $0x5e8] sm:$0xff] %v1499_v39  ;;  %2382 = vst [vmem:[%s3499_s19 + $0x5f8] sm:$0xff] %v1948_v40 }
 0x282   : > { %v1503_v41 = vpop.f32.mrf.mxu0  ;;  %v1952_v42 = vpop.f32.mrf.mxu1 }
 0x283   : > { %2387 = vst [vmem:[%s3499_s19 + $0x620] sm:$0xff] %v1503_v41  ;;  %2389 = vst [vmem:[%s3499_s19 + $0x630] sm:$0xff] %v1952_v42 }
 0x284   : > { %v1505_v43 = vpop.f32.mrf.mxu0  ;;  %v1954_v44 = vpop.f32.mrf.mxu1 }
 0x285   : > { %2388 = vst [vmem:[%s3499_s19 + $0x628] sm:$0xff] %v1505_v43  ;;  %2390 = vst [vmem:[%s3499_s19 + $0x638] sm:$0xff] %v1954_v44 }
 0x286   : > { %v1509_v45 = vpop.f32.mrf.mxu0  ;;  %v1958_v46 = vpop.f32.mrf.mxu1 }
 0x287   : > { %2395 = vst [vmem:[%s3499_s19 + $0x660] sm:$0xff] %v1509_v45  ;;  %2397 = vst [vmem:[%s3499_s19 + $0x670] sm:$0xff] %v1958_v46 }
 0x288   : > { %v1511_v47 = vpop.f32.mrf.mxu0  ;;  %v1960_v48 = vpop.f32.mrf.mxu1 }
 0x289   : > { %2396 = vst [vmem:[%s3499_s19 + $0x668] sm:$0xff] %v1511_v47  ;;  %2398 = vst [vmem:[%s3499_s19 + $0x678] sm:$0xff] %v1960_v48 }
 0x28a   : > { %v1515_v49 = vpop.f32.mrf.mxu0  ;;  %v1964_v50 = vpop.f32.mrf.mxu1 }
 0x28b   : > { %2403 = vst [vmem:[%s3499_s19 + $0x6a0] sm:$0xff] %v1515_v49  ;;  %2405 = vst [vmem:[%s3499_s19 + $0x6b0] sm:$0xff] %v1964_v50 }
 0x28c   : > { %v1517_v51 = vpop.f32.mrf.mxu0  ;;  %v1966_v52 = vpop.f32.mrf.mxu1 }
 0x28d   : > { %2404 = vst [vmem:[%s3499_s19 + $0x6a8] sm:$0xff] %v1517_v51  ;;  %2406 = vst [vmem:[%s3499_s19 + $0x6b8] sm:$0xff] %v1966_v52 }
 0x28e   : > { %v1521_v53 = vpop.f32.mrf.mxu0  ;;  %v1970_v54 = vpop.f32.mrf.mxu1 }
 0x28f   : > { %2411 = vst [vmem:[%s3499_s19 + $0x6e0] sm:$0xff] %v1521_v53  ;;  %2413 = vst [vmem:[%s3499_s19 + $0x6f0] sm:$0xff] %v1970_v54 }
 0x290   : > { %v1523_v55 = vpop.f32.mrf.mxu0  ;;  %v1972_v56 = vpop.f32.mrf.mxu1 }
 0x291   : > { %2412 = vst [vmem:[%s3499_s19 + $0x6e8] sm:$0xff] %v1523_v55  ;;  %2414 = vst [vmem:[%s3499_s19 + $0x6f8] sm:$0xff] %v1972_v56 }
 0x292   : > { %v1527_v57 = vpop.f32.mrf.mxu0  ;;  %v1976_v58 = vpop.f32.mrf.mxu1 }
 0x293   : > { %2419 = vst [vmem:[%s3499_s19 + $0x720] sm:$0xff] %v1527_v57  ;;  %2421 = vst [vmem:[%s3499_s19 + $0x730] sm:$0xff] %v1976_v58 }
 0x294   : > { %v1529_v59 = vpop.f32.mrf.mxu0  ;;  %v1978_v60 = vpop.f32.mrf.mxu1 }
 0x295   : > { %2420 = vst [vmem:[%s3499_s19 + $0x728] sm:$0xff] %v1529_v59  ;;  %2422 = vst [vmem:[%s3499_s19 + $0x738] sm:$0xff] %v1978_v60 }
 0x296   : > { %v1533_v61 = vpop.f32.mrf.mxu0  ;;  %v1982_v62 = vpop.f32.mrf.mxu1 }
 0x297   : > { %2427 = vst [vmem:[%s3499_s19 + $0x760] sm:$0xff] %v1533_v61  ;;  %2429 = vst [vmem:[%s3499_s19 + $0x770] sm:$0xff] %v1982_v62 }
 0x298   : > { %v1535_v63 = vpop.f32.mrf.mxu0  ;;  %v1984_v1 = vpop.f32.mrf.mxu1 }
 0x299   : > { %2428 = vst [vmem:[%s3499_s19 + $0x768] sm:$0xff] %v1535_v63  ;;  %2430 = vst [vmem:[%s3499_s19 + $0x778] sm:$0xff] %v1984_v1 }
 0x29a   : > { %v1539_v2 = vpop.f32.mrf.mxu0  ;;  %v1988_v3 = vpop.f32.mrf.mxu1 }
 0x29b   : > { %2435 = vst [vmem:[%s3499_s19 + $0x7a0] sm:$0xff] %v1539_v2  ;;  %2437 = vst [vmem:[%s3499_s19 + $0x7b0] sm:$0xff] %v1988_v3 }
 0x29c   : > { %v1541_v4 = vpop.f32.mrf.mxu0  ;;  %v1990_v5 = vpop.f32.mrf.mxu1 }
 0x29d   : > { %2436 = vst [vmem:[%s3499_s19 + $0x7a8] sm:$0xff] %v1541_v4  ;;  %2438 = vst [vmem:[%s3499_s19 + $0x7b8] sm:$0xff] %v1990_v5 }
 0x29e   : > { %v1545_v6 = vpop.f32.mrf.mxu0  ;;  %v1994_v7 = vpop.f32.mrf.mxu1 }
 0x29f   : > { %2443 = vst [vmem:[%s3499_s19 + $0x7e0] sm:$0xff] %v1545_v6  ;;  %2445 = vst [vmem:[%s3499_s19 + $0x7f0] sm:$0xff] %v1994_v7 }
 0x2a0   : > { %v1547_v8 = vpop.f32.mrf.mxu0  ;;  %v1996_v9 = vpop.f32.mrf.mxu1 }
 0x2a1   : > { %2444 = vst [vmem:[%s3499_s19 + $0x7e8] sm:$0xff] %v1547_v8  ;;  %2446 = vst [vmem:[%s3499_s19 + $0x7f8] sm:$0xff] %v1996_v9 }
 0x2a2   : > { %v1551_v0 = vpop.f32.mrf.mxu0  ;;  %v2000_v10 = vpop.f32.mrf.mxu1 }
 0x2a3   : > { %2451 = vst [vmem:[%s3499_s19 + $0x820] sm:$0xff] %v1551_v0  ;;  %2453 = vst [vmem:[%s3499_s19 + $0x830] sm:$0xff] %v2000_v10 }
 0x2a4   : > { %v1553_v11 = vpop.f32.mrf.mxu0  ;;  %v2002_v12 = vpop.f32.mrf.mxu1 }
 0x2a5   : > { %2452 = vst [vmem:[%s3499_s19 + $0x828] sm:$0xff] %v1553_v11  ;;  %2454 = vst [vmem:[%s3499_s19 + $0x838] sm:$0xff] %v2002_v12 }
 0x2a6   : > { %v1557_v13 = vpop.f32.mrf.mxu0  ;;  %v2006_v14 = vpop.f32.mrf.mxu1 }
 0x2a7   : > { %2459 = vst [vmem:[%s3499_s19 + $0x860] sm:$0xff] %v1557_v13  ;;  %2461 = vst [vmem:[%s3499_s19 + $0x870] sm:$0xff] %v2006_v14 }
 0x2a8   : > { %v1559_v15 = vpop.f32.mrf.mxu0  ;;  %v2008_v16 = vpop.f32.mrf.mxu1 }
 0x2a9   : > { %2460 = vst [vmem:[%s3499_s19 + $0x868] sm:$0xff] %v1559_v15  ;;  %2462 = vst [vmem:[%s3499_s19 + $0x878] sm:$0xff] %v2008_v16 }
 0x2aa   : > { %v1563_v17 = vpop.f32.mrf.mxu0  ;;  %v2012_v18 = vpop.f32.mrf.mxu1 }
 0x2ab   : > { %2467 = vst [vmem:[%s3499_s19 + $0x8a0] sm:$0xff] %v1563_v17  ;;  %2469 = vst [vmem:[%s3499_s19 + $0x8b0] sm:$0xff] %v2012_v18 }
 0x2ac   : > { %v1565_v19 = vpop.f32.mrf.mxu0  ;;  %v2014_v20 = vpop.f32.mrf.mxu1 }
 0x2ad   : > { %2468 = vst [vmem:[%s3499_s19 + $0x8a8] sm:$0xff] %v1565_v19  ;;  %2470 = vst [vmem:[%s3499_s19 + $0x8b8] sm:$0xff] %v2014_v20 }
 0x2ae   : > { %v1569_v21 = vpop.f32.mrf.mxu0  ;;  %v2018_v22 = vpop.f32.mrf.mxu1 }
 0x2af   : > { %2475 = vst [vmem:[%s3499_s19 + $0x8e0] sm:$0xff] %v1569_v21  ;;  %2477 = vst [vmem:[%s3499_s19 + $0x8f0] sm:$0xff] %v2018_v22 }
 0x2b0   : > { %v1571_v23 = vpop.f32.mrf.mxu0  ;;  %v2020_v24 = vpop.f32.mrf.mxu1 }
 0x2b1   : > { %2476 = vst [vmem:[%s3499_s19 + $0x8e8] sm:$0xff] %v1571_v23  ;;  %2478 = vst [vmem:[%s3499_s19 + $0x8f8] sm:$0xff] %v2020_v24 }
 0x2b2   : > { %v1575_v25 = vpop.f32.mrf.mxu0  ;;  %v2024_v26 = vpop.f32.mrf.mxu1 }
 0x2b3   : > { %2483 = vst [vmem:[%s3499_s19 + $0x920] sm:$0xff] %v1575_v25  ;;  %2485 = vst [vmem:[%s3499_s19 + $0x930] sm:$0xff] %v2024_v26 }
 0x2b4   : > { %v1577_v27 = vpop.f32.mrf.mxu0  ;;  %v2026_v28 = vpop.f32.mrf.mxu1 }
 0x2b5   : > { %2484 = vst [vmem:[%s3499_s19 + $0x928] sm:$0xff] %v1577_v27  ;;  %2486 = vst [vmem:[%s3499_s19 + $0x938] sm:$0xff] %v2026_v28 }
 0x2b6   : > { %v1581_v29 = vpop.f32.mrf.mxu0  ;;  %v2030_v30 = vpop.f32.mrf.mxu1 }
 0x2b7   : > { %2491 = vst [vmem:[%s3499_s19 + $0x960] sm:$0xff] %v1581_v29  ;;  %2493 = vst [vmem:[%s3499_s19 + $0x970] sm:$0xff] %v2030_v30 }
 0x2b8   : > { %v1583_v31 = vpop.f32.mrf.mxu0  ;;  %v2032_v32 = vpop.f32.mrf.mxu1 }
 0x2b9   : > { %2492 = vst [vmem:[%s3499_s19 + $0x968] sm:$0xff] %v1583_v31  ;;  %2494 = vst [vmem:[%s3499_s19 + $0x978] sm:$0xff] %v2032_v32 }
 0x2ba   : > { %v1587_v33 = vpop.f32.mrf.mxu0  ;;  %v2036_v34 = vpop.f32.mrf.mxu1 }
 0x2bb   : > { %2499 = vst [vmem:[%s3499_s19 + $0x9a0] sm:$0xff] %v1587_v33  ;;  %2501 = vst [vmem:[%s3499_s19 + $0x9b0] sm:$0xff] %v2036_v34 }
 0x2bc   : > { %v1589_v35 = vpop.f32.mrf.mxu0  ;;  %v2038_v36 = vpop.f32.mrf.mxu1 }
 0x2bd   : > { %2500 = vst [vmem:[%s3499_s19 + $0x9a8] sm:$0xff] %v1589_v35  ;;  %2502 = vst [vmem:[%s3499_s19 + $0x9b8] sm:$0xff] %v2038_v36 }
 0x2be   : > { %v1593_v37 = vpop.f32.mrf.mxu0  ;;  %v2042_v38 = vpop.f32.mrf.mxu1 }
 0x2bf   : > { %2507 = vst [vmem:[%s3499_s19 + $0x9e0] sm:$0xff] %v1593_v37  ;;  %2509 = vst [vmem:[%s3499_s19 + $0x9f0] sm:$0xff] %v2042_v38 }
 0x2c0   : > { %v1595_v39 = vpop.f32.mrf.mxu0  ;;  %v2044_v40 = vpop.f32.mrf.mxu1 }
 0x2c1   : > { %2508 = vst [vmem:[%s3499_s19 + $0x9e8] sm:$0xff] %v1595_v39  ;;  %2510 = vst [vmem:[%s3499_s19 + $0x9f8] sm:$0xff] %v2044_v40 }
 0x2c2   : > { %v1599_v41 = vpop.f32.mrf.mxu0  ;;  %v2048_v42 = vpop.f32.mrf.mxu1 }
 0x2c3   : > { %2515 = vst [vmem:[%s3499_s19 + $0xa20] sm:$0xff] %v1599_v41  ;;  %2517 = vst [vmem:[%s3499_s19 + $0xa30] sm:$0xff] %v2048_v42 }
 0x2c4   : > { %v1601_v43 = vpop.f32.mrf.mxu0  ;;  %v2050_v44 = vpop.f32.mrf.mxu1 }
 0x2c5   : > { %2516 = vst [vmem:[%s3499_s19 + $0xa28] sm:$0xff] %v1601_v43  ;;  %2518 = vst [vmem:[%s3499_s19 + $0xa38] sm:$0xff] %v2050_v44 }
 0x2c6   : > { %v1605_v45 = vpop.f32.mrf.mxu0  ;;  %v2054_v46 = vpop.f32.mrf.mxu1 }
 0x2c7   : > { %2523 = vst [vmem:[%s3499_s19 + $0xa60] sm:$0xff] %v1605_v45  ;;  %2525 = vst [vmem:[%s3499_s19 + $0xa70] sm:$0xff] %v2054_v46 }
 0x2c8   : > { %v1607_v47 = vpop.f32.mrf.mxu0  ;;  %v2056_v48 = vpop.f32.mrf.mxu1 }
 0x2c9   : > { %2524 = vst [vmem:[%s3499_s19 + $0xa68] sm:$0xff] %v1607_v47  ;;  %2526 = vst [vmem:[%s3499_s19 + $0xa78] sm:$0xff] %v2056_v48 }
 0x2ca   : > { %v1611_v49 = vpop.f32.mrf.mxu0  ;;  %v2060_v50 = vpop.f32.mrf.mxu1 }
 0x2cb   : > { %2531 = vst [vmem:[%s3499_s19 + $0xaa0] sm:$0xff] %v1611_v49  ;;  %2533 = vst [vmem:[%s3499_s19 + $0xab0] sm:$0xff] %v2060_v50 }
 0x2cc   : > { %v1613_v51 = vpop.f32.mrf.mxu0  ;;  %v2062_v52 = vpop.f32.mrf.mxu1 }
 0x2cd   : > { %2532 = vst [vmem:[%s3499_s19 + $0xaa8] sm:$0xff] %v1613_v51  ;;  %2534 = vst [vmem:[%s3499_s19 + $0xab8] sm:$0xff] %v2062_v52 }
 0x2ce   : > { %v1617_v53 = vpop.f32.mrf.mxu0  ;;  %v2066_v54 = vpop.f32.mrf.mxu1 }
 0x2cf   : > { %2539 = vst [vmem:[%s3499_s19 + $0xae0] sm:$0xff] %v1617_v53  ;;  %2541 = vst [vmem:[%s3499_s19 + $0xaf0] sm:$0xff] %v2066_v54 }
 0x2d0   : > { %v1619_v55 = vpop.f32.mrf.mxu0  ;;  %v2068_v56 = vpop.f32.mrf.mxu1 }
 0x2d1   : > { %2540 = vst [vmem:[%s3499_s19 + $0xae8] sm:$0xff] %v1619_v55  ;;  %2542 = vst [vmem:[%s3499_s19 + $0xaf8] sm:$0xff] %v2068_v56 }
 0x2d2   : > { %v1623_v57 = vpop.f32.mrf.mxu0  ;;  %v2072_v58 = vpop.f32.mrf.mxu1 }
 0x2d3   : > { %2547 = vst [vmem:[%s3499_s19 + $0xb20] sm:$0xff] %v1623_v57  ;;  %2549 = vst [vmem:[%s3499_s19 + $0xb30] sm:$0xff] %v2072_v58 }
 0x2d4   : > { %v1625_v59 = vpop.f32.mrf.mxu0  ;;  %v2074_v60 = vpop.f32.mrf.mxu1 }
 0x2d5   : > { %2548 = vst [vmem:[%s3499_s19 + $0xb28] sm:$0xff] %v1625_v59  ;;  %2550 = vst [vmem:[%s3499_s19 + $0xb38] sm:$0xff] %v2074_v60 }
 0x2d6   : > { %v1629_v61 = vpop.f32.mrf.mxu0  ;;  %v2078_v62 = vpop.f32.mrf.mxu1 }
 0x2d7   : > { %2555 = vst [vmem:[%s3499_s19 + $0xb60] sm:$0xff] %v1629_v61  ;;  %2557 = vst [vmem:[%s3499_s19 + $0xb70] sm:$0xff] %v2078_v62 }
 0x2d8   : > { %v1631_v63 = vpop.f32.mrf.mxu0  ;;  %v2080_v1 = vpop.f32.mrf.mxu1 }
 0x2d9   : > { %2556 = vst [vmem:[%s3499_s19 + $0xb68] sm:$0xff] %v1631_v63  ;;  %2558 = vst [vmem:[%s3499_s19 + $0xb78] sm:$0xff] %v2080_v1 }
 0x2da   : > { %v1635_v2 = vpop.f32.mrf.mxu0  ;;  %v2084_v3 = vpop.f32.mrf.mxu1 }
 0x2db   : > { %2563 = vst [vmem:[%s3499_s19 + $0xba0] sm:$0xff] %v1635_v2  ;;  %2565 = vst [vmem:[%s3499_s19 + $0xbb0] sm:$0xff] %v2084_v3 }
 0x2dc   : > { %v1637_v4 = vpop.f32.mrf.mxu0  ;;  %v2086_v5 = vpop.f32.mrf.mxu1 }
 0x2dd   : > { %2564 = vst [vmem:[%s3499_s19 + $0xba8] sm:$0xff] %v1637_v4  ;;  %2566 = vst [vmem:[%s3499_s19 + $0xbb8] sm:$0xff] %v2086_v5 }
 0x2de   : > { %v1641_v6 = vpop.f32.mrf.mxu0  ;;  %v2090_v7 = vpop.f32.mrf.mxu1 }
 0x2df   : > { %2571 = vst [vmem:[%s3499_s19 + $0xbe0] sm:$0xff] %v1641_v6  ;;  %2573 = vst [vmem:[%s3499_s19 + $0xbf0] sm:$0xff] %v2090_v7 }
 0x2e0   : > { %v1643_v8 = vpop.f32.mrf.mxu0  ;;  %v2092_v9 = vpop.f32.mrf.mxu1 }
 0x2e1   : > { %2572 = vst [vmem:[%s3499_s19 + $0xbe8] sm:$0xff] %v1643_v8  ;;  %2574 = vst [vmem:[%s3499_s19 + $0xbf8] sm:$0xff] %v2092_v9 }
 0x2e2   : > { %v1647_v0 = vpop.f32.mrf.mxu0  ;;  %v2096_v10 = vpop.f32.mrf.mxu1 }
 0x2e3   : > { %2579 = vst [vmem:[%s3499_s19 + $0xc20] sm:$0xff] %v1647_v0  ;;  %2581 = vst [vmem:[%s3499_s19 + $0xc30] sm:$0xff] %v2096_v10 }
 0x2e4   : > { %v1649_v11 = vpop.f32.mrf.mxu0  ;;  %v2098_v12 = vpop.f32.mrf.mxu1 }
 0x2e5   : > { %2580 = vst [vmem:[%s3499_s19 + $0xc28] sm:$0xff] %v1649_v11  ;;  %2582 = vst [vmem:[%s3499_s19 + $0xc38] sm:$0xff] %v2098_v12 }
 0x2e6   : > { %v1653_v13 = vpop.f32.mrf.mxu0  ;;  %v2102_v14 = vpop.f32.mrf.mxu1 }
 0x2e7   : > { %2587 = vst [vmem:[%s3499_s19 + $0xc60] sm:$0xff] %v1653_v13  ;;  %2589 = vst [vmem:[%s3499_s19 + $0xc70] sm:$0xff] %v2102_v14 }
 0x2e8   : > { %v1655_v15 = vpop.f32.mrf.mxu0  ;;  %v2104_v16 = vpop.f32.mrf.mxu1 }
 0x2e9   : > { %2588 = vst [vmem:[%s3499_s19 + $0xc68] sm:$0xff] %v1655_v15  ;;  %2590 = vst [vmem:[%s3499_s19 + $0xc78] sm:$0xff] %v2104_v16 }
 0x2ea   : > { %v1659_v17 = vpop.f32.mrf.mxu0  ;;  %v2108_v18 = vpop.f32.mrf.mxu1 }
 0x2eb   : > { %2595 = vst [vmem:[%s3499_s19 + $0xca0] sm:$0xff] %v1659_v17  ;;  %2597 = vst [vmem:[%s3499_s19 + $0xcb0] sm:$0xff] %v2108_v18 }
 0x2ec   : > { %v1661_v19 = vpop.f32.mrf.mxu0  ;;  %v2110_v20 = vpop.f32.mrf.mxu1 }
 0x2ed   : > { %2596 = vst [vmem:[%s3499_s19 + $0xca8] sm:$0xff] %v1661_v19  ;;  %2598 = vst [vmem:[%s3499_s19 + $0xcb8] sm:$0xff] %v2110_v20 }
 0x2ee   : > { %v1665_v21 = vpop.f32.mrf.mxu0  ;;  %v2114_v22 = vpop.f32.mrf.mxu1 }
 0x2ef   : > { %2603 = vst [vmem:[%s3499_s19 + $0xce0] sm:$0xff] %v1665_v21  ;;  %2605 = vst [vmem:[%s3499_s19 + $0xcf0] sm:$0xff] %v2114_v22 }
 0x2f0   : > { %v1667_v23 = vpop.f32.mrf.mxu0  ;;  %v2116_v24 = vpop.f32.mrf.mxu1 }
 0x2f1   : > { %2604 = vst [vmem:[%s3499_s19 + $0xce8] sm:$0xff] %v1667_v23  ;;  %2606 = vst [vmem:[%s3499_s19 + $0xcf8] sm:$0xff] %v2116_v24 }
 0x2f2   : > { %v1671_v25 = vpop.f32.mrf.mxu0  ;;  %v2120_v26 = vpop.f32.mrf.mxu1 }
 0x2f3   : > { %2611 = vst [vmem:[%s3499_s19 + $0xd20] sm:$0xff] %v1671_v25  ;;  %2613 = vst [vmem:[%s3499_s19 + $0xd30] sm:$0xff] %v2120_v26 }
 0x2f4   : > { %v1673_v27 = vpop.f32.mrf.mxu0  ;;  %v2122_v28 = vpop.f32.mrf.mxu1 }
 0x2f5   : > { %2612 = vst [vmem:[%s3499_s19 + $0xd28] sm:$0xff] %v1673_v27  ;;  %2614 = vst [vmem:[%s3499_s19 + $0xd38] sm:$0xff] %v2122_v28 }
 0x2f6   : > { %v1677_v29 = vpop.f32.mrf.mxu0  ;;  %v2126_v30 = vpop.f32.mrf.mxu1 }
 0x2f7   : > { %2619 = vst [vmem:[%s3499_s19 + $0xd60] sm:$0xff] %v1677_v29  ;;  %2621 = vst [vmem:[%s3499_s19 + $0xd70] sm:$0xff] %v2126_v30 }
 0x2f8   : > { %v1679_v31 = vpop.f32.mrf.mxu0  ;;  %v2128_v32 = vpop.f32.mrf.mxu1 }
 0x2f9   : > { %2620 = vst [vmem:[%s3499_s19 + $0xd68] sm:$0xff] %v1679_v31  ;;  %2622 = vst [vmem:[%s3499_s19 + $0xd78] sm:$0xff] %v2128_v32 }
 0x2fa   : > { %v1683_v33 = vpop.f32.mrf.mxu0  ;;  %v2132_v34 = vpop.f32.mrf.mxu1 }
 0x2fb   : > { %2627 = vst [vmem:[%s3499_s19 + $0xda0] sm:$0xff] %v1683_v33  ;;  %2629 = vst [vmem:[%s3499_s19 + $0xdb0] sm:$0xff] %v2132_v34 }
 0x2fc   : > { %v1685_v35 = vpop.f32.mrf.mxu0  ;;  %v2134_v36 = vpop.f32.mrf.mxu1 }
 0x2fd   : > { %2628 = vst [vmem:[%s3499_s19 + $0xda8] sm:$0xff] %v1685_v35  ;;  %2630 = vst [vmem:[%s3499_s19 + $0xdb8] sm:$0xff] %v2134_v36 }
 0x2fe   : > { %v1689_v37 = vpop.f32.mrf.mxu0  ;;  %v2138_v38 = vpop.f32.mrf.mxu1 }
 0x2ff   : > { %2635 = vst [vmem:[%s3499_s19 + $0xde0] sm:$0xff] %v1689_v37  ;;  %2637 = vst [vmem:[%s3499_s19 + $0xdf0] sm:$0xff] %v2138_v38 }
 0x300   : > { %v1691_v39 = vpop.f32.mrf.mxu0  ;;  %v2140_v40 = vpop.f32.mrf.mxu1 }
 0x301   : > { %2636 = vst [vmem:[%s3499_s19 + $0xde8] sm:$0xff] %v1691_v39  ;;  %2638 = vst [vmem:[%s3499_s19 + $0xdf8] sm:$0xff] %v2140_v40 }
 0x302   : > { %v1695_v41 = vpop.f32.mrf.mxu0  ;;  %v2144_v42 = vpop.f32.mrf.mxu1 }
 0x303   : > { %2643 = vst [vmem:[%s3499_s19 + $0xe20] sm:$0xff] %v1695_v41  ;;  %2645 = vst [vmem:[%s3499_s19 + $0xe30] sm:$0xff] %v2144_v42 }
 0x304   : > { %v1697_v43 = vpop.f32.mrf.mxu0  ;;  %v2146_v44 = vpop.f32.mrf.mxu1 }
 0x305   : > { %2644 = vst [vmem:[%s3499_s19 + $0xe28] sm:$0xff] %v1697_v43  ;;  %2646 = vst [vmem:[%s3499_s19 + $0xe38] sm:$0xff] %v2146_v44 }
 0x306   : > { %v1701_v45 = vpop.f32.mrf.mxu0  ;;  %v2150_v46 = vpop.f32.mrf.mxu1 }
 0x307   : > { %2651 = vst [vmem:[%s3499_s19 + $0xe60] sm:$0xff] %v1701_v45  ;;  %2653 = vst [vmem:[%s3499_s19 + $0xe70] sm:$0xff] %v2150_v46 }
 0x308   : > { %v1703_v47 = vpop.f32.mrf.mxu0  ;;  %v2152_v48 = vpop.f32.mrf.mxu1 }
 0x309   : > { %2652 = vst [vmem:[%s3499_s19 + $0xe68] sm:$0xff] %v1703_v47  ;;  %2654 = vst [vmem:[%s3499_s19 + $0xe78] sm:$0xff] %v2152_v48 }
 0x30a   : > { %v1707_v49 = vpop.f32.mrf.mxu0  ;;  %v2156_v50 = vpop.f32.mrf.mxu1 }
 0x30b   : > { %2659 = vst [vmem:[%s3499_s19 + $0xea0] sm:$0xff] %v1707_v49  ;;  %2661 = vst [vmem:[%s3499_s19 + $0xeb0] sm:$0xff] %v2156_v50 }
 0x30c   : > { %v1709_v51 = vpop.f32.mrf.mxu0  ;;  %v2158_v52 = vpop.f32.mrf.mxu1 }
 0x30d   : > { %2660 = vst [vmem:[%s3499_s19 + $0xea8] sm:$0xff] %v1709_v51  ;;  %2662 = vst [vmem:[%s3499_s19 + $0xeb8] sm:$0xff] %v2158_v52 }
 0x30e   : > { %v1713_v53 = vpop.f32.mrf.mxu0  ;;  %v2162_v54 = vpop.f32.mrf.mxu1 }
 0x30f   : > { %2667 = vst [vmem:[%s3499_s19 + $0xee0] sm:$0xff] %v1713_v53  ;;  %2669 = vst [vmem:[%s3499_s19 + $0xef0] sm:$0xff] %v2162_v54 }
 0x310   : > { %v1715_v55 = vpop.f32.mrf.mxu0  ;;  %v2164_v56 = vpop.f32.mrf.mxu1 }
 0x311   : > { %2668 = vst [vmem:[%s3499_s19 + $0xee8] sm:$0xff] %v1715_v55  ;;  %2670 = vst [vmem:[%s3499_s19 + $0xef8] sm:$0xff] %v2164_v56 }
 0x312   : > { %v1719_v57 = vpop.f32.mrf.mxu0  ;;  %v2168_v58 = vpop.f32.mrf.mxu1 }
 0x313   : > { %2675 = vst [vmem:[%s3499_s19 + $0xf20] sm:$0xff] %v1719_v57  ;;  %2677 = vst [vmem:[%s3499_s19 + $0xf30] sm:$0xff] %v2168_v58 }
 0x314   : > { %v1721_v59 = vpop.f32.mrf.mxu0  ;;  %v2170_v60 = vpop.f32.mrf.mxu1 }
 0x315   : > { %2676 = vst [vmem:[%s3499_s19 + $0xf28] sm:$0xff] %v1721_v59  ;;  %2678 = vst [vmem:[%s3499_s19 + $0xf38] sm:$0xff] %v2170_v60 }
 0x316   : > { %v1725_v61 = vpop.f32.mrf.mxu0  ;;  %v2174_v62 = vpop.f32.mrf.mxu1 }
 0x317   : > { %2683 = vst [vmem:[%s3499_s19 + $0xf60] sm:$0xff] %v1725_v61  ;;  %2685 = vst [vmem:[%s3499_s19 + $0xf70] sm:$0xff] %v2174_v62 }
 0x318   : > { %v1727_v63 = vpop.f32.mrf.mxu0  ;;  %v2176_v1 = vpop.f32.mrf.mxu1 }
 0x319   : > { %2684 = vst [vmem:[%s3499_s19 + $0xf68] sm:$0xff] %v1727_v63  ;;  %2686 = vst [vmem:[%s3499_s19 + $0xf78] sm:$0xff] %v2176_v1 }
 0x31a   : > { %v1731_v2 = vpop.f32.mrf.mxu0  ;;  %v2180_v3 = vpop.f32.mrf.mxu1 }
 0x31b   : > { %2691 = vst [vmem:[%s3499_s19 + $0xfa0] sm:$0xff] %v1731_v2  ;;  %2693 = vst [vmem:[%s3499_s19 + $0xfb0] sm:$0xff] %v2180_v3 }
 0x31c   : > { %v1733_v4 = vpop.f32.mrf.mxu0  ;;  %v2182_v5 = vpop.f32.mrf.mxu1 }
 0x31d   : > { %2692 = vst [vmem:[%s3499_s19 + $0xfa8] sm:$0xff] %v1733_v4  ;;  %2694 = vst [vmem:[%s3499_s19 + $0xfb8] sm:$0xff] %v2182_v5 }
 0x31e   : > { %v1737_v6 = vpop.f32.mrf.mxu0  ;;  %v2186_v7 = vpop.f32.mrf.mxu1 }
 0x31f   : > { %2699 = vst [vmem:[%s3499_s19 + $0xfe0] sm:$0xff] %v1737_v6  ;;  %2701 = vst [vmem:[%s3499_s19 + $0xff0] sm:$0xff] %v2186_v7 }
 0x320   : > { %v1739_v8 = vpop.f32.mrf.mxu0  ;;  %v2188_v9 = vpop.f32.mrf.mxu1 }
 0x321   : > { %2700 = vst [vmem:[%s3499_s19 + $0xfe8] sm:$0xff] %v1739_v8  ;;  %2702 = vst [vmem:[%s3499_s19 + $0xff8] sm:$0xff] %v2188_v9 }
 0x322   : > { %3050 = shalt.err (!%p3047_p0)
}
 0x323   : > { %s3051_s4 = scalar_lea.hbm %s4172_s28, 65536  ;;  %s3055_s8 = scalar_lea.hbm %s4227_s2, 196608 }
 0x324   : > { %p3052_p1 = scmp.ne.s32.totalorder %s4172_s28, %s3051_s4  ;;  %p3056_p9 = scmp.lt.s32.totalorder %s4172_s28, %s4227_s2 }
 0x325   : > { %p3057_p11 = scmp.lt.s32.totalorder %s3055_s8, %s3051_s4 }
 0x326   : > { %p3053_p5 = pnand %p3052_p1, %p4241_p12 }
 0x327   : > { %p3058_p2 = por %p3057_p11, %p3056_p9 }
 0x328   : > { %p3054_p7 = pneg %p3053_p5 }
 0x32a   : > { %p3059_p3 = pnand %p3058_p2, %p3054_p7 }
 0x32c   : > { %3062 = shalt.err (!%p3059_p3)
}
 0x32d   : > { %s3132_s18 = smov 1024   ;;  %s3133_s17 = smov 3072  }
 0x32e   : > { %s3134_s19 = smov 64  }
 0x32f   : > { %2843 = dma.vmem_to_hbm [thread:$0]  (%p4241_p12), %s4174_s26, 65536, %s4172_s28, %s2704_s12, %s3132_s18, %s3133_s17, %s3134_s19  }
 0x330 PF: > { %s4242_s22 = sld [smem:[#allocation11_spill]]  ;;  %p2860_p13 = scmp.ge.s32.totalorder %s3121_s14, 2 }
 0x331   : > { %s2735_s23 = sand.u32 1, %s3101_s9  }
 0x332   : > { %s2736_s25 = scalar_lea.sflag [#allocation4], %s2735_s23 }
 0x336   : > { %p4243_p4 = scmp.ne.s32.totalorder %s4242_s22, 0 }
 0x338   : > { %p2854_p6 = pnand %p2860_p13, %p4243_p4 }
 0x33a   : > { %p2855_p8 = pneg %p2854_p6 }
 0x33c   : > { %3096 = dma.done.wait (%p2855_p8), %s2736_s25, 65536  }
 0x33d   : > { %3098 = vsyncadd (%p2855_p8), %s2736_s25, 4294901760  ;;  %s19_s14 = sadd.s32 1, %s3121_s14   ;;  %s4244_s9 = smov %s3105_s10 }
 0x33e   : > { %p16_p10 = scmp.ge.s32.totalorder %s19_s14, 5   ;;  %s4245_s10 = smov %s3109_s11 }
 0x33f   : > { %s4246_s11 = smov %s3249_s21  ;;  %s4247_s12 = smov %s3117_s13 }
 0x340   : > { %s4248_s13 = smov %s4250_s27  ;;  %18 = sbr.rel (!%p16_p10) target bundleno = 7 (0x7), region = 79 }
 0x345   :  { %2741 = vsyncpa [#allocation3], 1 }
 0x346   :  { %2743 = vsyncpa [#allocation3 + $0x1], 1 }
 0x347   :  { %2744 = vsyncpa [#allocation6], 1 }
 0x348   :  { %2746 = vsyncpa [#allocation6 + $0x1], 1 }
 0x349   :  { %2747 = vsyncpa [#allocation4], 1 }
 0x34a   :  { %2749 = vsyncpa [#allocation4 + $0x1], 1 }

</bundles_post_ra>
